<compile_context>
chip_gen: v7x
topology: tpu7x:2x2x1
jax: 0.10.0
libtpu: 0.0.40
codegen_flags: <defaults>
</compile_context>

<pallas_src>
import functools

import jax
import jax.numpy as jnp
import numpy as np
from jax.experimental import pallas as pl
from jax.experimental.pallas import tpu as pltpu


def _slstm_kernel(num_layers, hidden_size, seq_len, batch_tile, inv_len,
                  we_ref, m_ref, wg3_ref, bg3_ref, wfb_ref,
                  w5x_ref, w5we_ref, w5hg_ref, b5_ref, wc_ref, bc_ref, out_ref):
    H, L, Bt = hidden_size, seq_len, batch_tile
    M = Bt * L
    f32, bf16 = jnp.float32, jnp.bfloat16

    we3 = we_ref[...]                                   # [Bt, L, H] masked embeddings
    mss_b = jnp.broadcast_to(m_ref[...] * 1e25 - 1e25,  # masks_softmax_score, built
                             (Bt, L, H))                # and hoisted once per grid step

    wg3 = wg3_ref[...]                                  # [2H, 3H] fused f_g|o_g|fgi(h_g)
    bg3 = bg3_ref[...]                                  # [1, 3H]
    wfb = wfb_ref[...]                                  # [H, H]   forget_gate_i, h half
    w5x = w5x_ref[...]                                  # [3H, n6p] (before|h|after) rows
    w5hg = w5hg_ref[...]                                # [H, n6p]  h_g rows (L-invariant)
    b5 = b5_ref[...]                                    # [1, n6p]

    # layer-invariant slice of the fused 6-gate projection (+ bias), computed once
    pre_we = jnp.dot(we3.reshape(M, H).astype(bf16), w5we_ref[...],
                     preferred_element_type=f32) + b5   # [M, n6p]

    # inclusive lower-triangular [L,L] for per-sample running sums (hoisted)
    row = jax.lax.broadcasted_iota(jnp.int32, (L, L), 0)
    col = jax.lax.broadcasted_iota(jnp.int32, (L, L), 1)
    trib = jnp.broadcast_to(((col <= row).astype(bf16))[None], (Bt, L, L))

    # init states (mask is exactly 0/1, so emb*m*m == emb*m == we)
    h3 = we3
    c3 = we3
    h_g = jnp.sum(we3, axis=1) * inv_len                # mean over the ORIGINAL L
    c_g = h_g

    def layer(h3, c3, h_g, c_g):
        avg_h = jnp.sum(h3, axis=1) * inv_len                           # [Bt, H]

        # fused (forget_gate_g | output_gate_g | h_g-half of forget_gate_i) matmul
        ga = jnp.concatenate([h_g, avg_h], axis=-1).astype(bf16)        # [Bt, 2H]
        gout = jnp.dot(ga, wg3, preferred_element_type=f32) + bg3       # [Bt, 3H]
        f_g = jax.nn.sigmoid(gout[:, :H])
        o_g = jax.nn.sigmoid(gout[:, H:2 * H])
        t_g = gout[:, 2 * H:]                                           # [Bt, H]

        t_h = jnp.dot(h3.reshape(M, H).astype(bf16), wfb,
                      preferred_element_type=f32).reshape(Bt, L, H)
        f_g_i3 = jax.nn.sigmoid(t_h + t_g[:, None, :])

        # softmax over cat([f_g_i + mss, f_g], seq).  Softmax is shift-invariant and
        # every logit is a sigmoid output in (0,1) (plus -1e25 mask), so no max-pass.
        e_i = jnp.exp(f_g_i3 + mss_b)                                   # [Bt, L, H]
        e_g = jnp.exp(f_g)                                              # >= 1 -> den > 0
        den_g = jnp.sum(e_i, axis=1) + e_g
        c_g_new = (e_g * c_g + jnp.sum(e_i * c3, axis=1)) / den_g       # exact recip (recurrent)

        # before/after prefix & suffix sums: ONE tiny per-sample [L,L]x[L,2H] matmul
        hc3 = jnp.concatenate([h3, c3], axis=-1).astype(bf16)           # [Bt, L, 2H]
        cum = jnp.einsum('bts,bsh->bth', trib, hc3,
                         preferred_element_type=f32)                    # inclusive cumsum
        hc3f = hc3.astype(f32)
        tot = jnp.sum(hc3f, axis=1, keepdims=True)                      # [Bt, 1, 2H]
        before3 = cum - hc3f                                            # exclusive prefix
        after3 = tot - cum                                              # exclusive suffix
        h_before3, c_before3 = before3[..., :H], before3[..., H:]
        h_after3, c_after3 = after3[..., :H], after3[..., H:]

        # fused 6-gate projection: only the (before|h|after) K-slice is recomputed,
        # the we-slice is layer-invariant (pre_we), the h_g-slice is L-invariant.
        x3 = jnp.concatenate([h_before3, h3, h_after3], axis=-1)        # [Bt, L, 3H]
        pre_x = jnp.dot(x3.reshape(M, 3 * H).astype(bf16), w5x,
                        preferred_element_type=f32)                     # [M, n6p]
        pre_hg = jnp.dot(h_g.astype(bf16), w5hg,
                         preferred_element_type=f32)                    # [Bt, n6p]
        pre3 = (pre_x + pre_we).reshape(Bt, L, -1) + pre_hg[:, None, :]

        g_i = jax.nn.sigmoid(pre3[..., 0 * H:1 * H])
        g_l = jax.nn.sigmoid(pre3[..., 1 * H:2 * H])
        g_r = jax.nn.sigmoid(pre3[..., 2 * H:3 * H])
        g_f = jax.nn.sigmoid(pre3[..., 3 * H:4 * H])
        g_s = jax.nn.sigmoid(pre3[..., 4 * H:5 * H])
        g_o = jax.nn.sigmoid(pre3[..., 5 * H:6 * H])
        # u_gate is dead in the original forward (dangling expression) -- not computed.

        # joint softmax over the 5*L stacked rows per (sample, channel); no max-pass.
        e_gi = jnp.exp(g_i + mss_b)
        e_gl = jnp.exp(g_l + mss_b)
        e_gr = jnp.exp(g_r + mss_b)
        e_gf = jnp.exp(g_f + mss_b)
        e_gs = jnp.exp(g_s + mss_b)
        den5 = jnp.sum(e_gi + e_gl + e_gr + e_gf + e_gs, axis=1)        # [Bt, H]
        inv5 = 1.0 / jnp.maximum(den5, 1e-30)       # clamp: all-masked / padded rows stay finite
        inv5r = inv5[:, None, :]

        # NOTE: the dangling `+gate_f_lstm*...` statement in the original PyTorch forward
        # is a no-op, so only the left/right terms enter the cell update (fidelity kept).
        c_new3 = (e_gl * inv5r) * c_before3 + (e_gr * inv5r) * c_after3
        h_new3 = g_o * jnp.tanh(c_new3)
        h_g_new = o_g * jnp.tanh(c_g_new)
        return h_new3, c_new3, h_g_new, c_g_new

    if num_layers <= 2:
        for _ in range(num_layers):
            h3, c3, h_g, c_g = layer(h3, c3, h_g, c_g)
    else:
        # deep stacks: bound vreg live ranges per iteration instead of full unroll
        h3, c3, h_g, c_g = jax.lax.fori_loop(
            0, num_layers, lambda _, s: layer(*s), (h3, c3, h_g, c_g))

    logits = jnp.dot((h3 + h_g[:, None, :]).reshape(M, H).astype(bf16), wc_ref[...],
                     preferred_element_type=f32) + bc_ref[...]          # [M, nlp]
    out_ref[...] = logits.reshape(Bt, L, -1).astype(out_ref.dtype)


def slstm_forward(word_embeddings, masks, params, *, num_layers, hidden_size,
                  num_labels, batch_tile=None):
    """word_embeddings: [B, L, H] f32, masks: [B, L] f32 (0/1)."""
    f32, bf16 = jnp.float32, jnp.bfloat16
    B, L, H = word_embeddings.shape
    w2, b2, w5, b5, wc, bc = params

    # ---- sublane-align the sequence axis (padded rows are fully masked and stay
    # exactly zero through every layer; means still divide by the original L) ----
    Lp = ((L + 7) // 8) * 8
    if Lp != L:
        word_embeddings = jnp.pad(word_embeddings, ((0, 0), (0, Lp - L), (0, 0)))
        masks = jnp.pad(masks, ((0, 0), (0, Lp - L)))

    # ---- batch tiling: target M = Bt*Lp ~ 256 rows for the v6e/v7x 256-wide MXU
    # (TODO(synk): target ~128 on v5e); keep >=2 grid steps so v7x's 2 TCs are fed ----
    if batch_tile is None:
        Bt = max(1, min(B, max(1, 256 // Lp)))
        if B > 1 and pl.cdiv(B, Bt) < 2:
            Bt = pl.cdiv(B, 2)
    else:
        Bt = batch_tile
    Bp = pl.cdiv(B, Bt) * Bt
    if Bp != B:
        word_embeddings = jnp.pad(word_embeddings, ((0, Bp - B), (0, 0), (0, 0)))
        masks = jnp.pad(masks, ((0, Bp - B), (0, 0)))

    m3 = masks[:, :, None].astype(f32)                       # [Bp, Lp, 1] (H-bcast in-kernel)
    we_masked = word_embeddings.astype(f32) * m3             # emb*m (== emb*m*m, 0/1 mask)

    # ---- fused h_g-side weights: (forget_gate_g | output_gate_g | h_g-half of
    # forget_gate_i, zero-padded on its avg_h rows) -> one [Bt,2H]x[2H,3H] matmul ----
    wfa_blk = jnp.concatenate([w2[1][:H], jnp.zeros((H, H), f32)], axis=0)   # [2H, H]
    wg3 = jnp.concatenate([w2[0], w2[2], wfa_blk], axis=1).astype(bf16)      # [2H, 3H]
    bg3 = jnp.concatenate([b2[0], b2[2], b2[1]])[None, :].astype(f32)        # [1, 3H]
    wfb = w2[1][H:].astype(bf16)                                             # [H, H]

    # ---- fused 6-gate weights, split by input slice (u_gate dropped: dead code) ----
    n6 = 6 * H
    n6p = ((n6 + 127) // 128) * 128
    w5f = jnp.concatenate([w5[i] for i in range(6)], axis=1)                 # [5H, 6H]
    w5f = jnp.pad(w5f, ((0, 0), (0, n6p - n6)))
    b5f = jnp.pad(jnp.concatenate([b5[i] for i in range(6)])[None, :],
                  ((0, 0), (0, n6p - n6))).astype(f32)                       # [1, n6p]
    w5x = w5f[:3 * H].astype(bf16)           # (before|h|after) rows: per layer
    w5we = w5f[3 * H:4 * H].astype(bf16)     # word-embedding rows: layer-invariant
    w5hg = w5f[4 * H:5 * H].astype(bf16)     # h_g rows: constant over L

    nlp = ((num_labels + 127) // 128) * 128  # lane-dense logits output
    wc_p = jnp.pad(wc, ((0, 0), (0, nlp - num_labels))).astype(bf16)         # [H, nlp]
    bc_p = jnp.pad(bc, ((0, 0), (0, nlp - num_labels))).astype(f32)          # [1, nlp]

    # ---- generation-aware VMEM budget (v5e/v6e: 128 MiB physical, v7x: 64 MiB) ----
    try:
        vmem_cap = int(pltpu.get_tpu_info().vmem_capacity_bytes)
    except Exception:
        vmem_cap = 64 * 1024 * 1024
    vmem_limit = max(32 << 20, min(96 << 20, (vmem_cap * 3) // 4))

    kernel = functools.partial(_slstm_kernel, num_layers, H, Lp, Bt, 1.0 / L)

    def _run(use_buffered):
        def cspec(shape):
            zeros = (0,) * len(shape)
            if use_buffered:     # grid-invariant weights: single-buffer to halve VMEM
                return pl.BlockSpec(shape, lambda b, z=zeros: z,
                                    pipeline_mode=pl.Buffered(1))
            return pl.BlockSpec(shape, lambda b, z=zeros: z)

        return pl.pallas_call(
            kernel,
            out_shape=jax.ShapeDtypeStruct((Bp, Lp, nlp), jnp.float32),
            grid=(Bp // Bt,),
            in_specs=[
                pl.BlockSpec((Bt, Lp, H), lambda b: (b, 0, 0)),   # masked embeddings
                pl.BlockSpec((Bt, Lp, 1), lambda b: (b, 0, 0)),   # masks (lane-bcast in-kernel)
                cspec((2 * H, 3 * H)), cspec((1, 3 * H)), cspec((H, H)),
                cspec((3 * H, n6p)), cspec((H, n6p)), cspec((H, n6p)), cspec((1, n6p)),
                cspec((H, nlp)), cspec((1, nlp)),
            ],
            out_specs=pl.BlockSpec((Bt, Lp, nlp), lambda b: (b, 0, 0)),
            compiler_params=pltpu.CompilerParams(
                dimension_semantics=("parallel",),
                vmem_limit_bytes=vmem_limit),
        )(we_masked, m3, wg3, bg3, wfb, w5x, w5we, w5hg, b5f, wc_p, bc_p)

    try:
        out = _run(True)
    except Exception:
        out = _run(False)   # fallback if BlockSpec(pipeline_mode=...) is unavailable

    return out[:B, :L, :num_labels]


def slstm_reference(word_embeddings, masks, params, *, num_layers, hidden_size,
                    num_labels):
    """Pure-JAX (f32, unfused) mirror of the PyTorch forward, for validation."""
    B, L, H = word_embeddings.shape
    w2, b2, w5, b5, wc, bc = params
    m = masks[..., None].astype(jnp.float32)
    maskBLH = jnp.broadcast_to(m, (B, L, H))
    mss = maskBLH * 1e25 - 1e25
    h = word_embeddings * maskBLH
    h = h * maskBLH
    c = h
    we = word_embeddings * maskBLH
    h_g = jnp.mean(h, axis=1)
    c_g = h_g
    row = jnp.arange(L)[:, None]
    col = jnp.arange(L)[None, :]
    lower = (col < row).astype(jnp.float32)
    upper = (col > row).astype(jnp.float32)
    for _ in range(num_layers):
        avg_h = jnp.mean(h, axis=1)
        ga = jnp.concatenate([h_g, avg_h], axis=-1)
        f_g = jax.nn.sigmoid(ga @ w2[0] + b2[0])
        o_g = jax.nn.sigmoid(ga @ w2[2] + b2[2])
        hg_rep = jnp.broadcast_to(h_g[:, None, :], (B, L, H))
        f_g_i = jax.nn.sigmoid(jnp.concatenate([hg_rep, h], -1) @ w2[1] + b2[1])
        scores = jnp.concatenate([f_g_i + mss, f_g[:, None, :]], axis=1)
        sm = jax.nn.softmax(scores, axis=1)
        c_g_new = sm[:, -1, :] * c_g + jnp.sum(sm[:, :-1, :] * c, axis=1)

        h_before = jnp.einsum('ts,bsh->bth', lower, h)
        h_after = jnp.einsum('ts,bsh->bth', upper, h)
        c_before = jnp.einsum('ts,bsh->bth', lower, c)
        c_after = jnp.einsum('ts,bsh->bth', upper, c)

        x = jnp.concatenate([h_before, h, h_after, we, hg_rep], axis=-1)
        pre = [x @ w5[i] + b5[i] for i in range(7)]
        g = [jax.nn.sigmoid(p) for p in pre[:6]]
        sc = jnp.concatenate([g[0] + mss, g[1] + mss, g[2] + mss,
                              g[3] + mss, g[4] + mss], axis=1)
        sm5 = jax.nn.softmax(sc, axis=1)
        g_i, g_l, g_r, g_f, g_s = jnp.split(sm5, 5, axis=1)
        c_new = g_l * c_before + g_r * c_after
        h_new = g[5] * jnp.tanh(c_new)
        h, c = h_new, c_new
        h_g = o_g * jnp.tanh(c_g_new)
        c_g = c_g_new
    return (h + jnp.broadcast_to(h_g[:, None, :], (B, L, H))) @ wc + bc


if __name__ == "__main__":
    B, L, H, NL = 2, 8, 32, 5
    VOCAB = 50
    NUM_LAYERS = 2

    key = jax.random.PRNGKey(0)
    keys = jax.random.split(key, 16)

    emb_table = jax.random.normal(keys[0], (VOCAB, H), jnp.float32) * 0.1
    sentence_ids = jax.random.randint(keys[1], (B, L), 0, VOCAB)
    lengths = jnp.array([L, 5])
    masks = (jnp.arange(L)[None, :] < lengths[:, None]).astype(jnp.float32)

    def linear(k, fin, fout):
        k1, k2 = jax.random.split(k)
        bound = 1.0 / (fin ** 0.5)
        w = jax.random.uniform(k1, (fin, fout), jnp.float32, -bound, bound)
        b = jax.random.uniform(k2, (fout,), jnp.float32, -bound, bound)
        return w, b

    # gates with 2H inputs: forget_gate_g, forget_gate_i, output_gate_g
    w2_list, b2_list = zip(*[linear(keys[2 + i], 2 * H, H) for i in range(3)])
    # gates with 4H+input=5H inputs: input,left,right,forget,sentence,output,u
    w5_list, b5_list = zip(*[linear(keys[5 + i], 5 * H, H) for i in range(7)])
    wc, bc = linear(keys[12], H, NL)
    # TODO(synk): expand_word_vector / tmp layers are unused in forward(); omitted.
    params = (jnp.stack(w2_list), jnp.stack(b2_list),
              jnp.stack(w5_list), jnp.stack(b5_list),
              wc, bc[None, :])

    word_embeddings = emb_table[sentence_ids]   # [B, L, H] embedding gather (glue)

    out = slstm_forward(word_embeddings, masks, params,
                        num_layers=NUM_LAYERS, hidden_size=H, num_labels=NL)
    out = jax.block_until_ready(out)

    ref = slstm_reference(word_embeddings, masks, params,
                          num_layers=NUM_LAYERS, hidden_size=H, num_labels=NL)
    np.testing.assert_allclose(np.asarray(out), np.asarray(ref),
                               rtol=2e-2, atol=2e-2)
    print("KERNEL_OK")
</pallas_src>

<mosaic_0001>
module attributes {stable_mosaic.version = 11 : i64} {
  func.func @_slstm_kernel(%arg0: i32, %arg1: memref<1x8x32xf32, #tpu.memory_space<vmem>>, %arg2: memref<1x8x1xf32, #tpu.memory_space<vmem>>, %arg3: memref<64x96xbf16, #tpu.memory_space<vmem>>, %arg4: memref<1x96xf32, #tpu.memory_space<vmem>>, %arg5: memref<32x32xbf16, #tpu.memory_space<vmem>>, %arg6: memref<96x256xbf16, #tpu.memory_space<vmem>>, %arg7: memref<32x256xbf16, #tpu.memory_space<vmem>>, %arg8: memref<32x256xbf16, #tpu.memory_space<vmem>>, %arg9: memref<1x256xf32, #tpu.memory_space<vmem>>, %arg10: memref<32x128xbf16, #tpu.memory_space<vmem>>, %arg11: memref<1x128xf32, #tpu.memory_space<vmem>>, %arg12: memref<1x8x128xf32, #tpu.memory_space<vmem>>) attributes {dimension_semantics = [#tpu.dimension_semantics<parallel>], iteration_bounds = array<i64: 2>, scalar_prefetch = 0 : i64, scratch_operands = 0 : i64, tpu.core_type = #tpu.core_type<tc>, window_params = [{transform_indices = @transform_0, window_bounds = array<i64: 1, 8, 32>}, {transform_indices = @transform_1, window_bounds = array<i64: 1, 8, 1>}, {pipeline_mode = #tpu.pipeline_mode<synchronous>, transform_indices = @transform_2, window_bounds = array<i64: 64, 96>}, {pipeline_mode = #tpu.pipeline_mode<synchronous>, transform_indices = @transform_3, window_bounds = array<i64: 1, 96>}, {pipeline_mode = #tpu.pipeline_mode<synchronous>, transform_indices = @transform_4, window_bounds = array<i64: 32, 32>}, {pipeline_mode = #tpu.pipeline_mode<synchronous>, transform_indices = @transform_5, window_bounds = array<i64: 96, 256>}, {pipeline_mode = #tpu.pipeline_mode<synchronous>, transform_indices = @transform_6, window_bounds = array<i64: 32, 256>}, {pipeline_mode = #tpu.pipeline_mode<synchronous>, transform_indices = @transform_7, window_bounds = array<i64: 32, 256>}, {pipeline_mode = #tpu.pipeline_mode<synchronous>, transform_indices = @transform_8, window_bounds = array<i64: 1, 256>}, {pipeline_mode = #tpu.pipeline_mode<synchronous>, transform_indices = @transform_9, window_bounds = array<i64: 32, 128>}, {pipeline_mode = #tpu.pipeline_mode<synchronous>, transform_indices = @transform_10, window_bounds = array<i64: 1, 128>}, {transform_indices = @transform_11, window_bounds = array<i64: 1, 8, 128>}]} {
    %c0 = arith.constant 0 : index
    %c0_0 = arith.constant 0 : index
    %c0_1 = arith.constant 0 : index
    %0 = vector.load %arg1[%c0, %c0_0, %c0_1] : memref<1x8x32xf32, #tpu.memory_space<vmem>>, vector<1x8x32xf32>
    %c0_2 = arith.constant 0 : index
    %c0_3 = arith.constant 0 : index
    %c0_4 = arith.constant 0 : index
    %1 = vector.load %arg2[%c0_2, %c0_3, %c0_4] : memref<1x8x1xf32, #tpu.memory_space<vmem>>, vector<1x8x1xf32>
    %cst = arith.constant 9.99999956E+24 : f32
    %2 = vector.broadcast %cst : f32 to vector<1x8x1xf32>
    %3 = arith.mulf %1, %2 : vector<1x8x1xf32>
    %cst_5 = arith.constant 9.99999956E+24 : f32
    %4 = vector.broadcast %cst_5 : f32 to vector<1x8x1xf32>
    %5 = arith.subf %3, %4 : vector<1x8x1xf32>
    %6 = vector.shape_cast %5 : vector<1x8x1xf32> to vector<1x8x1xf32>
    %7 = vector.broadcast %6 : vector<1x8x1xf32> to vector<1x8x32xf32>
    %c0_6 = arith.constant 0 : index
    %c0_7 = arith.constant 0 : index
    %8 = vector.load %arg3[%c0_6, %c0_7] : memref<64x96xbf16, #tpu.memory_space<vmem>>, vector<64x96xbf16>
    %c0_8 = arith.constant 0 : index
    %c0_9 = arith.constant 0 : index
    %9 = vector.load %arg4[%c0_8, %c0_9] : memref<1x96xf32, #tpu.memory_space<vmem>>, vector<1x96xf32>
    %c0_10 = arith.constant 0 : index
    %c0_11 = arith.constant 0 : index
    %10 = vector.load %arg5[%c0_10, %c0_11] : memref<32x32xbf16, #tpu.memory_space<vmem>>, vector<32x32xbf16>
    %c0_12 = arith.constant 0 : index
    %c0_13 = arith.constant 0 : index
    %11 = vector.load %arg6[%c0_12, %c0_13] : memref<96x256xbf16, #tpu.memory_space<vmem>>, vector<96x256xbf16>
    %c0_14 = arith.constant 0 : index
    %c0_15 = arith.constant 0 : index
    %12 = vector.load %arg8[%c0_14, %c0_15] : memref<32x256xbf16, #tpu.memory_space<vmem>>, vector<32x256xbf16>
    %c0_16 = arith.constant 0 : index
    %c0_17 = arith.constant 0 : index
    %13 = vector.load %arg9[%c0_16, %c0_17] : memref<1x256xf32, #tpu.memory_space<vmem>>, vector<1x256xf32>
    %14 = vector.shape_cast %0 : vector<1x8x32xf32> to vector<8x32xf32>
    %15 = arith.truncf %14 : vector<8x32xf32> to vector<8x32xbf16>
    %c0_18 = arith.constant 0 : index
    %c0_19 = arith.constant 0 : index
    %16 = vector.load %arg7[%c0_18, %c0_19] : memref<32x256xbf16, #tpu.memory_space<vmem>>, vector<32x256xbf16>
    %cst_20 = arith.constant dense<0.000000e+00> : vector<8x256xf32>
    %17 = tpu.matmul %15, %16, %cst_20 {dimension_numbers = #tpu.dot_dimension_numbers<[1], [0], [0], [1], [0, 0, 1, 1], [], []>} : vector<8x32xbf16>, vector<32x256xbf16>, vector<8x256xf32> -> vector<8x256xf32>
    %18 = vector.broadcast %13 : vector<1x256xf32> to vector<8x256xf32>
    %19 = arith.addf %17, %18 : vector<8x256xf32>
    %20 = tpu.iota {dimensions = array<i32: 0>} : vector<8x8xi32>
    %21 = tpu.iota {dimensions = array<i32: 1>} : vector<8x8xi32>
    %22 = arith.cmpi sle, %21, %20 : vector<8x8xi32>
    %23 = arith.extui %22 : vector<8x8xi1> to vector<8x8xi32>
    %24 = arith.sitofp %23 : vector<8x8xi32> to vector<8x8xf32>
    %25 = arith.truncf %24 : vector<8x8xf32> to vector<8x8xbf16>
    %26 = vector.shape_cast %25 : vector<8x8xbf16> to vector<1x8x8xbf16>
    %cst_21 = arith.constant dense<0.000000e+00> : vector<1x32xf32>
    %27 = vector.multi_reduction <add>, %0, %cst_21 [1] : vector<1x8x32xf32> to vector<1x32xf32>
    %cst_22 = arith.constant 1.250000e-01 : f32
    %28 = vector.broadcast %cst_22 : f32 to vector<1x32xf32>
    %29 = arith.mulf %27, %28 : vector<1x32xf32>
    %cst_23 = arith.constant dense<0.000000e+00> : vector<1x32xf32>
    %30 = vector.multi_reduction <add>, %0, %cst_23 [1] : vector<1x8x32xf32> to vector<1x32xf32>
    %cst_24 = arith.constant 1.250000e-01 : f32
    %31 = vector.broadcast %cst_24 : f32 to vector<1x32xf32>
    %32 = arith.mulf %30, %31 : vector<1x32xf32>
    %33 = tpu.concatenate %29, %32 in 1 : vector<1x32xf32>, vector<1x32xf32> -> vector<1x64xf32>
    %34 = arith.truncf %33 : vector<1x64xf32> to vector<1x64xbf16>
    %cst_25 = arith.constant dense<0.000000e+00> : vector<1x96xf32>
    %35 = tpu.matmul %34, %8, %cst_25 {dimension_numbers = #tpu.dot_dimension_numbers<[1], [0], [0], [1], [0, 0, 1, 1], [], []>} : vector<1x64xbf16>, vector<64x96xbf16>, vector<1x96xf32> -> vector<1x96xf32>
    %36 = arith.addf %35, %9 : vector<1x96xf32>
    %37 = vector.extract_strided_slice %36 {offsets = [0, 0], sizes = [1, 32], strides = [1, 1]} : vector<1x96xf32> to vector<1x32xf32>
    %38 = arith.negf %37 : vector<1x32xf32>
    %39 = math.exp %38 : vector<1x32xf32>
    %cst_26 = arith.constant 1.000000e+00 : f32
    %40 = vector.broadcast %cst_26 : f32 to vector<1x32xf32>
    %41 = arith.addf %40, %39 : vector<1x32xf32>
    %42 = arith.divf %40, %41 : vector<1x32xf32>
    %43 = vector.extract_strided_slice %36 {offsets = [0, 32], sizes = [1, 32], strides = [1, 1]} : vector<1x96xf32> to vector<1x32xf32>
    %44 = arith.negf %43 : vector<1x32xf32>
    %45 = math.exp %44 : vector<1x32xf32>
    %cst_27 = arith.constant 1.000000e+00 : f32
    %46 = vector.broadcast %cst_27 : f32 to vector<1x32xf32>
    %47 = arith.addf %46, %45 : vector<1x32xf32>
    %48 = arith.divf %46, %47 : vector<1x32xf32>
    %49 = vector.extract_strided_slice %36 {offsets = [0, 64], sizes = [1, 32], strides = [1, 1]} : vector<1x96xf32> to vector<1x32xf32>
    %50 = vector.shape_cast %0 : vector<1x8x32xf32> to vector<8x32xf32>
    %51 = arith.truncf %50 : vector<8x32xf32> to vector<8x32xbf16>
    %cst_28 = arith.constant dense<0.000000e+00> : vector<8x32xf32>
    %52 = tpu.matmul %51, %10, %cst_28 {dimension_numbers = #tpu.dot_dimension_numbers<[1], [0], [0], [1], [0, 0, 1, 1], [], []>} : vector<8x32xbf16>, vector<32x32xbf16>, vector<8x32xf32> -> vector<8x32xf32>
    %53 = vector.shape_cast %52 : vector<8x32xf32> to vector<1x8x32xf32>
    %54 = vector.shape_cast %49 : vector<1x32xf32> to vector<1x1x32xf32>
    %55 = vector.broadcast %54 : vector<1x1x32xf32> to vector<1x8x32xf32>
    %56 = arith.addf %53, %55 : vector<1x8x32xf32>
    %57 = arith.negf %56 : vector<1x8x32xf32>
    %58 = math.exp %57 : vector<1x8x32xf32>
    %cst_29 = arith.constant 1.000000e+00 : f32
    %59 = vector.broadcast %cst_29 : f32 to vector<1x8x32xf32>
    %60 = arith.addf %59, %58 : vector<1x8x32xf32>
    %61 = arith.divf %59, %60 : vector<1x8x32xf32>
    %62 = arith.addf %61, %7 : vector<1x8x32xf32>
    %63 = math.exp %62 : vector<1x8x32xf32>
    %64 = math.exp %42 : vector<1x32xf32>
    %cst_30 = arith.constant dense<0.000000e+00> : vector<1x32xf32>
    %65 = vector.multi_reduction <add>, %63, %cst_30 [1] : vector<1x8x32xf32> to vector<1x32xf32>
    %66 = arith.addf %65, %64 : vector<1x32xf32>
    %67 = arith.mulf %64, %29 : vector<1x32xf32>
    %68 = arith.mulf %63, %0 : vector<1x8x32xf32>
    %cst_31 = arith.constant dense<0.000000e+00> : vector<1x32xf32>
    %69 = vector.multi_reduction <add>, %68, %cst_31 [1] : vector<1x8x32xf32> to vector<1x32xf32>
    %70 = arith.addf %67, %69 : vector<1x32xf32>
    %71 = arith.divf %70, %66 : vector<1x32xf32>
    %72 = tpu.concatenate %0, %0 in 2 : vector<1x8x32xf32>, vector<1x8x32xf32> -> vector<1x8x64xf32>
    %73 = arith.truncf %72 : vector<1x8x64xf32> to vector<1x8x64xbf16>
    "tpu.trace_start"() <{level = 10 : i32, message = "bts,bsh->bth"}> : () -> ()
    %cst_32 = arith.constant dense<0.000000e+00> : vector<1x8x64xf32>
    %74 = tpu.matmul %26, %73, %cst_32 {dimension_numbers = #tpu.dot_dimension_numbers<[2], [1], [1], [2], [0, 0, 0, 1, 1, 2], [0], [0]>} : vector<1x8x8xbf16>, vector<1x8x64xbf16>, vector<1x8x64xf32> -> vector<1x8x64xf32>
    "tpu.trace_stop"() : () -> ()
    %75 = arith.extf %73 : vector<1x8x64xbf16> to vector<1x8x64xf32>
    %cst_33 = arith.constant dense<0.000000e+00> : vector<1x64xf32>
    %76 = vector.multi_reduction <add>, %75, %cst_33 [1] : vector<1x8x64xf32> to vector<1x64xf32>
    %77 = vector.shape_cast %76 : vector<1x64xf32> to vector<1x1x64xf32>
    %78 = arith.subf %74, %75 : vector<1x8x64xf32>
    %79 = vector.broadcast %77 : vector<1x1x64xf32> to vector<1x8x64xf32>
    %80 = arith.subf %79, %74 : vector<1x8x64xf32>
    %81 = vector.extract_strided_slice %78 {offsets = [0, 0, 0], sizes = [1, 8, 32], strides = [1, 1, 1]} : vector<1x8x64xf32> to vector<1x8x32xf32>
    %82 = vector.extract_strided_slice %78 {offsets = [0, 0, 32], sizes = [1, 8, 32], strides = [1, 1, 1]} : vector<1x8x64xf32> to vector<1x8x32xf32>
    %83 = vector.extract_strided_slice %80 {offsets = [0, 0, 0], sizes = [1, 8, 32], strides = [1, 1, 1]} : vector<1x8x64xf32> to vector<1x8x32xf32>
    %84 = vector.extract_strided_slice %80 {offsets = [0, 0, 32], sizes = [1, 8, 32], strides = [1, 1, 1]} : vector<1x8x64xf32> to vector<1x8x32xf32>
    %85 = tpu.concatenate %81, %0, %83 in 2 : vector<1x8x32xf32>, vector<1x8x32xf32>, vector<1x8x32xf32> -> vector<1x8x96xf32>
    %86 = vector.shape_cast %85 : vector<1x8x96xf32> to vector<8x96xf32>
    %87 = arith.truncf %86 : vector<8x96xf32> to vector<8x96xbf16>
    %cst_34 = arith.constant dense<0.000000e+00> : vector<8x256xf32>
    %88 = tpu.matmul %87, %11, %cst_34 {dimension_numbers = #tpu.dot_dimension_numbers<[1], [0], [0], [1], [0, 0, 1, 1], [], []>} : vector<8x96xbf16>, vector<96x256xbf16>, vector<8x256xf32> -> vector<8x256xf32>
    %89 = arith.truncf %29 : vector<1x32xf32> to vector<1x32xbf16>
    %cst_35 = arith.constant dense<0.000000e+00> : vector<1x256xf32>
    %90 = tpu.matmul %89, %12, %cst_35 {dimension_numbers = #tpu.dot_dimension_numbers<[1], [0], [0], [1], [0, 0, 1, 1], [], []>} : vector<1x32xbf16>, vector<32x256xbf16>, vector<1x256xf32> -> vector<1x256xf32>
    %91 = arith.addf %88, %19 : vector<8x256xf32>
    %92 = vector.shape_cast %91 : vector<8x256xf32> to vector<1x8x256xf32>
    %93 = vector.shape_cast %90 : vector<1x256xf32> to vector<1x1x256xf32>
    %94 = vector.broadcast %93 : vector<1x1x256xf32> to vector<1x8x256xf32>
    %95 = arith.addf %92, %94 : vector<1x8x256xf32>
    %96 = vector.extract_strided_slice %95 {offsets = [0, 0, 0], sizes = [1, 8, 32], strides = [1, 1, 1]} : vector<1x8x256xf32> to vector<1x8x32xf32>
    %97 = arith.negf %96 : vector<1x8x32xf32>
    %98 = math.exp %97 : vector<1x8x32xf32>
    %cst_36 = arith.constant 1.000000e+00 : f32
    %99 = vector.broadcast %cst_36 : f32 to vector<1x8x32xf32>
    %100 = arith.addf %99, %98 : vector<1x8x32xf32>
    %101 = arith.divf %99, %100 : vector<1x8x32xf32>
    %102 = vector.extract_strided_slice %95 {offsets = [0, 0, 32], sizes = [1, 8, 32], strides = [1, 1, 1]} : vector<1x8x256xf32> to vector<1x8x32xf32>
    %103 = arith.negf %102 : vector<1x8x32xf32>
    %104 = math.exp %103 : vector<1x8x32xf32>
    %cst_37 = arith.constant 1.000000e+00 : f32
    %105 = vector.broadcast %cst_37 : f32 to vector<1x8x32xf32>
    %106 = arith.addf %105, %104 : vector<1x8x32xf32>
    %107 = arith.divf %105, %106 : vector<1x8x32xf32>
    %108 = vector.extract_strided_slice %95 {offsets = [0, 0, 64], sizes = [1, 8, 32], strides = [1, 1, 1]} : vector<1x8x256xf32> to vector<1x8x32xf32>
    %109 = arith.negf %108 : vector<1x8x32xf32>
    %110 = math.exp %109 : vector<1x8x32xf32>
    %cst_38 = arith.constant 1.000000e+00 : f32
    %111 = vector.broadcast %cst_38 : f32 to vector<1x8x32xf32>
    %112 = arith.addf %111, %110 : vector<1x8x32xf32>
    %113 = arith.divf %111, %112 : vector<1x8x32xf32>
    %114 = vector.extract_strided_slice %95 {offsets = [0, 0, 96], sizes = [1, 8, 32], strides = [1, 1, 1]} : vector<1x8x256xf32> to vector<1x8x32xf32>
    %115 = arith.negf %114 : vector<1x8x32xf32>
    %116 = math.exp %115 : vector<1x8x32xf32>
    %cst_39 = arith.constant 1.000000e+00 : f32
    %117 = vector.broadcast %cst_39 : f32 to vector<1x8x32xf32>
    %118 = arith.addf %117, %116 : vector<1x8x32xf32>
    %119 = arith.divf %117, %118 : vector<1x8x32xf32>
    %120 = vector.extract_strided_slice %95 {offsets = [0, 0, 128], sizes = [1, 8, 32], strides = [1, 1, 1]} : vector<1x8x256xf32> to vector<1x8x32xf32>
    %121 = arith.negf %120 : vector<1x8x32xf32>
    %122 = math.exp %121 : vector<1x8x32xf32>
    %cst_40 = arith.constant 1.000000e+00 : f32
    %123 = vector.broadcast %cst_40 : f32 to vector<1x8x32xf32>
    %124 = arith.addf %123, %122 : vector<1x8x32xf32>
    %125 = arith.divf %123, %124 : vector<1x8x32xf32>
    %126 = vector.extract_strided_slice %95 {offsets = [0, 0, 160], sizes = [1, 8, 32], strides = [1, 1, 1]} : vector<1x8x256xf32> to vector<1x8x32xf32>
    %127 = arith.negf %126 : vector<1x8x32xf32>
    %128 = math.exp %127 : vector<1x8x32xf32>
    %cst_41 = arith.constant 1.000000e+00 : f32
    %129 = vector.broadcast %cst_41 : f32 to vector<1x8x32xf32>
    %130 = arith.addf %129, %128 : vector<1x8x32xf32>
    %131 = arith.divf %129, %130 : vector<1x8x32xf32>
    %132 = arith.addf %101, %7 : vector<1x8x32xf32>
    %133 = math.exp %132 : vector<1x8x32xf32>
    %134 = arith.addf %107, %7 : vector<1x8x32xf32>
    %135 = math.exp %134 : vector<1x8x32xf32>
    %136 = arith.addf %113, %7 : vector<1x8x32xf32>
    %137 = math.exp %136 : vector<1x8x32xf32>
    %138 = arith.addf %119, %7 : vector<1x8x32xf32>
    %139 = math.exp %138 : vector<1x8x32xf32>
    %140 = arith.addf %125, %7 : vector<1x8x32xf32>
    %141 = math.exp %140 : vector<1x8x32xf32>
    %142 = arith.addf %133, %135 : vector<1x8x32xf32>
    %143 = arith.addf %142, %137 : vector<1x8x32xf32>
    %144 = arith.addf %143, %139 : vector<1x8x32xf32>
    %145 = arith.addf %144, %141 : vector<1x8x32xf32>
    %cst_42 = arith.constant dense<0.000000e+00> : vector<1x32xf32>
    %146 = vector.multi_reduction <add>, %145, %cst_42 [1] : vector<1x8x32xf32> to vector<1x32xf32>
    %cst_43 = arith.constant 1.000000e-30 : f32
    %147 = vector.broadcast %cst_43 : f32 to vector<1x32xf32>
    %148 = arith.maximumf %146, %147 : vector<1x32xf32>
    %cst_44 = arith.constant 1.000000e+00 : f32
    %149 = vector.broadcast %cst_44 : f32 to vector<1x32xf32>
    %150 = arith.divf %149, %148 : vector<1x32xf32>
    %151 = vector.shape_cast %150 : vector<1x32xf32> to vector<1x1x32xf32>
    %152 = vector.broadcast %151 : vector<1x1x32xf32> to vector<1x8x32xf32>
    %153 = arith.mulf %135, %152 : vector<1x8x32xf32>
    %154 = arith.mulf %153, %82 : vector<1x8x32xf32>
    %155 = vector.broadcast %151 : vector<1x1x32xf32> to vector<1x8x32xf32>
    %156 = arith.mulf %137, %155 : vector<1x8x32xf32>
    %157 = arith.mulf %156, %84 : vector<1x8x32xf32>
    %158 = arith.addf %154, %157 : vector<1x8x32xf32>
    %159 = math.tanh %158 : vector<1x8x32xf32>
    %160 = arith.mulf %131, %159 : vector<1x8x32xf32>
    %161 = math.tanh %71 : vector<1x32xf32>
    %162 = arith.mulf %48, %161 : vector<1x32xf32>
    %cst_45 = arith.constant dense<0.000000e+00> : vector<1x32xf32>
    %163 = vector.multi_reduction <add>, %160, %cst_45 [1] : vector<1x8x32xf32> to vector<1x32xf32>
    %cst_46 = arith.constant 1.250000e-01 : f32
    %164 = vector.broadcast %cst_46 : f32 to vector<1x32xf32>
    %165 = arith.mulf %163, %164 : vector<1x32xf32>
    %166 = tpu.concatenate %162, %165 in 1 : vector<1x32xf32>, vector<1x32xf32> -> vector<1x64xf32>
    %167 = arith.truncf %166 : vector<1x64xf32> to vector<1x64xbf16>
    %cst_47 = arith.constant dense<0.000000e+00> : vector<1x96xf32>
    %168 = tpu.matmul %167, %8, %cst_47 {dimension_numbers = #tpu.dot_dimension_numbers<[1], [0], [0], [1], [0, 0, 1, 1], [], []>} : vector<1x64xbf16>, vector<64x96xbf16>, vector<1x96xf32> -> vector<1x96xf32>
    %169 = arith.addf %168, %9 : vector<1x96xf32>
    %170 = vector.extract_strided_slice %169 {offsets = [0, 0], sizes = [1, 32], strides = [1, 1]} : vector<1x96xf32> to vector<1x32xf32>
    %171 = arith.negf %170 : vector<1x32xf32>
    %172 = math.exp %171 : vector<1x32xf32>
    %cst_48 = arith.constant 1.000000e+00 : f32
    %173 = vector.broadcast %cst_48 : f32 to vector<1x32xf32>
    %174 = arith.addf %173, %172 : vector<1x32xf32>
    %175 = arith.divf %173, %174 : vector<1x32xf32>
    %176 = vector.extract_strided_slice %169 {offsets = [0, 32], sizes = [1, 32], strides = [1, 1]} : vector<1x96xf32> to vector<1x32xf32>
    %177 = arith.negf %176 : vector<1x32xf32>
    %178 = math.exp %177 : vector<1x32xf32>
    %cst_49 = arith.constant 1.000000e+00 : f32
    %179 = vector.broadcast %cst_49 : f32 to vector<1x32xf32>
    %180 = arith.addf %179, %178 : vector<1x32xf32>
    %181 = arith.divf %179, %180 : vector<1x32xf32>
    %182 = vector.extract_strided_slice %169 {offsets = [0, 64], sizes = [1, 32], strides = [1, 1]} : vector<1x96xf32> to vector<1x32xf32>
    %183 = vector.shape_cast %160 : vector<1x8x32xf32> to vector<8x32xf32>
    %184 = arith.truncf %183 : vector<8x32xf32> to vector<8x32xbf16>
    %cst_50 = arith.constant dense<0.000000e+00> : vector<8x32xf32>
    %185 = tpu.matmul %184, %10, %cst_50 {dimension_numbers = #tpu.dot_dimension_numbers<[1], [0], [0], [1], [0, 0, 1, 1], [], []>} : vector<8x32xbf16>, vector<32x32xbf16>, vector<8x32xf32> -> vector<8x32xf32>
    %186 = vector.shape_cast %185 : vector<8x32xf32> to vector<1x8x32xf32>
    %187 = vector.shape_cast %182 : vector<1x32xf32> to vector<1x1x32xf32>
    %188 = vector.broadcast %187 : vector<1x1x32xf32> to vector<1x8x32xf32>
    %189 = arith.addf %186, %188 : vector<1x8x32xf32>
    %190 = arith.negf %189 : vector<1x8x32xf32>
    %191 = math.exp %190 : vector<1x8x32xf32>
    %cst_51 = arith.constant 1.000000e+00 : f32
    %192 = vector.broadcast %cst_51 : f32 to vector<1x8x32xf32>
    %193 = arith.addf %192, %191 : vector<1x8x32xf32>
    %194 = arith.divf %192, %193 : vector<1x8x32xf32>
    %195 = arith.addf %194, %7 : vector<1x8x32xf32>
    %196 = math.exp %195 : vector<1x8x32xf32>
    %197 = math.exp %175 : vector<1x32xf32>
    %cst_52 = arith.constant dense<0.000000e+00> : vector<1x32xf32>
    %198 = vector.multi_reduction <add>, %196, %cst_52 [1] : vector<1x8x32xf32> to vector<1x32xf32>
    %199 = arith.addf %198, %197 : vector<1x32xf32>
    %200 = arith.mulf %197, %71 : vector<1x32xf32>
    %201 = arith.mulf %196, %158 : vector<1x8x32xf32>
    %cst_53 = arith.constant dense<0.000000e+00> : vector<1x32xf32>
    %202 = vector.multi_reduction <add>, %201, %cst_53 [1] : vector<1x8x32xf32> to vector<1x32xf32>
    %203 = arith.addf %200, %202 : vector<1x32xf32>
    %204 = arith.divf %203, %199 : vector<1x32xf32>
    %205 = tpu.concatenate %160, %158 in 2 : vector<1x8x32xf32>, vector<1x8x32xf32> -> vector<1x8x64xf32>
    %206 = arith.truncf %205 : vector<1x8x64xf32> to vector<1x8x64xbf16>
    "tpu.trace_start"() <{level = 10 : i32, message = "bts,bsh->bth"}> : () -> ()
    %cst_54 = arith.constant dense<0.000000e+00> : vector<1x8x64xf32>
    %207 = tpu.matmul %26, %206, %cst_54 {dimension_numbers = #tpu.dot_dimension_numbers<[2], [1], [1], [2], [0, 0, 0, 1, 1, 2], [0], [0]>} : vector<1x8x8xbf16>, vector<1x8x64xbf16>, vector<1x8x64xf32> -> vector<1x8x64xf32>
    "tpu.trace_stop"() : () -> ()
    %208 = arith.extf %206 : vector<1x8x64xbf16> to vector<1x8x64xf32>
    %cst_55 = arith.constant dense<0.000000e+00> : vector<1x64xf32>
    %209 = vector.multi_reduction <add>, %208, %cst_55 [1] : vector<1x8x64xf32> to vector<1x64xf32>
    %210 = vector.shape_cast %209 : vector<1x64xf32> to vector<1x1x64xf32>
    %211 = arith.subf %207, %208 : vector<1x8x64xf32>
    %212 = vector.broadcast %210 : vector<1x1x64xf32> to vector<1x8x64xf32>
    %213 = arith.subf %212, %207 : vector<1x8x64xf32>
    %214 = vector.extract_strided_slice %211 {offsets = [0, 0, 0], sizes = [1, 8, 32], strides = [1, 1, 1]} : vector<1x8x64xf32> to vector<1x8x32xf32>
    %215 = vector.extract_strided_slice %211 {offsets = [0, 0, 32], sizes = [1, 8, 32], strides = [1, 1, 1]} : vector<1x8x64xf32> to vector<1x8x32xf32>
    %216 = vector.extract_strided_slice %213 {offsets = [0, 0, 0], sizes = [1, 8, 32], strides = [1, 1, 1]} : vector<1x8x64xf32> to vector<1x8x32xf32>
    %217 = vector.extract_strided_slice %213 {offsets = [0, 0, 32], sizes = [1, 8, 32], strides = [1, 1, 1]} : vector<1x8x64xf32> to vector<1x8x32xf32>
    %218 = tpu.concatenate %214, %160, %216 in 2 : vector<1x8x32xf32>, vector<1x8x32xf32>, vector<1x8x32xf32> -> vector<1x8x96xf32>
    %219 = vector.shape_cast %218 : vector<1x8x96xf32> to vector<8x96xf32>
    %220 = arith.truncf %219 : vector<8x96xf32> to vector<8x96xbf16>
    %cst_56 = arith.constant dense<0.000000e+00> : vector<8x256xf32>
    %221 = tpu.matmul %220, %11, %cst_56 {dimension_numbers = #tpu.dot_dimension_numbers<[1], [0], [0], [1], [0, 0, 1, 1], [], []>} : vector<8x96xbf16>, vector<96x256xbf16>, vector<8x256xf32> -> vector<8x256xf32>
    %222 = arith.truncf %162 : vector<1x32xf32> to vector<1x32xbf16>
    %cst_57 = arith.constant dense<0.000000e+00> : vector<1x256xf32>
    %223 = tpu.matmul %222, %12, %cst_57 {dimension_numbers = #tpu.dot_dimension_numbers<[1], [0], [0], [1], [0, 0, 1, 1], [], []>} : vector<1x32xbf16>, vector<32x256xbf16>, vector<1x256xf32> -> vector<1x256xf32>
    %224 = arith.addf %221, %19 : vector<8x256xf32>
    %225 = vector.shape_cast %224 : vector<8x256xf32> to vector<1x8x256xf32>
    %226 = vector.shape_cast %223 : vector<1x256xf32> to vector<1x1x256xf32>
    %227 = vector.broadcast %226 : vector<1x1x256xf32> to vector<1x8x256xf32>
    %228 = arith.addf %225, %227 : vector<1x8x256xf32>
    %229 = vector.extract_strided_slice %228 {offsets = [0, 0, 0], sizes = [1, 8, 32], strides = [1, 1, 1]} : vector<1x8x256xf32> to vector<1x8x32xf32>
    %230 = arith.negf %229 : vector<1x8x32xf32>
    %231 = math.exp %230 : vector<1x8x32xf32>
    %cst_58 = arith.constant 1.000000e+00 : f32
    %232 = vector.broadcast %cst_58 : f32 to vector<1x8x32xf32>
    %233 = arith.addf %232, %231 : vector<1x8x32xf32>
    %234 = arith.divf %232, %233 : vector<1x8x32xf32>
    %235 = vector.extract_strided_slice %228 {offsets = [0, 0, 32], sizes = [1, 8, 32], strides = [1, 1, 1]} : vector<1x8x256xf32> to vector<1x8x32xf32>
    %236 = arith.negf %235 : vector<1x8x32xf32>
    %237 = math.exp %236 : vector<1x8x32xf32>
    %cst_59 = arith.constant 1.000000e+00 : f32
    %238 = vector.broadcast %cst_59 : f32 to vector<1x8x32xf32>
    %239 = arith.addf %238, %237 : vector<1x8x32xf32>
    %240 = arith.divf %238, %239 : vector<1x8x32xf32>
    %241 = vector.extract_strided_slice %228 {offsets = [0, 0, 64], sizes = [1, 8, 32], strides = [1, 1, 1]} : vector<1x8x256xf32> to vector<1x8x32xf32>
    %242 = arith.negf %241 : vector<1x8x32xf32>
    %243 = math.exp %242 : vector<1x8x32xf32>
    %cst_60 = arith.constant 1.000000e+00 : f32
    %244 = vector.broadcast %cst_60 : f32 to vector<1x8x32xf32>
    %245 = arith.addf %244, %243 : vector<1x8x32xf32>
    %246 = arith.divf %244, %245 : vector<1x8x32xf32>
    %247 = vector.extract_strided_slice %228 {offsets = [0, 0, 96], sizes = [1, 8, 32], strides = [1, 1, 1]} : vector<1x8x256xf32> to vector<1x8x32xf32>
    %248 = arith.negf %247 : vector<1x8x32xf32>
    %249 = math.exp %248 : vector<1x8x32xf32>
    %cst_61 = arith.constant 1.000000e+00 : f32
    %250 = vector.broadcast %cst_61 : f32 to vector<1x8x32xf32>
    %251 = arith.addf %250, %249 : vector<1x8x32xf32>
    %252 = arith.divf %250, %251 : vector<1x8x32xf32>
    %253 = vector.extract_strided_slice %228 {offsets = [0, 0, 128], sizes = [1, 8, 32], strides = [1, 1, 1]} : vector<1x8x256xf32> to vector<1x8x32xf32>
    %254 = arith.negf %253 : vector<1x8x32xf32>
    %255 = math.exp %254 : vector<1x8x32xf32>
    %cst_62 = arith.constant 1.000000e+00 : f32
    %256 = vector.broadcast %cst_62 : f32 to vector<1x8x32xf32>
    %257 = arith.addf %256, %255 : vector<1x8x32xf32>
    %258 = arith.divf %256, %257 : vector<1x8x32xf32>
    %259 = vector.extract_strided_slice %228 {offsets = [0, 0, 160], sizes = [1, 8, 32], strides = [1, 1, 1]} : vector<1x8x256xf32> to vector<1x8x32xf32>
    %260 = arith.negf %259 : vector<1x8x32xf32>
    %261 = math.exp %260 : vector<1x8x32xf32>
    %cst_63 = arith.constant 1.000000e+00 : f32
    %262 = vector.broadcast %cst_63 : f32 to vector<1x8x32xf32>
    %263 = arith.addf %262, %261 : vector<1x8x32xf32>
    %264 = arith.divf %262, %263 : vector<1x8x32xf32>
    %265 = arith.addf %234, %7 : vector<1x8x32xf32>
    %266 = math.exp %265 : vector<1x8x32xf32>
    %267 = arith.addf %240, %7 : vector<1x8x32xf32>
    %268 = math.exp %267 : vector<1x8x32xf32>
    %269 = arith.addf %246, %7 : vector<1x8x32xf32>
    %270 = math.exp %269 : vector<1x8x32xf32>
    %271 = arith.addf %252, %7 : vector<1x8x32xf32>
    %272 = math.exp %271 : vector<1x8x32xf32>
    %273 = arith.addf %258, %7 : vector<1x8x32xf32>
    %274 = math.exp %273 : vector<1x8x32xf32>
    %275 = arith.addf %266, %268 : vector<1x8x32xf32>
    %276 = arith.addf %275, %270 : vector<1x8x32xf32>
    %277 = arith.addf %276, %272 : vector<1x8x32xf32>
    %278 = arith.addf %277, %274 : vector<1x8x32xf32>
    %cst_64 = arith.constant dense<0.000000e+00> : vector<1x32xf32>
    %279 = vector.multi_reduction <add>, %278, %cst_64 [1] : vector<1x8x32xf32> to vector<1x32xf32>
    %cst_65 = arith.constant 1.000000e-30 : f32
    %280 = vector.broadcast %cst_65 : f32 to vector<1x32xf32>
    %281 = arith.maximumf %279, %280 : vector<1x32xf32>
    %cst_66 = arith.constant 1.000000e+00 : f32
    %282 = vector.broadcast %cst_66 : f32 to vector<1x32xf32>
    %283 = arith.divf %282, %281 : vector<1x32xf32>
    %284 = vector.shape_cast %283 : vector<1x32xf32> to vector<1x1x32xf32>
    %285 = vector.broadcast %284 : vector<1x1x32xf32> to vector<1x8x32xf32>
    %286 = arith.mulf %268, %285 : vector<1x8x32xf32>
    %287 = arith.mulf %286, %215 : vector<1x8x32xf32>
    %288 = vector.broadcast %284 : vector<1x1x32xf32> to vector<1x8x32xf32>
    %289 = arith.mulf %270, %288 : vector<1x8x32xf32>
    %290 = arith.mulf %289, %217 : vector<1x8x32xf32>
    %291 = arith.addf %287, %290 : vector<1x8x32xf32>
    %292 = math.tanh %291 : vector<1x8x32xf32>
    %293 = arith.mulf %264, %292 : vector<1x8x32xf32>
    %294 = math.tanh %204 : vector<1x32xf32>
    %295 = arith.mulf %181, %294 : vector<1x32xf32>
    %296 = vector.shape_cast %295 : vector<1x32xf32> to vector<1x1x32xf32>
    %297 = vector.broadcast %296 : vector<1x1x32xf32> to vector<1x8x32xf32>
    %298 = arith.addf %293, %297 : vector<1x8x32xf32>
    %299 = vector.shape_cast %298 : vector<1x8x32xf32> to vector<8x32xf32>
    %300 = arith.truncf %299 : vector<8x32xf32> to vector<8x32xbf16>
    %c0_67 = arith.constant 0 : index
    %c0_68 = arith.constant 0 : index
    %301 = vector.load %arg10[%c0_67, %c0_68] : memref<32x128xbf16, #tpu.memory_space<vmem>>, vector<32x128xbf16>
    %cst_69 = arith.constant dense<0.000000e+00> : vector<8x128xf32>
    %302 = tpu.matmul %300, %301, %cst_69 {dimension_numbers = #tpu.dot_dimension_numbers<[1], [0], [0], [1], [0, 0, 1, 1], [], []>} : vector<8x32xbf16>, vector<32x128xbf16>, vector<8x128xf32> -> vector<8x128xf32>
    %c0_70 = arith.constant 0 : index
    %c0_71 = arith.constant 0 : index
    %303 = vector.load %arg11[%c0_70, %c0_71] : memref<1x128xf32, #tpu.memory_space<vmem>>, vector<1x128xf32>
    %304 = vector.broadcast %303 : vector<1x128xf32> to vector<8x128xf32>
    %305 = arith.addf %302, %304 : vector<8x128xf32>
    %306 = vector.shape_cast %305 : vector<8x128xf32> to vector<1x8x128xf32>
    %c0_72 = arith.constant 0 : index
    %c0_73 = arith.constant 0 : index
    %c0_74 = arith.constant 0 : index
    %307 = vector.load %arg12[%c0_72, %c0_73, %c0_74] : memref<1x8x128xf32, #tpu.memory_space<vmem>>, vector<1x8x128xf32>
    tpu.vector_store %arg12[%c0_72, %c0_73, %c0_74], %306 {strides = array<i32>} : memref<1x8x128xf32, #tpu.memory_space<vmem>>, vector<1x8x128xf32>,
    return
  }
  func.func @transform_0(%arg0: i32) -> (i32, i32, i32) {
    %c0_i32 = arith.constant 0 : i32
    %c0_i32_0 = arith.constant 0 : i32
    %c0_i32_1 = arith.constant 0 : i32
    return %arg0, %c0_i32, %c0_i32_0 : i32, i32, i32
  }
  func.func @transform_1(%arg0: i32) -> (i32, i32, i32) {
    %c0_i32 = arith.constant 0 : i32
    %c0_i32_0 = arith.constant 0 : i32
    %c0_i32_1 = arith.constant 0 : i32
    return %arg0, %c0_i32, %c0_i32_0 : i32, i32, i32
  }
  func.func @transform_2(%arg0: i32) -> (i32, i32) {
    %c0_i32 = arith.constant 0 : i32
    %c0_i32_0 = arith.constant 0 : i32
    %c0_i32_1 = arith.constant 0 : i32
    return %c0_i32, %c0_i32_0 : i32, i32
  }
  func.func @transform_3(%arg0: i32) -> (i32, i32) {
    %c0_i32 = arith.constant 0 : i32
    %c0_i32_0 = arith.constant 0 : i32
    %c0_i32_1 = arith.constant 0 : i32
    return %c0_i32, %c0_i32_0 : i32, i32
  }
  func.func @transform_4(%arg0: i32) -> (i32, i32) {
    %c0_i32 = arith.constant 0 : i32
    %c0_i32_0 = arith.constant 0 : i32
    %c0_i32_1 = arith.constant 0 : i32
    return %c0_i32, %c0_i32_0 : i32, i32
  }
  func.func @transform_5(%arg0: i32) -> (i32, i32) {
    %c0_i32 = arith.constant 0 : i32
    %c0_i32_0 = arith.constant 0 : i32
    %c0_i32_1 = arith.constant 0 : i32
    return %c0_i32, %c0_i32_0 : i32, i32
  }
  func.func @transform_6(%arg0: i32) -> (i32, i32) {
    %c0_i32 = arith.constant 0 : i32
    %c0_i32_0 = arith.constant 0 : i32
    %c0_i32_1 = arith.constant 0 : i32
    return %c0_i32, %c0_i32_0 : i32, i32
  }
  func.func @transform_7(%arg0: i32) -> (i32, i32) {
    %c0_i32 = arith.constant 0 : i32
    %c0_i32_0 = arith.constant 0 : i32
    %c0_i32_1 = arith.constant 0 : i32
    return %c0_i32, %c0_i32_0 : i32, i32
  }
  func.func @transform_8(%arg0: i32) -> (i32, i32) {
    %c0_i32 = arith.constant 0 : i32
    %c0_i32_0 = arith.constant 0 : i32
    %c0_i32_1 = arith.constant 0 : i32
    return %c0_i32, %c0_i32_0 : i32, i32
  }
  func.func @transform_9(%arg0: i32) -> (i32, i32) {
    %c0_i32 = arith.constant 0 : i32
    %c0_i32_0 = arith.constant 0 : i32
    %c0_i32_1 = arith.constant 0 : i32
    return %c0_i32, %c0_i32_0 : i32, i32
  }
  func.func @transform_10(%arg0: i32) -> (i32, i32) {
    %c0_i32 = arith.constant 0 : i32
    %c0_i32_0 = arith.constant 0 : i32
    %c0_i32_1 = arith.constant 0 : i32
    return %c0_i32, %c0_i32_0 : i32, i32
  }
  func.func @transform_11(%arg0: i32) -> (i32, i32, i32) {
    %c0_i32 = arith.constant 0 : i32
    %c0_i32_0 = arith.constant 0 : i32
    %c0_i32_1 = arith.constant 0 : i32
    return %arg0, %c0_i32, %c0_i32_0 : i32, i32, i32
  }
}

module attributes {stable_mosaic.version = 11 : i64} {
  func.func @_slstm_kernel(%arg0: i32, %arg1: memref<1x8x32xf32, #tpu.memory_space<vmem>>, %arg2: memref<1x8x1xf32, #tpu.memory_space<vmem>>, %arg3: memref<64x96xbf16, #tpu.memory_space<vmem>>, %arg4: memref<1x96xf32, #tpu.memory_space<vmem>>, %arg5: memref<32x32xbf16, #tpu.memory_space<vmem>>, %arg6: memref<96x256xbf16, #tpu.memory_space<vmem>>, %arg7: memref<32x256xbf16, #tpu.memory_space<vmem>>, %arg8: memref<32x256xbf16, #tpu.memory_space<vmem>>, %arg9: memref<1x256xf32, #tpu.memory_space<vmem>>, %arg10: memref<32x128xbf16, #tpu.memory_space<vmem>>, %arg11: memref<1x128xf32, #tpu.memory_space<vmem>>, %arg12: memref<1x8x128xf32, #tpu.memory_space<vmem>>) attributes {dimension_semantics = [#tpu.dimension_semantics<parallel>], iteration_bounds = array<i64: 2>, scalar_prefetch = 0 : i64, scratch_operands = 0 : i64, tpu.core_type = #tpu.core_type<tc>, window_params = [{transform_indices = @transform_0, window_bounds = array<i64: 1, 8, 32>}, {transform_indices = @transform_1, window_bounds = array<i64: 1, 8, 1>}, {pipeline_mode = #tpu.pipeline_mode<synchronous>, transform_indices = @transform_2, window_bounds = array<i64: 64, 96>}, {pipeline_mode = #tpu.pipeline_mode<synchronous>, transform_indices = @transform_3, window_bounds = array<i64: 1, 96>}, {pipeline_mode = #tpu.pipeline_mode<synchronous>, transform_indices = @transform_4, window_bounds = array<i64: 32, 32>}, {pipeline_mode = #tpu.pipeline_mode<synchronous>, transform_indices = @transform_5, window_bounds = array<i64: 96, 256>}, {pipeline_mode = #tpu.pipeline_mode<synchronous>, transform_indices = @transform_6, window_bounds = array<i64: 32, 256>}, {pipeline_mode = #tpu.pipeline_mode<synchronous>, transform_indices = @transform_7, window_bounds = array<i64: 32, 256>}, {pipeline_mode = #tpu.pipeline_mode<synchronous>, transform_indices = @transform_8, window_bounds = array<i64: 1, 256>}, {pipeline_mode = #tpu.pipeline_mode<synchronous>, transform_indices = @transform_9, window_bounds = array<i64: 32, 128>}, {pipeline_mode = #tpu.pipeline_mode<synchronous>, transform_indices = @transform_10, window_bounds = array<i64: 1, 128>}, {transform_indices = @transform_11, window_bounds = array<i64: 1, 8, 128>}]} {
    %c0 = arith.constant 0 : index
    %c0_0 = arith.constant 0 : index
    %c0_1 = arith.constant 0 : index
    %0 = vector.load %arg1[%c0, %c0_0, %c0_1] : memref<1x8x32xf32, #tpu.memory_space<vmem>>, vector<1x8x32xf32>
    %c0_2 = arith.constant 0 : index
    %c0_3 = arith.constant 0 : index
    %c0_4 = arith.constant 0 : index
    %1 = vector.load %arg2[%c0_2, %c0_3, %c0_4] : memref<1x8x1xf32, #tpu.memory_space<vmem>>, vector<1x8x1xf32>
    %cst = arith.constant 9.99999956E+24 : f32
    %2 = vector.broadcast %cst : f32 to vector<1x8x1xf32>
    %3 = arith.mulf %1, %2 : vector<1x8x1xf32>
    %cst_5 = arith.constant 9.99999956E+24 : f32
    %4 = vector.broadcast %cst_5 : f32 to vector<1x8x1xf32>
    %5 = arith.subf %3, %4 : vector<1x8x1xf32>
    %6 = vector.shape_cast %5 : vector<1x8x1xf32> to vector<1x8x1xf32>
    %7 = vector.broadcast %6 : vector<1x8x1xf32> to vector<1x8x32xf32>
    %c0_6 = arith.constant 0 : index
    %c0_7 = arith.constant 0 : index
    %8 = vector.load %arg3[%c0_6, %c0_7] : memref<64x96xbf16, #tpu.memory_space<vmem>>, vector<64x96xbf16>
    %c0_8 = arith.constant 0 : index
    %c0_9 = arith.constant 0 : index
    %9 = vector.load %arg4[%c0_8, %c0_9] : memref<1x96xf32, #tpu.memory_space<vmem>>, vector<1x96xf32>
    %c0_10 = arith.constant 0 : index
    %c0_11 = arith.constant 0 : index
    %10 = vector.load %arg5[%c0_10, %c0_11] : memref<32x32xbf16, #tpu.memory_space<vmem>>, vector<32x32xbf16>
    %c0_12 = arith.constant 0 : index
    %c0_13 = arith.constant 0 : index
    %11 = vector.load %arg6[%c0_12, %c0_13] : memref<96x256xbf16, #tpu.memory_space<vmem>>, vector<96x256xbf16>
    %c0_14 = arith.constant 0 : index
    %c0_15 = arith.constant 0 : index
    %12 = vector.load %arg8[%c0_14, %c0_15] : memref<32x256xbf16, #tpu.memory_space<vmem>>, vector<32x256xbf16>
    %c0_16 = arith.constant 0 : index
    %c0_17 = arith.constant 0 : index
    %13 = vector.load %arg9[%c0_16, %c0_17] : memref<1x256xf32, #tpu.memory_space<vmem>>, vector<1x256xf32>
    %14 = vector.shape_cast %0 : vector<1x8x32xf32> to vector<8x32xf32>
    %15 = arith.truncf %14 : vector<8x32xf32> to vector<8x32xbf16>
    %c0_18 = arith.constant 0 : index
    %c0_19 = arith.constant 0 : index
    %16 = vector.load %arg7[%c0_18, %c0_19] : memref<32x256xbf16, #tpu.memory_space<vmem>>, vector<32x256xbf16>
    %cst_20 = arith.constant dense<0.000000e+00> : vector<8x256xf32>
    %17 = tpu.matmul %15, %16, %cst_20 {dimension_numbers = #tpu.dot_dimension_numbers<[1], [0], [0], [1], [0, 0, 1, 1], [], []>} : vector<8x32xbf16>, vector<32x256xbf16>, vector<8x256xf32> -> vector<8x256xf32>
    %18 = vector.broadcast %13 : vector<1x256xf32> to vector<8x256xf32>
    %19 = arith.addf %17, %18 : vector<8x256xf32>
    %20 = tpu.iota {dimensions = array<i32: 0>} : vector<8x8xi32>
    %21 = tpu.iota {dimensions = array<i32: 1>} : vector<8x8xi32>
    %22 = arith.cmpi sle, %21, %20 : vector<8x8xi32>
    %23 = arith.extui %22 : vector<8x8xi1> to vector<8x8xi32>
    %24 = arith.sitofp %23 : vector<8x8xi32> to vector<8x8xf32>
    %25 = arith.truncf %24 : vector<8x8xf32> to vector<8x8xbf16>
    %26 = vector.shape_cast %25 : vector<8x8xbf16> to vector<1x8x8xbf16>
    %cst_21 = arith.constant dense<0.000000e+00> : vector<1x32xf32>
    %27 = vector.multi_reduction <add>, %0, %cst_21 [1] : vector<1x8x32xf32> to vector<1x32xf32>
    %cst_22 = arith.constant 1.250000e-01 : f32
    %28 = vector.broadcast %cst_22 : f32 to vector<1x32xf32>
    %29 = arith.mulf %27, %28 : vector<1x32xf32>
    %cst_23 = arith.constant dense<0.000000e+00> : vector<1x32xf32>
    %30 = vector.multi_reduction <add>, %0, %cst_23 [1] : vector<1x8x32xf32> to vector<1x32xf32>
    %cst_24 = arith.constant 1.250000e-01 : f32
    %31 = vector.broadcast %cst_24 : f32 to vector<1x32xf32>
    %32 = arith.mulf %30, %31 : vector<1x32xf32>
    %33 = tpu.concatenate %29, %32 in 1 : vector<1x32xf32>, vector<1x32xf32> -> vector<1x64xf32>
    %34 = arith.truncf %33 : vector<1x64xf32> to vector<1x64xbf16>
    %cst_25 = arith.constant dense<0.000000e+00> : vector<1x96xf32>
    %35 = tpu.matmul %34, %8, %cst_25 {dimension_numbers = #tpu.dot_dimension_numbers<[1], [0], [0], [1], [0, 0, 1, 1], [], []>} : vector<1x64xbf16>, vector<64x96xbf16>, vector<1x96xf32> -> vector<1x96xf32>
    %36 = arith.addf %35, %9 : vector<1x96xf32>
    %37 = vector.extract_strided_slice %36 {offsets = [0, 0], sizes = [1, 32], strides = [1, 1]} : vector<1x96xf32> to vector<1x32xf32>
    %38 = arith.negf %37 : vector<1x32xf32>
    %39 = math.exp %38 : vector<1x32xf32>
    %cst_26 = arith.constant 1.000000e+00 : f32
    %40 = vector.broadcast %cst_26 : f32 to vector<1x32xf32>
    %41 = arith.addf %40, %39 : vector<1x32xf32>
    %42 = arith.divf %40, %41 : vector<1x32xf32>
    %43 = vector.extract_strided_slice %36 {offsets = [0, 32], sizes = [1, 32], strides = [1, 1]} : vector<1x96xf32> to vector<1x32xf32>
    %44 = arith.negf %43 : vector<1x32xf32>
    %45 = math.exp %44 : vector<1x32xf32>
    %cst_27 = arith.constant 1.000000e+00 : f32
    %46 = vector.broadcast %cst_27 : f32 to vector<1x32xf32>
    %47 = arith.addf %46, %45 : vector<1x32xf32>
    %48 = arith.divf %46, %47 : vector<1x32xf32>
    %49 = vector.extract_strided_slice %36 {offsets = [0, 64], sizes = [1, 32], strides = [1, 1]} : vector<1x96xf32> to vector<1x32xf32>
    %50 = vector.shape_cast %0 : vector<1x8x32xf32> to vector<8x32xf32>
    %51 = arith.truncf %50 : vector<8x32xf32> to vector<8x32xbf16>
    %cst_28 = arith.constant dense<0.000000e+00> : vector<8x32xf32>
    %52 = tpu.matmul %51, %10, %cst_28 {dimension_numbers = #tpu.dot_dimension_numbers<[1], [0], [0], [1], [0, 0, 1, 1], [], []>} : vector<8x32xbf16>, vector<32x32xbf16>, vector<8x32xf32> -> vector<8x32xf32>
    %53 = vector.shape_cast %52 : vector<8x32xf32> to vector<1x8x32xf32>
    %54 = vector.shape_cast %49 : vector<1x32xf32> to vector<1x1x32xf32>
    %55 = vector.broadcast %54 : vector<1x1x32xf32> to vector<1x8x32xf32>
    %56 = arith.addf %53, %55 : vector<1x8x32xf32>
    %57 = arith.negf %56 : vector<1x8x32xf32>
    %58 = math.exp %57 : vector<1x8x32xf32>
    %cst_29 = arith.constant 1.000000e+00 : f32
    %59 = vector.broadcast %cst_29 : f32 to vector<1x8x32xf32>
    %60 = arith.addf %59, %58 : vector<1x8x32xf32>
    %61 = arith.divf %59, %60 : vector<1x8x32xf32>
    %62 = arith.addf %61, %7 : vector<1x8x32xf32>
    %63 = math.exp %62 : vector<1x8x32xf32>
    %64 = math.exp %42 : vector<1x32xf32>
    %cst_30 = arith.constant dense<0.000000e+00> : vector<1x32xf32>
    %65 = vector.multi_reduction <add>, %63, %cst_30 [1] : vector<1x8x32xf32> to vector<1x32xf32>
    %66 = arith.addf %65, %64 : vector<1x32xf32>
    %67 = arith.mulf %64, %29 : vector<1x32xf32>
    %68 = arith.mulf %63, %0 : vector<1x8x32xf32>
    %cst_31 = arith.constant dense<0.000000e+00> : vector<1x32xf32>
    %69 = vector.multi_reduction <add>, %68, %cst_31 [1] : vector<1x8x32xf32> to vector<1x32xf32>
    %70 = arith.addf %67, %69 : vector<1x32xf32>
    %71 = arith.divf %70, %66 : vector<1x32xf32>
    %72 = tpu.concatenate %0, %0 in 2 : vector<1x8x32xf32>, vector<1x8x32xf32> -> vector<1x8x64xf32>
    %73 = arith.truncf %72 : vector<1x8x64xf32> to vector<1x8x64xbf16>
    "tpu.trace_start"() <{level = 10 : i32, message = "bts,bsh->bth"}> : () -> ()
    %cst_32 = arith.constant dense<0.000000e+00> : vector<1x8x64xf32>
    %74 = tpu.matmul %26, %73, %cst_32 {dimension_numbers = #tpu.dot_dimension_numbers<[2], [1], [1], [2], [0, 0, 0, 1, 1, 2], [0], [0]>} : vector<1x8x8xbf16>, vector<1x8x64xbf16>, vector<1x8x64xf32> -> vector<1x8x64xf32>
    "tpu.trace_stop"() : () -> ()
    %75 = arith.extf %73 : vector<1x8x64xbf16> to vector<1x8x64xf32>
    %cst_33 = arith.constant dense<0.000000e+00> : vector<1x64xf32>
    %76 = vector.multi_reduction <add>, %75, %cst_33 [1] : vector<1x8x64xf32> to vector<1x64xf32>
    %77 = vector.shape_cast %76 : vector<1x64xf32> to vector<1x1x64xf32>
    %78 = arith.subf %74, %75 : vector<1x8x64xf32>
    %79 = vector.broadcast %77 : vector<1x1x64xf32> to vector<1x8x64xf32>
    %80 = arith.subf %79, %74 : vector<1x8x64xf32>
    %81 = vector.extract_strided_slice %78 {offsets = [0, 0, 0], sizes = [1, 8, 32], strides = [1, 1, 1]} : vector<1x8x64xf32> to vector<1x8x32xf32>
    %82 = vector.extract_strided_slice %78 {offsets = [0, 0, 32], sizes = [1, 8, 32], strides = [1, 1, 1]} : vector<1x8x64xf32> to vector<1x8x32xf32>
    %83 = vector.extract_strided_slice %80 {offsets = [0, 0, 0], sizes = [1, 8, 32], strides = [1, 1, 1]} : vector<1x8x64xf32> to vector<1x8x32xf32>
    %84 = vector.extract_strided_slice %80 {offsets = [0, 0, 32], sizes = [1, 8, 32], strides = [1, 1, 1]} : vector<1x8x64xf32> to vector<1x8x32xf32>
    %85 = tpu.concatenate %81, %0, %83 in 2 : vector<1x8x32xf32>, vector<1x8x32xf32>, vector<1x8x32xf32> -> vector<1x8x96xf32>
    %86 = vector.shape_cast %85 : vector<1x8x96xf32> to vector<8x96xf32>
    %87 = arith.truncf %86 : vector<8x96xf32> to vector<8x96xbf16>
    %cst_34 = arith.constant dense<0.000000e+00> : vector<8x256xf32>
    %88 = tpu.matmul %87, %11, %cst_34 {dimension_numbers = #tpu.dot_dimension_numbers<[1], [0], [0], [1], [0, 0, 1, 1], [], []>} : vector<8x96xbf16>, vector<96x256xbf16>, vector<8x256xf32> -> vector<8x256xf32>
    %89 = arith.truncf %29 : vector<1x32xf32> to vector<1x32xbf16>
    %cst_35 = arith.constant dense<0.000000e+00> : vector<1x256xf32>
    %90 = tpu.matmul %89, %12, %cst_35 {dimension_numbers = #tpu.dot_dimension_numbers<[1], [0], [0], [1], [0, 0, 1, 1], [], []>} : vector<1x32xbf16>, vector<32x256xbf16>, vector<1x256xf32> -> vector<1x256xf32>
    %91 = arith.addf %88, %19 : vector<8x256xf32>
    %92 = vector.shape_cast %91 : vector<8x256xf32> to vector<1x8x256xf32>
    %93 = vector.shape_cast %90 : vector<1x256xf32> to vector<1x1x256xf32>
    %94 = vector.broadcast %93 : vector<1x1x256xf32> to vector<1x8x256xf32>
    %95 = arith.addf %92, %94 : vector<1x8x256xf32>
    %96 = vector.extract_strided_slice %95 {offsets = [0, 0, 0], sizes = [1, 8, 32], strides = [1, 1, 1]} : vector<1x8x256xf32> to vector<1x8x32xf32>
    %97 = arith.negf %96 : vector<1x8x32xf32>
    %98 = math.exp %97 : vector<1x8x32xf32>
    %cst_36 = arith.constant 1.000000e+00 : f32
    %99 = vector.broadcast %cst_36 : f32 to vector<1x8x32xf32>
    %100 = arith.addf %99, %98 : vector<1x8x32xf32>
    %101 = arith.divf %99, %100 : vector<1x8x32xf32>
    %102 = vector.extract_strided_slice %95 {offsets = [0, 0, 32], sizes = [1, 8, 32], strides = [1, 1, 1]} : vector<1x8x256xf32> to vector<1x8x32xf32>
    %103 = arith.negf %102 : vector<1x8x32xf32>
    %104 = math.exp %103 : vector<1x8x32xf32>
    %cst_37 = arith.constant 1.000000e+00 : f32
    %105 = vector.broadcast %cst_37 : f32 to vector<1x8x32xf32>
    %106 = arith.addf %105, %104 : vector<1x8x32xf32>
    %107 = arith.divf %105, %106 : vector<1x8x32xf32>
    %108 = vector.extract_strided_slice %95 {offsets = [0, 0, 64], sizes = [1, 8, 32], strides = [1, 1, 1]} : vector<1x8x256xf32> to vector<1x8x32xf32>
    %109 = arith.negf %108 : vector<1x8x32xf32>
    %110 = math.exp %109 : vector<1x8x32xf32>
    %cst_38 = arith.constant 1.000000e+00 : f32
    %111 = vector.broadcast %cst_38 : f32 to vector<1x8x32xf32>
    %112 = arith.addf %111, %110 : vector<1x8x32xf32>
    %113 = arith.divf %111, %112 : vector<1x8x32xf32>
    %114 = vector.extract_strided_slice %95 {offsets = [0, 0, 96], sizes = [1, 8, 32], strides = [1, 1, 1]} : vector<1x8x256xf32> to vector<1x8x32xf32>
    %115 = arith.negf %114 : vector<1x8x32xf32>
    %116 = math.exp %115 : vector<1x8x32xf32>
    %cst_39 = arith.constant 1.000000e+00 : f32
    %117 = vector.broadcast %cst_39 : f32 to vector<1x8x32xf32>
    %118 = arith.addf %117, %116 : vector<1x8x32xf32>
    %119 = arith.divf %117, %118 : vector<1x8x32xf32>
    %120 = vector.extract_strided_slice %95 {offsets = [0, 0, 128], sizes = [1, 8, 32], strides = [1, 1, 1]} : vector<1x8x256xf32> to vector<1x8x32xf32>
    %121 = arith.negf %120 : vector<1x8x32xf32>
    %122 = math.exp %121 : vector<1x8x32xf32>
    %cst_40 = arith.constant 1.000000e+00 : f32
    %123 = vector.broadcast %cst_40 : f32 to vector<1x8x32xf32>
    %124 = arith.addf %123, %122 : vector<1x8x32xf32>
    %125 = arith.divf %123, %124 : vector<1x8x32xf32>
    %126 = vector.extract_strided_slice %95 {offsets = [0, 0, 160], sizes = [1, 8, 32], strides = [1, 1, 1]} : vector<1x8x256xf32> to vector<1x8x32xf32>
    %127 = arith.negf %126 : vector<1x8x32xf32>
    %128 = math.exp %127 : vector<1x8x32xf32>
    %cst_41 = arith.constant 1.000000e+00 : f32
    %129 = vector.broadcast %cst_41 : f32 to vector<1x8x32xf32>
    %130 = arith.addf %129, %128 : vector<1x8x32xf32>
    %131 = arith.divf %129, %130 : vector<1x8x32xf32>
    %132 = arith.addf %101, %7 : vector<1x8x32xf32>
    %133 = math.exp %132 : vector<1x8x32xf32>
    %134 = arith.addf %107, %7 : vector<1x8x32xf32>
    %135 = math.exp %134 : vector<1x8x32xf32>
    %136 = arith.addf %113, %7 : vector<1x8x32xf32>
    %137 = math.exp %136 : vector<1x8x32xf32>
    %138 = arith.addf %119, %7 : vector<1x8x32xf32>
    %139 = math.exp %138 : vector<1x8x32xf32>
    %140 = arith.addf %125, %7 : vector<1x8x32xf32>
    %141 = math.exp %140 : vector<1x8x32xf32>
    %142 = arith.addf %133, %135 : vector<1x8x32xf32>
    %143 = arith.addf %142, %137 : vector<1x8x32xf32>
    %144 = arith.addf %143, %139 : vector<1x8x32xf32>
    %145 = arith.addf %144, %141 : vector<1x8x32xf32>
    %cst_42 = arith.constant dense<0.000000e+00> : vector<1x32xf32>
    %146 = vector.multi_reduction <add>, %145, %cst_42 [1] : vector<1x8x32xf32> to vector<1x32xf32>
    %cst_43 = arith.constant 1.000000e-30 : f32
    %147 = vector.broadcast %cst_43 : f32 to vector<1x32xf32>
    %148 = arith.maximumf %146, %147 : vector<1x32xf32>
    %cst_44 = arith.constant 1.000000e+00 : f32
    %149 = vector.broadcast %cst_44 : f32 to vector<1x32xf32>
    %150 = arith.divf %149, %148 : vector<1x32xf32>
    %151 = vector.shape_cast %150 : vector<1x32xf32> to vector<1x1x32xf32>
    %152 = vector.broadcast %151 : vector<1x1x32xf32> to vector<1x8x32xf32>
    %153 = arith.mulf %135, %152 : vector<1x8x32xf32>
    %154 = arith.mulf %153, %82 : vector<1x8x32xf32>
    %155 = vector.broadcast %151 : vector<1x1x32xf32> to vector<1x8x32xf32>
    %156 = arith.mulf %137, %155 : vector<1x8x32xf32>
    %157 = arith.mulf %156, %84 : vector<1x8x32xf32>
    %158 = arith.addf %154, %157 : vector<1x8x32xf32>
    %159 = math.tanh %158 : vector<1x8x32xf32>
    %160 = arith.mulf %131, %159 : vector<1x8x32xf32>
    %161 = math.tanh %71 : vector<1x32xf32>
    %162 = arith.mulf %48, %161 : vector<1x32xf32>
    %cst_45 = arith.constant dense<0.000000e+00> : vector<1x32xf32>
    %163 = vector.multi_reduction <add>, %160, %cst_45 [1] : vector<1x8x32xf32> to vector<1x32xf32>
    %cst_46 = arith.constant 1.250000e-01 : f32
    %164 = vector.broadcast %cst_46 : f32 to vector<1x32xf32>
    %165 = arith.mulf %163, %164 : vector<1x32xf32>
    %166 = tpu.concatenate %162, %165 in 1 : vector<1x32xf32>, vector<1x32xf32> -> vector<1x64xf32>
    %167 = arith.truncf %166 : vector<1x64xf32> to vector<1x64xbf16>
    %cst_47 = arith.constant dense<0.000000e+00> : vector<1x96xf32>
    %168 = tpu.matmul %167, %8, %cst_47 {dimension_numbers = #tpu.dot_dimension_numbers<[1], [0], [0], [1], [0, 0, 1, 1], [], []>} : vector<1x64xbf16>, vector<64x96xbf16>, vector<1x96xf32> -> vector<1x96xf32>
    %169 = arith.addf %168, %9 : vector<1x96xf32>
    %170 = vector.extract_strided_slice %169 {offsets = [0, 0], sizes = [1, 32], strides = [1, 1]} : vector<1x96xf32> to vector<1x32xf32>
    %171 = arith.negf %170 : vector<1x32xf32>
    %172 = math.exp %171 : vector<1x32xf32>
    %cst_48 = arith.constant 1.000000e+00 : f32
    %173 = vector.broadcast %cst_48 : f32 to vector<1x32xf32>
    %174 = arith.addf %173, %172 : vector<1x32xf32>
    %175 = arith.divf %173, %174 : vector<1x32xf32>
    %176 = vector.extract_strided_slice %169 {offsets = [0, 32], sizes = [1, 32], strides = [1, 1]} : vector<1x96xf32> to vector<1x32xf32>
    %177 = arith.negf %176 : vector<1x32xf32>
    %178 = math.exp %177 : vector<1x32xf32>
    %cst_49 = arith.constant 1.000000e+00 : f32
    %179 = vector.broadcast %cst_49 : f32 to vector<1x32xf32>
    %180 = arith.addf %179, %178 : vector<1x32xf32>
    %181 = arith.divf %179, %180 : vector<1x32xf32>
    %182 = vector.extract_strided_slice %169 {offsets = [0, 64], sizes = [1, 32], strides = [1, 1]} : vector<1x96xf32> to vector<1x32xf32>
    %183 = vector.shape_cast %160 : vector<1x8x32xf32> to vector<8x32xf32>
    %184 = arith.truncf %183 : vector<8x32xf32> to vector<8x32xbf16>
    %cst_50 = arith.constant dense<0.000000e+00> : vector<8x32xf32>
    %185 = tpu.matmul %184, %10, %cst_50 {dimension_numbers = #tpu.dot_dimension_numbers<[1], [0], [0], [1], [0, 0, 1, 1], [], []>} : vector<8x32xbf16>, vector<32x32xbf16>, vector<8x32xf32> -> vector<8x32xf32>
    %186 = vector.shape_cast %185 : vector<8x32xf32> to vector<1x8x32xf32>
    %187 = vector.shape_cast %182 : vector<1x32xf32> to vector<1x1x32xf32>
    %188 = vector.broadcast %187 : vector<1x1x32xf32> to vector<1x8x32xf32>
    %189 = arith.addf %186, %188 : vector<1x8x32xf32>
    %190 = arith.negf %189 : vector<1x8x32xf32>
    %191 = math.exp %190 : vector<1x8x32xf32>
    %cst_51 = arith.constant 1.000000e+00 : f32
    %192 = vector.broadcast %cst_51 : f32 to vector<1x8x32xf32>
    %193 = arith.addf %192, %191 : vector<1x8x32xf32>
    %194 = arith.divf %192, %193 : vector<1x8x32xf32>
    %195 = arith.addf %194, %7 : vector<1x8x32xf32>
    %196 = math.exp %195 : vector<1x8x32xf32>
    %197 = math.exp %175 : vector<1x32xf32>
    %cst_52 = arith.constant dense<0.000000e+00> : vector<1x32xf32>
    %198 = vector.multi_reduction <add>, %196, %cst_52 [1] : vector<1x8x32xf32> to vector<1x32xf32>
    %199 = arith.addf %198, %197 : vector<1x32xf32>
    %200 = arith.mulf %197, %71 : vector<1x32xf32>
    %201 = arith.mulf %196, %158 : vector<1x8x32xf32>
    %cst_53 = arith.constant dense<0.000000e+00> : vector<1x32xf32>
    %202 = vector.multi_reduction <add>, %201, %cst_53 [1] : vector<1x8x32xf32> to vector<1x32xf32>
    %203 = arith.addf %200, %202 : vector<1x32xf32>
    %204 = arith.divf %203, %199 : vector<1x32xf32>
    %205 = tpu.concatenate %160, %158 in 2 : vector<1x8x32xf32>, vector<1x8x32xf32> -> vector<1x8x64xf32>
    %206 = arith.truncf %205 : vector<1x8x64xf32> to vector<1x8x64xbf16>
    "tpu.trace_start"() <{level = 10 : i32, message = "bts,bsh->bth"}> : () -> ()
    %cst_54 = arith.constant dense<0.000000e+00> : vector<1x8x64xf32>
    %207 = tpu.matmul %26, %206, %cst_54 {dimension_numbers = #tpu.dot_dimension_numbers<[2], [1], [1], [2], [0, 0, 0, 1, 1, 2], [0], [0]>} : vector<1x8x8xbf16>, vector<1x8x64xbf16>, vector<1x8x64xf32> -> vector<1x8x64xf32>
    "tpu.trace_stop"() : () -> ()
    %208 = arith.extf %206 : vector<1x8x64xbf16> to vector<1x8x64xf32>
    %cst_55 = arith.constant dense<0.000000e+00> : vector<1x64xf32>
    %209 = vector.multi_reduction <add>, %208, %cst_55 [1] : vector<1x8x64xf32> to vector<1x64xf32>
    %210 = vector.shape_cast %209 : vector<1x64xf32> to vector<1x1x64xf32>
    %211 = arith.subf %207, %208 : vector<1x8x64xf32>
    %212 = vector.broadcast %210 : vector<1x1x64xf32> to vector<1x8x64xf32>
    %213 = arith.subf %212, %207 : vector<1x8x64xf32>
    %214 = vector.extract_strided_slice %211 {offsets = [0, 0, 0], sizes = [1, 8, 32], strides = [1, 1, 1]} : vector<1x8x64xf32> to vector<1x8x32xf32>
    %215 = vector.extract_strided_slice %211 {offsets = [0, 0, 32], sizes = [1, 8, 32], strides = [1, 1, 1]} : vector<1x8x64xf32> to vector<1x8x32xf32>
    %216 = vector.extract_strided_slice %213 {offsets = [0, 0, 0], sizes = [1, 8, 32], strides = [1, 1, 1]} : vector<1x8x64xf32> to vector<1x8x32xf32>
    %217 = vector.extract_strided_slice %213 {offsets = [0, 0, 32], sizes = [1, 8, 32], strides = [1, 1, 1]} : vector<1x8x64xf32> to vector<1x8x32xf32>
    %218 = tpu.concatenate %214, %160, %216 in 2 : vector<1x8x32xf32>, vector<1x8x32xf32>, vector<1x8x32xf32> -> vector<1x8x96xf32>
    %219 = vector.shape_cast %218 : vector<1x8x96xf32> to vector<8x96xf32>
    %220 = arith.truncf %219 : vector<8x96xf32> to vector<8x96xbf16>
    %cst_56 = arith.constant dense<0.000000e+00> : vector<8x256xf32>
    %221 = tpu.matmul %220, %11, %cst_56 {dimension_numbers = #tpu.dot_dimension_numbers<[1], [0], [0], [1], [0, 0, 1, 1], [], []>} : vector<8x96xbf16>, vector<96x256xbf16>, vector<8x256xf32> -> vector<8x256xf32>
    %222 = arith.truncf %162 : vector<1x32xf32> to vector<1x32xbf16>
    %cst_57 = arith.constant dense<0.000000e+00> : vector<1x256xf32>
    %223 = tpu.matmul %222, %12, %cst_57 {dimension_numbers = #tpu.dot_dimension_numbers<[1], [0], [0], [1], [0, 0, 1, 1], [], []>} : vector<1x32xbf16>, vector<32x256xbf16>, vector<1x256xf32> -> vector<1x256xf32>
    %224 = arith.addf %221, %19 : vector<8x256xf32>
    %225 = vector.shape_cast %224 : vector<8x256xf32> to vector<1x8x256xf32>
    %226 = vector.shape_cast %223 : vector<1x256xf32> to vector<1x1x256xf32>
    %227 = vector.broadcast %226 : vector<1x1x256xf32> to vector<1x8x256xf32>
    %228 = arith.addf %225, %227 : vector<1x8x256xf32>
    %229 = vector.extract_strided_slice %228 {offsets = [0, 0, 0], sizes = [1, 8, 32], strides = [1, 1, 1]} : vector<1x8x256xf32> to vector<1x8x32xf32>
    %230 = arith.negf %229 : vector<1x8x32xf32>
    %231 = math.exp %230 : vector<1x8x32xf32>
    %cst_58 = arith.constant 1.000000e+00 : f32
    %232 = vector.broadcast %cst_58 : f32 to vector<1x8x32xf32>
    %233 = arith.addf %232, %231 : vector<1x8x32xf32>
    %234 = arith.divf %232, %233 : vector<1x8x32xf32>
    %235 = vector.extract_strided_slice %228 {offsets = [0, 0, 32], sizes = [1, 8, 32], strides = [1, 1, 1]} : vector<1x8x256xf32> to vector<1x8x32xf32>
    %236 = arith.negf %235 : vector<1x8x32xf32>
    %237 = math.exp %236 : vector<1x8x32xf32>
    %cst_59 = arith.constant 1.000000e+00 : f32
    %238 = vector.broadcast %cst_59 : f32 to vector<1x8x32xf32>
    %239 = arith.addf %238, %237 : vector<1x8x32xf32>
    %240 = arith.divf %238, %239 : vector<1x8x32xf32>
    %241 = vector.extract_strided_slice %228 {offsets = [0, 0, 64], sizes = [1, 8, 32], strides = [1, 1, 1]} : vector<1x8x256xf32> to vector<1x8x32xf32>
    %242 = arith.negf %241 : vector<1x8x32xf32>
    %243 = math.exp %242 : vector<1x8x32xf32>
    %cst_60 = arith.constant 1.000000e+00 : f32
    %244 = vector.broadcast %cst_60 : f32 to vector<1x8x32xf32>
    %245 = arith.addf %244, %243 : vector<1x8x32xf32>
    %246 = arith.divf %244, %245 : vector<1x8x32xf32>
    %247 = vector.extract_strided_slice %228 {offsets = [0, 0, 96], sizes = [1, 8, 32], strides = [1, 1, 1]} : vector<1x8x256xf32> to vector<1x8x32xf32>
    %248 = arith.negf %247 : vector<1x8x32xf32>
    %249 = math.exp %248 : vector<1x8x32xf32>
    %cst_61 = arith.constant 1.000000e+00 : f32
    %250 = vector.broadcast %cst_61 : f32 to vector<1x8x32xf32>
    %251 = arith.addf %250, %249 : vector<1x8x32xf32>
    %252 = arith.divf %250, %251 : vector<1x8x32xf32>
    %253 = vector.extract_strided_slice %228 {offsets = [0, 0, 128], sizes = [1, 8, 32], strides = [1, 1, 1]} : vector<1x8x256xf32> to vector<1x8x32xf32>
    %254 = arith.negf %253 : vector<1x8x32xf32>
    %255 = math.exp %254 : vector<1x8x32xf32>
    %cst_62 = arith.constant 1.000000e+00 : f32
    %256 = vector.broadcast %cst_62 : f32 to vector<1x8x32xf32>
    %257 = arith.addf %256, %255 : vector<1x8x32xf32>
    %258 = arith.divf %256, %257 : vector<1x8x32xf32>
    %259 = vector.extract_strided_slice %228 {offsets = [0, 0, 160], sizes = [1, 8, 32], strides = [1, 1, 1]} : vector<1x8x256xf32> to vector<1x8x32xf32>
    %260 = arith.negf %259 : vector<1x8x32xf32>
    %261 = math.exp %260 : vector<1x8x32xf32>
    %cst_63 = arith.constant 1.000000e+00 : f32
    %262 = vector.broadcast %cst_63 : f32 to vector<1x8x32xf32>
    %263 = arith.addf %262, %261 : vector<1x8x32xf32>
    %264 = arith.divf %262, %263 : vector<1x8x32xf32>
    %265 = arith.addf %234, %7 : vector<1x8x32xf32>
    %266 = math.exp %265 : vector<1x8x32xf32>
    %267 = arith.addf %240, %7 : vector<1x8x32xf32>
    %268 = math.exp %267 : vector<1x8x32xf32>
    %269 = arith.addf %246, %7 : vector<1x8x32xf32>
    %270 = math.exp %269 : vector<1x8x32xf32>
    %271 = arith.addf %252, %7 : vector<1x8x32xf32>
    %272 = math.exp %271 : vector<1x8x32xf32>
    %273 = arith.addf %258, %7 : vector<1x8x32xf32>
    %274 = math.exp %273 : vector<1x8x32xf32>
    %275 = arith.addf %266, %268 : vector<1x8x32xf32>
    %276 = arith.addf %275, %270 : vector<1x8x32xf32>
    %277 = arith.addf %276, %272 : vector<1x8x32xf32>
    %278 = arith.addf %277, %274 : vector<1x8x32xf32>
    %cst_64 = arith.constant dense<0.000000e+00> : vector<1x32xf32>
    %279 = vector.multi_reduction <add>, %278, %cst_64 [1] : vector<1x8x32xf32> to vector<1x32xf32>
    %cst_65 = arith.constant 1.000000e-30 : f32
    %280 = vector.broadcast %cst_65 : f32 to vector<1x32xf32>
    %281 = arith.maximumf %279, %280 : vector<1x32xf32>
    %cst_66 = arith.constant 1.000000e+00 : f32
    %282 = vector.broadcast %cst_66 : f32 to vector<1x32xf32>
    %283 = arith.divf %282, %281 : vector<1x32xf32>
    %284 = vector.shape_cast %283 : vector<1x32xf32> to vector<1x1x32xf32>
    %285 = vector.broadcast %284 : vector<1x1x32xf32> to vector<1x8x32xf32>
    %286 = arith.mulf %268, %285 : vector<1x8x32xf32>
    %287 = arith.mulf %286, %215 : vector<1x8x32xf32>
    %288 = vector.broadcast %284 : vector<1x1x32xf32> to vector<1x8x32xf32>
    %289 = arith.mulf %270, %288 : vector<1x8x32xf32>
    %290 = arith.mulf %289, %217 : vector<1x8x32xf32>
    %291 = arith.addf %287, %290 : vector<1x8x32xf32>
    %292 = math.tanh %291 : vector<1x8x32xf32>
    %293 = arith.mulf %264, %292 : vector<1x8x32xf32>
    %294 = math.tanh %204 : vector<1x32xf32>
    %295 = arith.mulf %181, %294 : vector<1x32xf32>
    %296 = vector.shape_cast %295 : vector<1x32xf32> to vector<1x1x32xf32>
    %297 = vector.broadcast %296 : vector<1x1x32xf32> to vector<1x8x32xf32>
    %298 = arith.addf %293, %297 : vector<1x8x32xf32>
    %299 = vector.shape_cast %298 : vector<1x8x32xf32> to vector<8x32xf32>
    %300 = arith.truncf %299 : vector<8x32xf32> to vector<8x32xbf16>
    %c0_67 = arith.constant 0 : index
    %c0_68 = arith.constant 0 : index
    %301 = vector.load %arg10[%c0_67, %c0_68] : memref<32x128xbf16, #tpu.memory_space<vmem>>, vector<32x128xbf16>
    %cst_69 = arith.constant dense<0.000000e+00> : vector<8x128xf32>
    %302 = tpu.matmul %300, %301, %cst_69 {dimension_numbers = #tpu.dot_dimension_numbers<[1], [0], [0], [1], [0, 0, 1, 1], [], []>} : vector<8x32xbf16>, vector<32x128xbf16>, vector<8x128xf32> -> vector<8x128xf32>
    %c0_70 = arith.constant 0 : index
    %c0_71 = arith.constant 0 : index
    %303 = vector.load %arg11[%c0_70, %c0_71] : memref<1x128xf32, #tpu.memory_space<vmem>>, vector<1x128xf32>
    %304 = vector.broadcast %303 : vector<1x128xf32> to vector<8x128xf32>
    %305 = arith.addf %302, %304 : vector<8x128xf32>
    %306 = vector.shape_cast %305 : vector<8x128xf32> to vector<1x8x128xf32>
    %c0_72 = arith.constant 0 : index
    %c0_73 = arith.constant 0 : index
    %c0_74 = arith.constant 0 : index
    %307 = vector.load %arg12[%c0_72, %c0_73, %c0_74] : memref<1x8x128xf32, #tpu.memory_space<vmem>>, vector<1x8x128xf32>
    tpu.vector_store %arg12[%c0_72, %c0_73, %c0_74], %306 {strides = array<i32>} : memref<1x8x128xf32, #tpu.memory_space<vmem>>, vector<1x8x128xf32>,
    return
  }
  func.func @transform_0(%arg0: i32) -> (i32, i32, i32) {
    %c0_i32 = arith.constant 0 : i32
    %c0_i32_0 = arith.constant 0 : i32
    %c0_i32_1 = arith.constant 0 : i32
    return %arg0, %c0_i32, %c0_i32_0 : i32, i32, i32
  }
  func.func @transform_1(%arg0: i32) -> (i32, i32, i32) {
    %c0_i32 = arith.constant 0 : i32
    %c0_i32_0 = arith.constant 0 : i32
    %c0_i32_1 = arith.constant 0 : i32
    return %arg0, %c0_i32, %c0_i32_0 : i32, i32, i32
  }
  func.func @transform_2(%arg0: i32) -> (i32, i32) {
    %c0_i32 = arith.constant 0 : i32
    %c0_i32_0 = arith.constant 0 : i32
    %c0_i32_1 = arith.constant 0 : i32
    return %c0_i32, %c0_i32_0 : i32, i32
  }
  func.func @transform_3(%arg0: i32) -> (i32, i32) {
    %c0_i32 = arith.constant 0 : i32
    %c0_i32_0 = arith.constant 0 : i32
    %c0_i32_1 = arith.constant 0 : i32
    return %c0_i32, %c0_i32_0 : i32, i32
  }
  func.func @transform_4(%arg0: i32) -> (i32, i32) {
    %c0_i32 = arith.constant 0 : i32
    %c0_i32_0 = arith.constant 0 : i32
    %c0_i32_1 = arith.constant 0 : i32
    return %c0_i32, %c0_i32_0 : i32, i32
  }
  func.func @transform_5(%arg0: i32) -> (i32, i32) {
    %c0_i32 = arith.constant 0 : i32
    %c0_i32_0 = arith.constant 0 : i32
    %c0_i32_1 = arith.constant 0 : i32
    return %c0_i32, %c0_i32_0 : i32, i32
  }
  func.func @transform_6(%arg0: i32) -> (i32, i32) {
    %c0_i32 = arith.constant 0 : i32
    %c0_i32_0 = arith.constant 0 : i32
    %c0_i32_1 = arith.constant 0 : i32
    return %c0_i32, %c0_i32_0 : i32, i32
  }
  func.func @transform_7(%arg0: i32) -> (i32, i32) {
    %c0_i32 = arith.constant 0 : i32
    %c0_i32_0 = arith.constant 0 : i32
    %c0_i32_1 = arith.constant 0 : i32
    return %c0_i32, %c0_i32_0 : i32, i32
  }
  func.func @transform_8(%arg0: i32) -> (i32, i32) {
    %c0_i32 = arith.constant 0 : i32
    %c0_i32_0 = arith.constant 0 : i32
    %c0_i32_1 = arith.constant 0 : i32
    return %c0_i32, %c0_i32_0 : i32, i32
  }
  func.func @transform_9(%arg0: i32) -> (i32, i32) {
    %c0_i32 = arith.constant 0 : i32
    %c0_i32_0 = arith.constant 0 : i32
    %c0_i32_1 = arith.constant 0 : i32
    return %c0_i32, %c0_i32_0 : i32, i32
  }
  func.func @transform_10(%arg0: i32) -> (i32, i32) {
    %c0_i32 = arith.constant 0 : i32
    %c0_i32_0 = arith.constant 0 : i32
    %c0_i32_1 = arith.constant 0 : i32
    return %c0_i32, %c0_i32_0 : i32, i32
  }
  func.func @transform_11(%arg0: i32) -> (i32, i32, i32) {
    %c0_i32 = arith.constant 0 : i32
    %c0_i32_0 = arith.constant 0 : i32
    %c0_i32_1 = arith.constant 0 : i32
    return %arg0, %c0_i32, %c0_i32_0 : i32, i32, i32
  }
}

</mosaic_0001>

<bundles_post_ra>
// kernel: tpu_custom_call.1
= control target key start
LH: loop header
LB: loop body
LE: loop exit
PB: predicated region body
PF: predicated region fallthrough
CT: control target
= control target key end

     0   :  { %s3117_s0 = inlined_call_operand.hbm [shape: f32[2,8,32], index: 0, kind: input, shape index: {}]   ;;  %s3118_s1 = inlined_call_operand.vmem [shape: f32[2,8,1], index: 1, kind: input, shape index: {}]   ;;  %s3119_s2 = inlined_call_operand.hbm [shape: bf16[64,96], index: 2, kind: input, shape index: {}]   ;;  %s3120_s3 = inlined_call_operand.hbm [shape: f32[1,96], index: 3, kind: input, shape index: {}]   ;;  %s3121_s4 = inlined_call_operand.hbm [shape: bf16[32,32], index: 4, kind: input, shape index: {}]   ;;  %s3122_s5 = inlined_call_operand.hbm [shape: bf16[96,256], index: 5, kind: input, shape index: {}]   ;;  %s3123_s6 = inlined_call_operand.vmem [shape: bf16[32,256], index: 6, kind: input, shape index: {}]   ;;  %s3124_s7 = inlined_call_operand.hbm [shape: bf16[32,256], index: 7, kind: input, shape index: {}]   ;;  %s3125_s8 = inlined_call_operand.hbm [shape: f32[1,256], index: 8, kind: input, shape index: {}]   ;;  %s3126_s9 = inlined_call_operand.vmem [shape: bf16[32,128], index: 9, kind: input, shape index: {}]   ;;  %s3127_s10 = inlined_call_operand.vmem [shape: f32[1,128], index: 10, kind: input, shape index: {}]   ;;  %s3128_s11 = inlined_call_operand.hbm [shape: f32[2,8,128], index: 11, kind: output, shape index: {}]  }
   0x1   :  { %3134 = sst [smem:[#allocation20_spill]] %s3119_s2 }
   0x2   :  { %3135 = sst [smem:[#allocation21_spill]] %s3121_s4 }
   0x3   :  { %3136 = sst [smem:[#allocation22_spill]] %s3126_s9 }
   0x4   :  { %3137 = sst [smem:[#allocation23_spill]] %s3127_s10 }
   0x5   :  { %3138 = sst [smem:[#allocation24_spill]] %s3128_s11 }
   0x6   :  { %16 = vsyncpa [#allocation3], 0 }
   0x7   :  { %18 = vsyncpa [#allocation3 + $0x1], 0 }
   0x8   :  { %19 = vsyncpa [#allocation6], 0 }
   0x9   :  { %20 = vsyncpa [#allocation9], 0 }
   0xa   :  { %21 = vsyncpa [#allocation12], 0 }
   0xb   :  { %22 = vsyncpa [#allocation4], 0 }
   0xc   :  { %24 = vsyncpa [#allocation4 + $0x1], 0  ;;  %s2488_s17 = smov 0   ;;  %s2490_s18 = smov 0  }
   0xd   :  { %s2492_s19 = smov 0   ;;  %s2494_s20 = smov 0  }
   0xe LB: > { %s2410_s21 = smov [#allocation5]   ;;  %s2509_s23 = sadd.s32 4294967295, %s2408_s20   ;;  %s2408_s20 = sphi %s2494_s20, %s3166_s20   ;;  %s2404_s19 = sphi %s2492_s19, %s3165_s19   ;;  %s2400_s18 = sphi %s2490_s18, %s3164_s18   ;;  %s2396_s17 = sphi %s2488_s17, %s3163_s17  }
   0xf   : > { %s314_s22 = sshll.u32 %s2410_s21, 4  ;;  %p1753_p0 = scmp.ge.s32.totalorder %s2408_s20, 1  ;;  %s2514_s22 = int_to_ptr.vmem [resolvable:$true] %s314_s22 }
  0x10   : > { %p3131_p1 = scmp.eq.s32.totalorder %s2509_s23, 0  ;;  %p302_p2 = scmp.lt.s32.totalorder %s2408_s20, 3 }
  0x11   : > { %s2411_s25 = smov [#allocation8]   ;;  %s2412_s28 = smov [#allocation11]  }
  0x12   : > { %p2516_p3 = pnand %p1753_p0, %p302_p2  ;;  %s338_s26 = sshll.u32 %s2411_s25, 4  ;;  %s2529_s26 = int_to_ptr.vmem [resolvable:$true] %s338_s26 }
  0x13   : > { %s2531_s29 = sshll.u32 %s2412_s28, 4  ;;  %s3141_s2 = sld [smem:[#allocation20_spill]]  ;;  %s368_s29 = int_to_ptr.vmem [resolvable:$true] %s2531_s29 }
  0x14   : > { %s3139_s24 = scalar_select %p2516_p3, 1, 0 }
  0x15   : > { %p1939_p5 = pneg %p2516_p3 }
  0x17   : > { %p2525_p6 = pnand %p1939_p5, %p3131_p1 }
  0x19   : > { %s2132_s13 = scalar_lea.hbm %s3141_s2, 512  ;;  %p2541_p8 = pneg %p2525_p6 }
  0x1a   : > { %p2133_p7 = scmp.ne.s32.totalorder %s3141_s2, %s2132_s13  ;;  %p2139_p11 = scmp.lt.u32.totalorder %s2132_s13, %s3141_s2 }
  0x1c   : > { %p2135_p9 = pnand %p2541_p8, %p2133_p7 }
  0x1e   : > { %p2136_p10 = pneg %p2135_p9 }
  0x20   : > { %p2141_p12 = pnand %p2139_p11, %p2136_p10 }
  0x22   : > { %2144 = shalt.err (!%p2141_p12)
}
  0x23   : > { %s2145_s28 = scalar_lea.vmem %s2514_s22, 512  ;;  %p2153_p5 = scmp.lt.s32.totalorder %s2514_s22, %s2514_s22 }
  0x24   : > { %p2146_p13 = scmp.ne.s32.totalorder %s2514_s22, %s2145_s28  ;;  %p2154_p4 = scmp.lt.s32.totalorder %s2145_s28, %s2145_s28 }
  0x26   : > { %p2148_p0 = pnand %p2146_p13, %p2541_p8  ;;  %p2155_p7 = por %p2154_p4, %p2153_p5 }
  0x28   : > { %p2149_p2 = pneg %p2148_p0 }
  0x2a   : > { %p2156_p9 = pnand %p2155_p7, %p2149_p2 }
  0x2c   : > { %2159 = shalt.err (!%p2156_p9)
}
  0x2d   : > { %s2413_s30 = smov 64   ;;  %s2414_s12 = smov 4  }
  0x2e   : > { %1942 = dma.hbm_to_vmem [thread:$0]  (!%p2525_p6), %s3141_s2, 512, %s2514_s22, [#allocation6], %s2413_s30, %s2413_s30, %s2414_s12  }
  0x2f   : > { %s3143_s4 = sld [smem:[#allocation21_spill]] }
  0x35   : > { %s2160_s25 = scalar_lea.hbm %s3143_s4, 256 }
  0x36   : > { %p2161_p4 = scmp.ne.s32.totalorder %s3143_s4, %s2160_s25  ;;  %p2167_p12 = scmp.lt.u32.totalorder %s2160_s25, %s3143_s4 }
  0x38   : > { %p2163_p10 = pnand %p2161_p4, %p2541_p8 }
  0x3a   : > { %p2164_p11 = pneg %p2163_p10 }
  0x3c   : > { %p2169_p13 = pnand %p2167_p12, %p2164_p11 }
  0x3e   : > { %2172 = shalt.err (!%p2169_p13)
}
  0x3f   : > { %s2173_s22 = scalar_lea.vmem %s2529_s26, 256  ;;  %p2181_p7 = scmp.lt.s32.totalorder %s2529_s26, %s2529_s26 }
  0x40   : > { %p2174_p0 = scmp.ne.s32.totalorder %s2529_s26, %s2173_s22  ;;  %p2182_p9 = scmp.lt.s32.totalorder %s2173_s22, %s2173_s22 }
  0x42   : > { %p2176_p2 = pnand %p2174_p0, %p2541_p8  ;;  %p2183_p4 = por %p2182_p9, %p2181_p7 }
  0x44   : > { %p2177_p5 = pneg %p2176_p2 }
  0x46   : > { %p2184_p10 = pnand %p2183_p4, %p2177_p5 }
  0x48   : > { %2187 = shalt.err (!%p2184_p10)
}
  0x49   : > { %1948 = dma.hbm_to_vmem [thread:$0]  (!%p2525_p6), %s3143_s4, 256, %s2529_s26, [#allocation9], %s2413_s30, %s2413_s30, %s2414_s12  }
  0x4a   : > { %s2188_s14 = scalar_lea.hbm %s3124_s7, 512 }
  0x4b   : > { %p2189_p11 = scmp.ne.s32.totalorder %s3124_s7, %s2188_s14  ;;  %p2195_p0 = scmp.lt.u32.totalorder %s2188_s14, %s3124_s7 }
  0x4d   : > { %p2191_p12 = pnand %p2189_p11, %p2541_p8 }
  0x4f   : > { %p2192_p13 = pneg %p2191_p12 }
  0x51   : > { %p2197_p2 = pnand %p2195_p0, %p2192_p13 }
  0x53   : > { %2200 = shalt.err (!%p2197_p2)
}
  0x54   : > { %s2201_s22 = scalar_lea.vmem %s368_s29, 512  ;;  %p2209_p4 = scmp.lt.s32.totalorder %s368_s29, %s368_s29 }
  0x55   : > { %p2202_p5 = scmp.ne.s32.totalorder %s368_s29, %s2201_s22  ;;  %p2210_p10 = scmp.lt.s32.totalorder %s2201_s22, %s2201_s22 }
  0x57   : > { %p2204_p7 = pnand %p2202_p5, %p2541_p8  ;;  %p2211_p1 = por %p2210_p10, %p2209_p4 }
  0x59   : > { %p2205_p9 = pneg %p2204_p7 }
  0x5b   : > { %p2212_p3 = pnand %p2211_p1, %p2205_p9 }
  0x5d   : > { %2215 = shalt.err (!%p2212_p3)
}
  0x5e   : > { %s2415_s26 = smov 128   ;;  %s2416_s30 = smov 8  }
  0x5f   : > { %1954 = dma.hbm_to_vmem [thread:$0]  (!%p2525_p6), %s3124_s7, 512, %s368_s29, [#allocation12], %s2415_s26, %s2415_s26, %s2416_s30  }
  0x60   : > { %s2417_s10 = smov [#allocation7]   ;;  %s2418_s13 = smov [#allocation10]  }
  0x61   : > { %s328_s11 = sshll.u32 %s2417_s10, 4  ;;  %s351_s14 = sshll.u32 %s2418_s13, 4  ;;  %s329_s11 = int_to_ptr.vmem [resolvable:$true] %s328_s11  ;;  %s352_s14 = int_to_ptr.vmem [resolvable:$true] %s351_s14 }
  0x62   : > { %s2216_s25 = scalar_lea.hbm %s3120_s3, 16 }
  0x63   : > { %p2217_p1 = scmp.ne.s32.totalorder %s3120_s3, %s2216_s25  ;;  %p2223_p12 = scmp.lt.u32.totalorder %s2216_s25, %s3120_s3 }
  0x65   : > { %p2219_p3 = pnand %p2217_p1, %p2541_p8 }
  0x67   : > { %p2220_p11 = pneg %p2219_p3 }
  0x69   : > { %p2225_p13 = pnand %p2223_p12, %p2220_p11 }
  0x6b   : > { %2228 = shalt.err (!%p2225_p13)
}
  0x6c   : > { %s2229_s29 = scalar_lea.vmem %s329_s11, 16  ;;  %s2236_s12 = scalar_lea.vmem %s329_s11, 32 }
  0x6d   : > { %p2230_p0 = scmp.ne.s32.totalorder %s329_s11, %s2229_s29  ;;  %p2237_p7 = scmp.lt.s32.totalorder %s329_s11, %s329_s11 }
  0x6e   : > { %p2238_p9 = scmp.lt.s32.totalorder %s2236_s12, %s2229_s29 }
  0x6f   : > { %p2232_p2 = pnand %p2230_p0, %p2541_p8 }
  0x70   : > { %p2239_p4 = por %p2238_p9, %p2237_p7 }
  0x71   : > { %p2233_p5 = pneg %p2232_p2 }
  0x73   : > { %p2240_p10 = pnand %p2239_p4, %p2233_p5 }
  0x75   : > { %2243 = shalt.err (!%p2240_p10)
}
  0x76   : > { %1945 = dma.hbm_to_vmem [thread:$0]  (!%p2525_p6), %s3120_s3, 16, %s329_s11, [#allocation6]  }
  0x77   : > { %s2244_s13 = scalar_lea.hbm %s3122_s5, 1536 }
  0x78   : > { %p2245_p1 = scmp.ne.s32.totalorder %s3122_s5, %s2244_s13  ;;  %p2251_p12 = scmp.lt.u32.totalorder %s2244_s13, %s3122_s5 }
  0x7a   : > { %p2247_p3 = pnand %p2245_p1, %p2541_p8 }
  0x7c   : > { %p2248_p11 = pneg %p2247_p3 }
  0x7e   : > { %p2253_p13 = pnand %p2251_p12, %p2248_p11 }
  0x80   : > { %2256 = shalt.err (!%p2253_p13)
}
  0x81   : > { %s2257_s22 = scalar_lea.vmem %s352_s14, 1536  ;;  %p2265_p7 = scmp.lt.s32.totalorder %s352_s14, %s352_s14 }
  0x82   : > { %p2258_p0 = scmp.ne.s32.totalorder %s352_s14, %s2257_s22  ;;  %p2266_p9 = scmp.lt.s32.totalorder %s2257_s22, %s2257_s22 }
  0x84   : > { %p2260_p2 = pnand %p2258_p0, %p2541_p8  ;;  %p2267_p4 = por %p2266_p9, %p2265_p7 }
  0x86   : > { %p2261_p5 = pneg %p2260_p2 }
  0x88   : > { %p2268_p10 = pnand %p2267_p4, %p2261_p5 }
  0x8a   : > { %2271 = shalt.err (!%p2268_p10)
}
  0x8b   : > { %1951 = dma.hbm_to_vmem [thread:$0]  (!%p2525_p6), %s3122_s5, 1536, %s352_s14, [#allocation9], %s2415_s26, %s2415_s26, %s2416_s30  }
  0x8c   : > { %s2419_s12 = smov [#allocation13]   ;;  %s2272_s4 = scalar_lea.hbm %s3125_s8, 32 }
  0x8d   : > { %s381_s9 = sshll.u32 %s2419_s12, 4  ;;  %p2273_p1 = scmp.ne.s32.totalorder %s3125_s8, %s2272_s4  ;;  %s382_s9 = int_to_ptr.vmem [resolvable:$true] %s381_s9 }
  0x8e   : > { %p2279_p12 = scmp.lt.u32.totalorder %s2272_s4, %s3125_s8 }
  0x8f   : > { %p2275_p3 = pnand %p2273_p1, %p2541_p8 }
  0x91   : > { %p2276_p11 = pneg %p2275_p3 }
  0x93   : > { %p2281_p13 = pnand %p2279_p12, %p2276_p11 }
  0x95   : > { %2284 = shalt.err (!%p2281_p13)
}
  0x96   : > { %s2285_s26 = scalar_lea.vmem %s382_s9, 32  ;;  %p2293_p7 = scmp.lt.s32.totalorder %s382_s9, %s382_s9 }
  0x97   : > { %p2286_p0 = scmp.ne.s32.totalorder %s382_s9, %s2285_s26  ;;  %p2294_p9 = scmp.lt.s32.totalorder %s2285_s26, %s2285_s26 }
  0x99   : > { %p2288_p2 = pnand %p2286_p0, %p2541_p8  ;;  %p2295_p4 = por %p2294_p9, %p2293_p7 }
  0x9b   : > { %p2289_p5 = pneg %p2288_p2 }
  0x9d   : > { %p2296_p10 = pnand %p2295_p4, %p2289_p5 }
  0x9f   : > { %2299 = shalt.err (!%p2296_p10)
}
  0xa0   : > { %1957 = dma.hbm_to_vmem [thread:$0]  (!%p2525_p6), %s3125_s8, 32, %s382_s9, [#allocation12]  }
  0xa1   : > { %s1752_s16 = sadd.s32 4294967294, %s2408_s20   ;;  %s2666_s27 = sadd.s32 1, %s2408_s20  }
  0xa2   : > { %s34_s28 = ssub.s32 %s2408_s20, %s2666_s27  ;;  %s37_s22 = sadd.s32 1, %s2404_s19 }
  0xa3   : > { %p35_p8 = scmp.eq.s32.totalorder %s34_s28, 0  ;;  %p44_p1 = scmp.ne.s32.totalorder %s2404_s19, %s2400_s18 }
  0xa4   : > { %p45_p3 = scmp.eq.s32.totalorder %s2408_s20, 0  ;;  %p50_p11 = scmp.ne.s32.totalorder %s2400_s18, %s2396_s17 }
  0xa5   : > { %s2677_s11 = scalar_select %p35_p8, %s2404_s19, %s37_s22  }
  0xa6   : > { %p2679_p12 = por %p45_p3, %p44_p1  ;;  %p3145_p13 = scmp.eq.s32.totalorder %s2509_s23, 0 }
  0xa7   : > { %p289_p0 = scmp.eq.s32.totalorder %s2509_s23, 1  ;;  %p295_p2 = scmp.eq.s32.totalorder %s1752_s16, 1 }
  0xa8   : > { %p2685_p6 = por %p3145_p13, %p50_p11  ;;  %p1972_p5 = scmp.lt.s32.totalorder %s2408_s20, 2 }
  0xa9   : > { %s398_s9 = sand.u32 1, %s2404_s19   ;;  %p2692_p7 = por %p289_p0, %p44_p1 }
  0xaa   : > { %p2696_p9 = por %p295_p2, %p50_p11  ;;  %s1761_s4 = sshll.u32 %s398_s9, 3 }
  0xab   : > { %s3147_s10 = scalar_select %p2692_p7, 1, 0 }
  0xac   : > { %s3148_s2 = scalar_select %p2696_p9, 1, 0 }
  0xad   : > { %s1762_s13 = sshll.u32 %s2408_s20, 7  ;;  %s402_s26 = scalar_lea.vmem [#allocation2], %s1761_s4 }
  0xae   : > { %s2704_s25 = scalar_lea.hbm %s3117_s0, %s1762_s13  ;;  %s409_s30 = sshll.u32 %s402_s26, 4  ;;  %s2706_s30 = int_to_ptr.vmem [resolvable:$true] %s409_s30 }
  0xaf   : > { %p2710_p4 = pnand %p1972_p5, %p2679_p12  ;;  %s399_s16 = scalar_lea.sflag [#allocation3], %s398_s9 }
  0xb0   : > { %s2300_s28 = scalar_lea.hbm %s2704_s25, 128  ;;  %s2305_s13 = scalar_lea.hbm %s3117_s0, 256 }
  0xb1   : > { %p2301_p10 = scmp.ne.s32.totalorder %s2704_s25, %s2300_s28  ;;  %p2302_p8 = pneg %p2710_p4 }
  0xb2   : > { %p2306_p11 = scmp.lt.u32.totalorder %s2704_s25, %s3117_s0  ;;  %p2307_p12 = scmp.lt.u32.totalorder %s2305_s13, %s2300_s28 }
  0xb3   : > { %p2303_p1 = pnand %p2302_p8, %p2301_p10  ;;  %p2309_p0 = scmp.lt.u32.totalorder %s2300_s28, %s2704_s25 }
  0xb4   : > { %p2308_p13 = por %p2307_p12, %p2306_p11 }
  0xb5   : > { %p2304_p3 = pneg %p2303_p1 }
  0xb6   : > { %p2310_p2 = por %p2309_p0, %p2308_p13 }
  0xb8   : > { %p2311_p5 = pnand %p2310_p2, %p2304_p3 }
  0xba   : > { %2314 = shalt.err (!%p2311_p5)
}
  0xbb   : > { %s2315_s9 = scalar_lea.vmem %s2706_s30, 128  ;;  %s2420_s21 = smov [#allocation2]  }
  0xbc   : > { %p2316_p10 = scmp.ne.s32.totalorder %s2706_s30, %s2315_s9  ;;  %s2320_s26 = sshll.u32 %s2420_s21, 4  ;;  %s2321_s26 = int_to_ptr.vmem [resolvable:$false] %s2320_s26 }
  0xbd   : > { %s2322_s22 = scalar_lea.vmem %s2321_s26, 256  ;;  %p2323_p7 = scmp.lt.s32.totalorder %s2706_s30, %s2321_s26 }
  0xbe   : > { %p2318_p1 = pnand %p2316_p10, %p2302_p8  ;;  %p2324_p11 = scmp.lt.s32.totalorder %s2322_s22, %s2315_s9 }
  0xc0   : > { %p2319_p9 = pneg %p2318_p1  ;;  %p2325_p12 = por %p2324_p11, %p2323_p7 }
  0xc2   : > { %p2326_p13 = pnand %p2325_p12, %p2319_p9 }
  0xc4   : > { %2329 = shalt.err (!%p2326_p13)
}
  0xc5   : > { %1961 = dma.hbm_to_vmem [thread:$0]  (!%p2710_p4), %s2704_s25, 128, %s2706_s30, %s399_s16  }
  0xc6   : > { %p3150_p3 = scmp.ne.s32.totalorder %s3139_s24, 0 }
  0xc7   : > { %s2742_s28 = sand.u32 (!%p3150_p3), 1, %s2400_s18  }
  0xc8   : > { %425 = sbr.rel (%p3150_p3) target bundleno = 2784 (0xae0), region = 64  ;;  %s1764_s4 = sshll.u32 (!%p3150_p3), %s2742_s28, 3 }
  0xc9   : > { %s428_s13 = scalar_lea.sflag (!%p3150_p3), [#allocation3], %s2742_s28  ;;  %s431_s29 = scalar_lea.vmem (!%p3150_p3), [#allocation2], %s1764_s4 }
  0xcf   : > { %2375 = dma.done.wait (%p2685_p6), %s428_s13, 128  }
  0xd0   : > { %2377 = vsyncadd (%p2685_p6), %s428_s13, 4294967168  ;;  %p3151_p7 = scmp.eq.s32.totalorder %s2509_s23, 0 }
  0xd2   : > { %2379 = dma.done.wait (%p3151_p7), [#allocation6], 528   ;;  %p3152_p9 = pmov %p3151_p7 }
  0xd3   : > { %p3153_p4 = pmov %p3151_p7 }
  0xd4   : > { %2381 = vsyncadd (%p3152_p9), [#allocation6], 4294966768 }
  0xd5   : > { %2383 = dma.done.wait (%p3153_p4), [#allocation9], 1792   ;;  %p3154_p8 = pmov %p3153_p4 }
  0xd6   : > { %p3155_p0 = pmov %p3153_p4 }
  0xd7   : > { %2385 = vsyncadd (%p3154_p8), [#allocation9], 4294965504 }
  0xd8   : > { %2387 = dma.done.wait (%p3155_p0), [#allocation12], 544   ;;  %p3156_p2 = pmov %p3155_p0 }
  0xd9   : > { %v2421_v0 = vmov 0.0   ;;  %vm2422_vm0 = vmmov 0   ;;  %v2767_v1 = vld [vmem:[%s431_s29] sm:$0xff]  ;;  %s2423_s24 = smov 32   ;;  %v2771_v2 = vld [vmem:[#allocation8] sm:$0xff]   ;;  %vm578_vm1 = vcmask 261120   ;;  %v548_v12 = vlaneseq }
  0xda   : > { %2389 = vsyncadd (%p3156_p2), [#allocation12], 4294966752  ;;  %1863 = vmatprep.subr.bf16.mxu0 %v2421_v0  ;;  %1867 = vmatprep.mubr.msk.bf16.mxu0 %vm2422_vm0, %v2421_v0  ;;  %v2773_v3 = vld [vmem:[#allocation8 + $0x8] sm:$0xff]   ;;  %v542_v4 = vpack.c.bf16 %v2767_v1, %v2767_v1  ;;  %v631_v5 = vsel %vm578_vm1, %v2767_v1, 0.0  ;;  %vm821_vm3 = vcmask 1043456   ;;  %vm817_vm4 = vcmask 64512  }
  0xdb   : > { %812 = vrot.lane.b32.xlu0 %v2767_v1, %s2423_s24  ;;  %1864 = vmatpush3.bf16.msra.mxu0 %v2771_v2  ;;  %v632_v6 = vrot.slane %v631_v5, 4  ;;  %v2790_v14 = vshrl.u32 %v548_v12, 7  ;;  %v626_v15 = vand.u32 127, %v548_v12  ;;  %v2032_v22 = vld [vmem:[%s3123_s6 + $0x4] ss:$8 sps:$4 sm:$0xff]   ;;  %v2424_v26 = vmov 0  }
  0xdc   : > { %1865 = vmatprep.subr.bf16.mxu0 %v2421_v0  ;;  %v2034_v23 = vld [vmem:[%s3123_s6] ss:$8 sps:$4 sm:$0xff]   ;;  %v2035_v24 = vld [vmem:[%s3123_s6 + $0x14] ss:$8 sps:$4 sm:$0xff]   ;;  %582 = vmatprep.subr.bf16.mxu1 %v2032_v22  ;;  %v2037_v28 = vld [vmem:[%s3123_s6 + $0x10] ss:$8 sps:$4 sm:$0xff]  }
  0xdd   : > { %v633_v7 = vadd.f32 %v632_v6, %v631_v5  ;;  %vm627_vm2 = vcmp.le.s32.totalorder %v626_v15, %v2790_v14  ;;  %v2816_v25 = vld [vmem:[#allocation10] ss:$8 sps:$4 sm:$0xff]   ;;  %614 = vmatprep.mubr.bf16.mxu1 %v2424_v26  ;;  %v2819_v27 = vld [vmem:[#allocation10 + $0x4] ss:$8 sps:$4 sm:$0xff]   ;;  %583 = vmatpush1.bf16.msra.mxu1 %v2034_v23  ;;  %v2824_v29 = vld [vmem:[#allocation10 + $0x14] ss:$8 sps:$4 sm:$0xff]  }
  0xde   : > { %v1779_v18 = vsel %vm627_vm2, 1.0, %v2421_v0  ;;  %584 = vmatprep.subr.bf16.mxu1 %v2035_v24  ;;  %v2829_v30 = vld [vmem:[#allocation10 + $0x10] ss:$8 sps:$4 sm:$0xff]   ;;  %2028 = vset.pattern.permute.xlu1 %v2424_v26  ;;  %v2833_v31 = vld [vmem:[#allocation10 + $0x24] ss:$8 sps:$4 sm:$0xff]   ;;  %vm669_vm5 = vcmask 523264  }
  0xdf   : > { %1866 = vmatpush3.bf16.msra.mxu0 %v2773_v3  ;;  %v634_v8 = vrot.slane %v633_v7, 2  ;;  %v2803_v21 = vpack.c.bf16 %v1779_v18, %v1779_v18  ;;  %2029 = vset.pattern.permute.xlu0 %v2424_v26  ;;  %v2038_v32 = vld [vmem:[#allocation5] sm:$0xff]   ;;  %v2838_v33 = vld [vmem:[#allocation10 + $0x20] ss:$8 sps:$4 sm:$0xff]   ;;  %v2042_v35 = vld [vmem:[#allocation5 + $0x8] sm:$0xff]   ;;  %p498_p6 = scmp.lt.s32.totalorder %s2509_s23, 1 }
  0xe0   : > { %1871 = vmatprep.subr.bf16.mxu0 %v2421_v0  ;;  %v2842_v34 = vld [vmem:[#allocation10 + $0x34] ss:$8 sps:$4 sm:$0xff]   ;;  %v2850_v38 = vld [vmem:[#allocation10 + $0x30] ss:$8 sps:$4 sm:$0xff]   ;;  %v2853_v40 = vld [vmem:[#allocation10 + $0x44] ss:$8 sps:$4 sm:$0xff]  }
  0xe1   : > { %v635_v9 = vadd.f32 %v634_v8, %v633_v7  ;;  %585 = vmatpush1.bf16.msra.mxu1 %v2037_v28  ;;  %v2046_v42 = vld [vmem:[#allocation5 + $0x10] sm:$0xff]   ;;  %v2050_v47 = vld [vmem:[#allocation5 + $0x18] sm:$0xff]   ;;  %v2868_v49 = vld [vmem:[#allocation10 + $0x50] ss:$8 sps:$4 sm:$0xff]   ;;  %s499_s26 = scalar_select %p498_p6, %s2509_s23, 1  ;;  %vm1007_vm6 = vcmask 785408  }
  0xe2   : > { %1868 = vmatmul.mubr.msk.bf16.vlgmr.msra.gmra.mrb[0].mxu0 %vm578_vm1, %v542_v4  ;;  %1851 = vmatprep.subr.bf16.mxu1 %v2421_v0  ;;  %v2857_v44 = vld [vmem:[#allocation10 + $0x40] ss:$8 sps:$4 sm:$0xff]   ;;  %v2860_v45 = vld [vmem:[#allocation10 + $0x54] ss:$8 sps:$4 sm:$0xff]   ;;  %v2865_v48 = vld [vmem:[#allocation11 + $0x4] ss:$8 sps:$4 sm:$0xff]  }
  0xe3   : > { %1873 = vmatprep.mubr.msk.bf16.mxu0 %vm2422_vm0, %v2421_v0  ;;  %v636_v10 = vrot.slane %v635_v9, 1  ;;  %v2871_v51 = vld [vmem:[#allocation11] ss:$8 sps:$4 sm:$0xff]   ;;  %v2874_v52 = vld [vmem:[#allocation11 + $0x14] ss:$8 sps:$4 sm:$0xff]   ;;  %s1772_s22 = sshll.u32 %s499_s26, 3 }
  0xe4   : > { %1778 = vmatmul.mubr.msk.bf16.vlgmr.msra.gmra.mrb[0].mxu1 %vm578_vm1, %v542_v4  ;;  %v2880_v53 = vld [vmem:[#allocation11 + $0x10] ss:$8 sps:$4 sm:$0xff]   ;;  %s501_s12 = scalar_lea.vmem %s3118_s1, %s1772_s22  ;;  %s2425_s25 = smov 64   ;;  %v541_v12 = vld [vmem:[#allocation13] sm:$0x3]  ;;  %vm1131_vm7 = vcmask 523520  }
  0xe5   : > { %v637_v11 = vadd.f32 %v636_v10, %v635_v9  ;;  %1852 = vmatpush3.bf16.msra.mxu1 %v2038_v32  ;;  %1859 = vmatprep.mubr.msk.bf16.mxu1 %vm2422_vm0, %v2421_v0  ;;  %v504_v63 = vld [vmem:[%s501_s12] sm:$0xff]  ;;  %s2426_s30 = smov 96   ;;  %s3157_s15 = sld [smem:[#allocation22_spill]] }
  0xe6   : > { %1853 = vmatprep.subr.bf16.mxu1 %v2421_v0  ;;  %v505_v5 = vmul.f32 1e+25, %v504_v63  ;;  %s3158_s22 = sld [smem:[#allocation23_spill]]  ;;  %s1825_s13 = sshll.u32 %s2509_s23, 7 }
  0xe7   : > { %v2786_v13 = vmul.f32 0.125, %v637_v11  ;;  %v554_v11 = vsub.s32 1, %v2790_v14  ;;  %s497_s29 = scalar_lea.vmem [#allocation14], %s1764_s4  ;;  %s3159_s16 = sld [smem:[#allocation24_spill]] }
  0xe8   : > { %v1773_v10 = vadd.f32 -1e+25, %v505_v5  ;;  %s1613_s12 = sshll.u32 %s497_s29, 4  ;;  %s1600_s23 = scalar_lea.sflag [#allocation4], %s2742_s28  ;;  %s3075_s12 = int_to_ptr.vmem [resolvable:$true] %s1613_s12 }
  0xe9   : > { %640 = vrot.lane.b32.xlu0 %v2786_v13, %s2423_s24  ;;  %1854 = vmatpush3.bf16.msra.mxu1 %v2042_v35  ;;  %v882_v59 = vpack.c.bf16 %v2786_v13, %v2786_v13  ;;  %v555_v15 = vrot.slane %v541_v12, %v554_v11  ;;  %p3160_p10 = scmp.ne.s32.totalorder %s3147_s10, 0  ;;  %s2427_s4 = smov [#allocation14]  }
  0xea   : > { %1855 = vmatprep.subr.bf16.mxu1 %v2421_v0  ;;  %s2334_s21 = sshll.u32 %s2427_s4, 4  ;;  %s2335_s21 = int_to_ptr.vmem [resolvable:$false] %s2334_s21 }
  0xeb   : > { %p2337_p12 = scmp.lt.s32.totalorder %s3075_s12, %s2335_s21 }
  0xed   : > { %1856 = vmatpush3.bf16.msra.mxu1 %v2046_v42  ;;  %s3073_s9 = scalar_lea.hbm %s3159_s16, %s1825_s13 }
  0xee   : > { %1857 = vmatprep.subr.bf16.mxu1 %v2421_v0 }
  0xf1   : > { %1858 = vmatpush3.bf16.msra.mxu1 %v2050_v47 }
  0xf2   : > { %906 = vmatprep.subr.bf16.mxu1 %v2865_v48 }
 0x14d   : > { %v2793_v16 = vpop.permute.xlu0 %812 }
 0x14e   : > { %v815_v17 = vsel %vm578_vm1, %v2767_v1, %v2793_v16 }
 0x14f   : > { %v2799_v19 = vpack.c.bf16 %v815_v17, %v815_v17 }
 0x151   : > { %v823_v20 = vsel %vm821_vm3, %v2799_v19, 0  ;;  %v865_v54 = vunpack.c.l.bf16 %v2799_v19 }
 0x152   : > { %1872 = vmatpush3.bf16.msra.mxu0 %v823_v20 }
 0x153   : > { %1011 = vmatprep.subr.bf16.mxu0 %v2819_v27  ;;  %v866_v55 = vsel %vm669_vm5, %v865_v54, 0.0 }
 0x154   : > { %v867_v56 = vrot.slane %v866_v55, 4 }
 0x155   : > { %1874 = vmatmul.mubr.msk.bf16.vlgmr.msra.gmra.mrb[4].mxu0 %vm817_vm4, %v2803_v21 }
 0x156   : > { %1043 = vmatprep.mubr.bf16.mxu0 %v2424_v26  ;;  %1012 = vmatpush1.bf16.msra.mxu0 %v2816_v25  ;;  %v868_v57 = vadd.f32 %v867_v56, %v866_v55 }
 0x157   : > { %1013 = vmatprep.subr.bf16.mxu0 %v2824_v29 }
 0x158   : > { %v869_v58 = vrot.slane %v868_v57, 2 }
 0x15a   : > { %1014 = vmatpush1.bf16.msra.mxu0 %v2829_v30  ;;  %v870_v60 = vadd.f32 %v869_v58, %v868_v57 }
 0x15b   : > { %1015 = vmatprep.subr.bf16.mxu0 %v2833_v31  ;;  %v641_v43 = vpop.permute.xlu0 %640 }
 0x15c   : > { %v643_v46 = vsel %vm578_vm1, %v2786_v13, %v641_v43  ;;  %v871_v61 = vrot.slane %v870_v60, 1 }
 0x15d   : > { %v644_v50 = vpack.c.bf16 %v643_v46, %v643_v46 }
 0x15e   : > { %1016 = vmatpush1.bf16.msra.mxu0 %v2838_v33  ;;  %v872_v62 = vadd.f32 %v871_v61, %v870_v60 }
 0x15f   : > { %1017 = vmatprep.subr.bf16.mxu0 %v2842_v34  ;;  %1860 = vmatmul.mubr.msk.bf16.vlgmr.msra.gmra.mrb[4].mxu1 %vm669_vm5, %v644_v50 }
 0x160   : > { %907 = vmatpush1.bf16.msra.mxu1 %v2871_v51  ;;  %938 = vmatprep.mubr.bf16.mxu1 %v2424_v26 }
 0x161   : > { %908 = vmatprep.subr.bf16.mxu1 %v2874_v52 }
 0x162   : > { %1018 = vmatpush1.bf16.msra.mxu0 %v2850_v38 }
 0x163   : > { %1019 = vmatprep.subr.bf16.mxu0 %v2853_v40 }
 0x164   : > { %909 = vmatpush1.bf16.msra.mxu1 %v2880_v53 }
 0x165   : > { %1877 = vmatprep.subr.bf16.mxu1 %v2421_v0 }
 0x166   : > { %1020 = vmatpush1.bf16.msra.mxu0 %v2857_v44 }
 0x167   : > { %1021 = vmatprep.subr.bf16.mxu0 %v2860_v45  ;;  %1795 = vmatmul.mubr.msk.bf16.vlgmr.msra.gmra.mrb[8].mxu1 %vm578_vm1, %v882_v59 }
 0x168   : > { %1878 = vmatpush3.bf16.msra.mxu1 %v2038_v32  ;;  %1885 = vmatprep.mubr.msk.bf16.mxu1 %vm2422_vm0, %v2421_v0 }
 0x169   : > { %1879 = vmatprep.subr.bf16.mxu1 %v2421_v0 }
 0x16a   : > { %1022 = vmatpush1.bf16.msra.mxu0 %v2868_v49 }
 0x16b   : > { %1897 = vmatprep.subr.bf16.mxu0 %v2421_v0 }
 0x16c   : > { %1880 = vmatpush3.bf16.msra.mxu1 %v2042_v35 }
 0x16d   : > { %1881 = vmatprep.subr.bf16.mxu1 %v2421_v0 }
 0x170   : > { %1882 = vmatpush3.bf16.msra.mxu1 %v2046_v42 }
 0x171   : > { %1883 = vmatprep.subr.bf16.mxu1 %v2421_v0 }
 0x174   : > { %1884 = vmatpush3.bf16.msra.mxu1 %v2050_v47 }
 0x175   : > { %1889 = vmatprep.subr.bf16.mxu1 %v2421_v0 }
 0x1b5   : > { %v2846_v36 = vpop.f32.mrb[0].mxu0 }
 0x1b6   : > { %v1869_v37 = vpop.f32.mrb[1].mxu0 }
 0x1b7   : > { %v768_v39 = vpop.f32.mrb[2].mxu0  ;;  %v616_v17 = vpop.f32.mrb[0].mxu1 }
 0x1b8   : > { %v1870_v41 = vpop.f32.mrb[3].mxu0  ;;  %v618_v18 = vpop.f32.mrb[1].mxu1 }
 0x1b9   : > { %v2904_v19 = vadd.f32 %v618_v18, %v555_v15  ;;  %v620_v20 = vpop.f32.mrb[2].mxu1 }
 0x1ba   : > { %v621_v22 = vpop.f32.mrb[3].mxu1 }
 0x228   : > { %v859_v4 = vpop.f32.mrb[4].mxu0 }
 0x229   : > { %v1875_v6 = vpop.f32.mrb[5].mxu0  ;;  %v874_v7 = vsub.f32 %v872_v62, %v859_v4  ;;  %v2908_v24 = vsub.f32 %v859_v4, %v865_v54  ;;  %v2918_v54 = vsub.s32 0, %v2790_v14 }
 0x22a   : > { %v862_v8 = vpop.f32.mrb[6].mxu0 }
 0x22b   : > { %876 = vrot.lane.b32.xlu1 %v874_v7, %s2425_s25  ;;  %v1876_v9 = vpop.f32.mrb[7].mxu0  ;;  %v879_v39 = vsel %vm578_vm1, %v2908_v24, %v2793_v16  ;;  %v551_v55 = vrot.slane %v541_v12, %v2918_v54 }
 0x22d   : > { %v2921_v56 = vadd.f32 %v616_v17, %v551_v55 }
 0x22f   : > { %509 = vperm.xlu1 %2028, %v1773_v10  }
 0x232   : > { %v2906_v23 = vpop.f32.mrb[4].mxu1 }
 0x233   : > { %v1861_v28 = vpop.f32.mrb[5].mxu1 }
 0x234   : > { %v710_v32 = vpop.f32.mrb[6].mxu1 }
 0x235   : > { %v1862_v35 = vpop.f32.mrb[7].mxu1 }
 0x23a   : > { %v940_v43 = vpop.f32.mrb[8].mxu1 }
 0x23b   : > { %v942_v46 = vpop.f32.mrb[9].mxu1  ;;  %v1055_v16 = vrot.slane %v940_v43, %v2918_v54 }
 0x23c   : > { %v944_v47 = vpop.f32.mrb[10].mxu1  ;;  %v1059_v57 = vrot.slane %v942_v46, %v2918_v54 }
 0x23d   : > { %v945_v50 = vpop.f32.mrb[11].mxu1 }
 0x29d   : > { %v877_v37 = vpop.permute.xlu1 %876 }
 0x29e   : > { %v880_v41 = vsel %vm669_vm5, %v879_v39, %v877_v37 }
 0x29f   : > { %v881_v42 = vpack.c.bf16 %v880_v41, %v880_v41 }
 0x2a1   : > { %1808 = vmatmul.mubr.msk.bf16.vlgmr.msra.gmra.mrb[8].mxu0 %vm1007_vm6, %v881_v42 }
 0x2a2   : > { %1899 = vmatprep.mubr.msk.bf16.mxu0 %vm2422_vm0, %v2421_v0 }
 0x2ae   : > { %v2927_v9 = vpop.permute.xlu1 %509 }
 0x374   : > { %v1045_v58 = vpop.f32.mrb[8].mxu0 }
 0x375   : > { %v1046_v59 = vadd.f32 %v1045_v58, %v2921_v56  ;;  %v1047_v60 = vpop.f32.mrb[9].mxu0 }
 0x376   : > { %v1048_v61 = vadd.f32 %v1047_v60, %v2904_v19  ;;  %v1049_v62 = vpop.f32.mrb[10].mxu0 }
 0x377   : > { %v1060_v63 = vadd.f32 %v1055_v16, %v1046_v59  ;;  %v1050_v4 = vpop.f32.mrb[11].mxu0  ;;  %v2938_v62 = vld [vmem:[#allocation7] sm:$0x1] }
 0x378   : > { %v1061_v5 = vadd.f32 %v1059_v57, %v1048_v61 }
 0x379   : > { %v1809_v14 = vmul.f32 -1.442695, %v1060_v63 }
 0x37a   : > { %v1810_v17 = vmul.f32 -1.442695, %v1061_v5 }
 0x37b   : > { %2068 = vpow2.f32 %v1809_v14  ;;  %v708_v14 = vadd.f32 %v2906_v23, %v2938_v62 }
 0x385   : > { %v2069_v6 = vpop.eup %2068 }
 0x386   : > { %v1065_v8 = vadd.f32 1.0, %v2069_v6 }
 0x388   : > { %2070 = vrcp.f32 %v1065_v8  ;;  %v774_v8 = vrot.slane %v708_v14, %v2918_v54 }
 0x392   : > { %v2071_v10 = vpop.eup %2070 }
 0x393   : > { %v1074_v11 = vadd.f32 %v2071_v10, %v2927_v9 }
 0x395   : > { %v1075_v12 = vmul.f32 1.442695, %v1074_v11 }
 0x397   : > { %2072 = vpow2.f32 %v1075_v12 }
 0x398   : > { %2074 = vpow2.f32 %v1810_v17 }
 0x3a1   : > { %v2073_v15 = vpop.eup %2072 }
 0x3a2   : > { %1085 = vrot.lane.b32.xlu1 %v2073_v15, %s2425_s25  ;;  %1081 = vrot.lane.b32.xlu0 %v2073_v15, %s2426_s30  ;;  %v2075_v18 = vpop.eup %2074 }
 0x3a3   : > { %v1071_v20 = vadd.f32 1.0, %v2075_v18 }
 0x3a5   : > { %2076 = vrcp.f32 %v1071_v20 }
 0x3a6   : > { %1089 = vrot.lane.b32.xlu0 %v2073_v15, %s2423_s24 }
 0x3aa   : > { %1114 = vrot.lane.b32.xlu0 %v874_v7, %s2423_s24 }
 0x3af   : > { %v2077_v22 = vpop.eup %2076 }
 0x3b0   : > { %v1077_v28 = vadd.f32 %v2077_v22, %v2927_v9 }
 0x3b2   : > { %v1078_v32 = vmul.f32 1.442695, %v1077_v28 }
 0x3b4   : > { %2078 = vpow2.f32 %v1078_v32  ;;  %v1785_v32 = vmul.f32 -1.442695, %v708_v14 }
 0x3be   : > { %v2079_v46 = vpop.eup %2078 }
 0x414   : > { %v1082_v35 = vpop.permute.xlu0 %1081  ;;  %v1086_v39 = vpop.permute.xlu1 %1085 }
 0x415   : > { %v1084_v37 = vadd.f32 %v2073_v15, %v1082_v35 }
 0x417   : > { %v1088_v41 = vadd.f32 %v1086_v39, %v1084_v37 }
 0x418   : > { %v1090_v42 = vpop.permute.xlu0 %1089 }
 0x419   : > { %v1092_v43 = vadd.f32 %v1090_v42, %v1088_v41 }
 0x41b   : > { %v1093_v47 = vadd.f32 %v2079_v46, %v1092_v43 }
 0x41c   : > { %v1115_v5 = vpop.permute.xlu0 %1114 }
 0x41d   : > { %v1094_v7 = vsel %vm578_vm1, %v1093_v47, 0.0 }
 0x41e   : > { %v1095_v50 = vrot.slane %v1094_v7, 4 }
 0x420   : > { %v1096_v55 = vadd.f32 %v1095_v50, %v1094_v7 }
 0x422   : > { %v1097_v16 = vrot.slane %v1096_v55, 2 }
 0x424   : > { %v1098_v57 = vadd.f32 %v1097_v16, %v1096_v55 }
 0x426   : > { %v1099_v58 = vrot.slane %v1098_v57, 1 }
 0x428   : > { %v1100_v59 = vadd.f32 %v1099_v58, %v1098_v57 }
 0x42a   : > { %v1101_v60 = vmax.f32 %v1100_v59, 1e-30 }
 0x42c   : > { %2080 = vrcp.f32 %v1101_v60 }
 0x436   : > { %v2081_v61 = vpop.eup %2080 }
 0x437   : > { %1110 = vrot.lane.b32.xlu1 %v2081_v61, %s2425_s25 }
 0x43b   : > { %1105 = vrot.lane.b32.xlu1 %v2081_v61, %s2423_s24 }
 0x4a9   : > { %v1111_v63 = vpop.permute.xlu1 %1110 }
 0x4aa   : > { %v1113_v4 = vmul.f32 %v2073_v15, %v1111_v63 }
 0x4ac   : > { %v1117_v6 = vmul.f32 %v1115_v5, %v1113_v4 }
 0x4ad   : > { %v1106_v10 = vpop.permute.xlu1 %1105 }
 0x4ae   : > { %1119 = vrot.lane.b32.xlu0 %v1117_v6, %s2426_s30  ;;  %v1108_v11 = vmul.f32 %v2073_v15, %v1106_v10 }
 0x4b0   : > { %v1109_v12 = vmul.f32 %v1108_v11, %v2908_v24 }
 0x4b2   : > { %776 = vrot.lane.b32.xlu0 %v774_v8, %s2425_s25 }
 0x520   : > { %v1120_v17 = vpop.permute.xlu0 %1119 }
 0x521   : > { %v2946_v18 = vadd.f32 %v1120_v17, %v1109_v12 }
 0x523   : > { %2082 = vtanh.f32 %v2946_v18 }
 0x524   : > { %v777_v20 = vpop.permute.xlu0 %776 }
 0x525   : > { %v779_v28 = vadd.f32 %v777_v20, %v2846_v36 }
 0x527   : > { %v1789_v23 = vmul.f32 -1.442695, %v779_v28 }
 0x529   : > { %2084 = vpow2.f32 %v1789_v23 }
 0x52a   : > { %2086 = vpow2.f32 %v1785_v32 }
 0x52d   : > { %v2083_v35 = vpop.eup %2082 }
 0x52e   : > { %v2950_v37 = vmul.f32 %v2083_v35, %v2077_v22 }
 0x530   : > { %1287 = vrot.lane.b32.xlu1 %v2950_v37, %s2426_s30  ;;  %v1195_v23 = vpack.c.bf16 %v2950_v37, %v2950_v37 }
 0x533   : > { %v2085_v15 = vpop.eup %2084 }
 0x534   : > { %v783_v24 = vadd.f32 1.0, %v2085_v15  ;;  %v2087_v39 = vpop.eup %2086 }
 0x535   : > { %v716_v41 = vadd.f32 1.0, %v2087_v39 }
 0x536   : > { %2088 = vrcp.f32 %v783_v24 }
 0x537   : > { %2090 = vrcp.f32 %v716_v41 }
 0x540   : > { %v2089_v42 = vpop.eup %2088 }
 0x541   : > { %v786_v43 = vadd.f32 %v2089_v42, %v2927_v9  ;;  %v2091_v46 = vpop.eup %2090 }
 0x542   : > { %v789_v47 = vmul.f32 1.442695, %v2091_v46 }
 0x543   : > { %v787_v36 = vmul.f32 1.442695, %v786_v43 }
 0x545   : > { %2092 = vpow2.f32 %v787_v36 }
 0x546   : > { %2094 = vpow2.f32 %v789_v47 }
 0x54f   : > { %v2093_v7 = vpop.eup %2092 }
 0x550   : > { %v791_v22 = vsel %vm578_vm1, %v2093_v7, 0.0  ;;  %v800_v50 = vmul.f32 %v2093_v7, %v2767_v1  ;;  %v2095_v14 = vpop.eup %2094 }
 0x551   : > { %v792_v55 = vrot.slane %v791_v22, 4  ;;  %v799_v1 = vmul.f32 %v2095_v14, %v2786_v13 }
 0x552   : > { %v801_v16 = vsel %vm578_vm1, %v800_v50, 0.0 }
 0x553   : > { %v793_v57 = vadd.f32 %v792_v55, %v791_v22  ;;  %v802_v58 = vrot.slane %v801_v16, 4 }
 0x555   : > { %v794_v59 = vrot.slane %v793_v57, 2  ;;  %v803_v60 = vadd.f32 %v802_v58, %v801_v16 }
 0x557   : > { %v795_v61 = vadd.f32 %v794_v59, %v793_v57  ;;  %v804_v63 = vrot.slane %v803_v60, 2 }
 0x559   : > { %v796_v4 = vrot.slane %v795_v61, 1  ;;  %v805_v6 = vadd.f32 %v804_v63, %v803_v60 }
 0x55b   : > { %v797_v5 = vadd.f32 %v796_v4, %v795_v61  ;;  %v806_v10 = vrot.slane %v805_v6, 1 }
 0x55d   : > { %v798_v8 = vadd.f32 %v2095_v14, %v797_v5  ;;  %v807_v11 = vadd.f32 %v806_v10, %v805_v6 }
 0x55f   : > { %2096 = vrcp.f32 %v798_v8  ;;  %v808_v12 = vadd.f32 %v807_v11, %v799_v1 }
 0x569   : > { %v2097_v17 = vpop.eup %2096 }
 0x56a   : > { %v2959_v20 = vmul.f32 %v2097_v17, %v808_v12 }
 0x56c   : > { %2098 = vtanh.f32 %v2959_v20 }
 0x576   : > { %v2099_v28 = vpop.eup %2098 }
 0x577   : > { %1127 = vrot.lane.b32.xlu1 %v2099_v28, %s2423_s24 }
 0x57b   : > { %1197 = vrot.lane.b32.xlu1 %v1195_v23, %s2426_s30 }
 0x5a2   : > { %v1288_v32 = vpop.permute.xlu1 %1287 }
 0x5a3   : > { %v1290_v35 = vsel %vm578_vm1, %v1288_v32, %v2946_v18 }
 0x5a4   : > { %v2968_v15 = vpack.c.bf16 %v1290_v35, %v1290_v35 }
 0x5a6   : > { %v1293_v13 = vsel %vm821_vm3, %v2968_v15, 0  ;;  %v1335_v39 = vunpack.c.l.bf16 %v2968_v15 }
 0x5a7   : > { %1898 = vmatpush3.bf16.msra.mxu0 %v1293_v13 }
 0x5a8   : > { %1403 = vmatprep.subr.bf16.mxu0 %v2819_v27  ;;  %v1336_v41 = vsel %vm669_vm5, %v1335_v39, 0.0 }
 0x5a9   : > { %v1337_v42 = vrot.slane %v1336_v41, 4 }
 0x5aa   : > { %1900 = vmatmul.mubr.msk.bf16.vlgmr.msra.gmra.mrb[12].mxu0 %vm817_vm4, %v2803_v21 }
 0x5ab   : > { %1404 = vmatpush1.bf16.msra.mxu0 %v2816_v25  ;;  %1435 = vmatprep.mubr.bf16.mxu0 %v2424_v26 }
 0x5ac   : > { %1405 = vmatprep.subr.bf16.mxu0 %v2824_v29  ;;  %v1132_v29 = vsel %vm1131_vm7, %v2950_v37, 0.0 }
 0x5af   : > { %1406 = vmatpush1.bf16.msra.mxu0 %v2829_v30  ;;  %v1133_v30 = vrot.slane %v1132_v29, 4 }
 0x5b0   : > { %1407 = vmatprep.subr.bf16.mxu0 %v2833_v31 }
 0x5b1   : > { %v1134_v31 = vadd.f32 %v1133_v30, %v1132_v29 }
 0x5b3   : > { %1408 = vmatpush1.bf16.msra.mxu0 %v2838_v33  ;;  %v1135_v33 = vrot.slane %v1134_v31, 2 }
 0x5b4   : > { %1409 = vmatprep.subr.bf16.mxu0 %v2842_v34 }
 0x5b5   : > { %v1136_v34 = vadd.f32 %v1135_v33, %v1134_v31 }
 0x5b7   : > { %1410 = vmatpush1.bf16.msra.mxu0 %v2850_v38  ;;  %v1137_v38 = vrot.slane %v1136_v34, 1 }
 0x5b8   : > { %1411 = vmatprep.subr.bf16.mxu0 %v2853_v40 }
 0x5b9   : > { %v1138_v40 = vadd.f32 %v1137_v38, %v1136_v34 }
 0x5bb   : > { %1412 = vmatpush1.bf16.msra.mxu0 %v2857_v44  ;;  %v1139_v44 = vmul.f32 0.125, %v1138_v40 }
 0x5bc   : > { %1413 = vmatprep.subr.bf16.mxu0 %v2860_v45 }
 0x5bf   : > { %1414 = vmatpush1.bf16.msra.mxu0 %v2868_v49 }
 0x5e9   : > { %v1128_v21 = vpop.permute.xlu1 %1127 }
 0x5ea   : > { %v1130_v25 = vmul.f32 %v2091_v46, %v1128_v21 }
 0x5ec   : > { %v1352_v27 = vpack.c.bf16 %v1130_v25, %v1130_v25  ;;  %1141 = vrot.lane.b32.xlu0 %v1130_v25, %s2426_s30 }
 0x5ed   : > { %v1198_v43 = vpop.permute.xlu1 %1197 }
 0x5ee   : > { %1354 = vrot.lane.b32.xlu1 %v1352_v27, %s2426_s30 }
 0x65e   : > { %v1142_v45 = vpop.permute.xlu0 %1141 }
 0x65f   : > { %v1144_v49 = vsel %vm578_vm1, %v1142_v45, %v1139_v44 }
 0x660   : > { %v1145_v24 = vpack.c.bf16 %v1144_v49, %v1144_v49  ;;  %v1355_v46 = vpop.permute.xlu1 %1354 }
 0x662   : > { %1886 = vmatmul.mubr.msk.bf16.vlgmr.msra.gmra.mrb[12].mxu1 %vm669_vm5, %v1145_v24 }
 0x663   : > { %1890 = vmatpush3.bf16.msra.mxu1 %v2771_v2  ;;  %1893 = vmatprep.mubr.msk.bf16.mxu1 %vm2422_vm0, %v2421_v0  ;;  %v1338_v2 = vadd.f32 %v1337_v42, %v1336_v41 }
 0x664   : > { %1891 = vmatprep.subr.bf16.mxu1 %v2421_v0 }
 0x665   : > { %v1339_v36 = vrot.slane %v1338_v2, 2 }
 0x667   : > { %1892 = vmatpush3.bf16.msra.mxu1 %v2773_v3  ;;  %v1340_v3 = vadd.f32 %v1339_v36, %v1338_v2 }
 0x668   : > { %1359 = vmatprep.subr.bf16.mxu1 %v2865_v48 }
 0x669   : > { %v1341_v48 = vrot.slane %v1340_v3, 1 }
 0x66a   : > { %1894 = vmatmul.mubr.msk.bf16.vlgmr.msra.gmra.mrb[16].mxu1 %vm578_vm1, %v1198_v43 }
 0x66b   : > { %1360 = vmatpush1.bf16.msra.mxu1 %v2871_v51  ;;  %1391 = vmatprep.mubr.bf16.mxu1 %v2424_v26  ;;  %v1342_v47 = vadd.f32 %v1341_v48, %v1340_v3 }
 0x66c   : > { %1361 = vmatprep.subr.bf16.mxu1 %v2874_v52 }
 0x66f   : > { %1362 = vmatpush1.bf16.msra.mxu1 %v2880_v53 }
 0x670   : > { %1903 = vmatprep.subr.bf16.mxu1 %v2421_v0 }
 0x672   : > { %1816 = vmatmul.mubr.msk.bf16.vlgmr.msra.gmra.mrb[20].mxu1 %vm578_vm1, %v1355_v46 }
 0x673   : > { %1907 = vmatprep.mubr.msk.bf16.mxu1 %vm2422_vm0, %v2421_v0 }
 0x67d   : > { %v1329_v51 = vpop.f32.mrb[12].mxu0 }
 0x67e   : > { %v1344_v7 = vsub.f32 %v1342_v47, %v1329_v51  ;;  %v1901_v26 = vpop.f32.mrb[13].mxu0  ;;  %v3010_v53 = vsub.f32 %v1329_v51, %v1335_v39 }
 0x67f   : > { %v1332_v22 = vpop.f32.mrb[14].mxu0 }
 0x680   : > { %1346 = vrot.lane.b32.xlu0 %v1344_v7, %s2425_s25  ;;  %v1902_v52 = vpop.f32.mrb[15].mxu0  ;;  %v1349_v50 = vsel %vm578_vm1, %v3010_v53, %v2950_v37 }
 0x6f2   : > { %v1347_v55 = vpop.permute.xlu0 %1346 }
 0x6f3   : > { %v1350_v16 = vsel %vm669_vm5, %v1349_v50, %v1347_v55 }
 0x6f4   : > { %v1351_v57 = vpack.c.bf16 %v1350_v16, %v1350_v16 }
 0x6f6   : > { %1817 = vmatmul.mubr.msk.bf16.vlgmr.msra.gmra.mrb[16].mxu0 %vm1007_vm6, %v1351_v57 }
 0x735   : > { %v1183_v58 = vpop.f32.mrb[12].mxu1 }
 0x736   : > { %v1887_v59 = vpop.f32.mrb[13].mxu1 }
 0x737   : > { %v1186_v60 = vpop.f32.mrb[14].mxu1 }
 0x738   : > { %v1888_v61 = vpop.f32.mrb[15].mxu1 }
 0x73d   : > { %v1236_v63 = vpop.f32.mrb[16].mxu1 }
 0x73e   : > { %v1895_v4 = vpop.f32.mrb[17].mxu1 }
 0x73f   : > { %v1239_v5 = vpop.f32.mrb[18].mxu1 }
 0x740   : > { %v1896_v14 = vpop.f32.mrb[19].mxu1 }
 0x745   : > { %v1393_v6 = vpop.f32.mrb[20].mxu1 }
 0x746   : > { %v1395_v8 = vpop.f32.mrb[21].mxu1  ;;  %v1447_v37 = vrot.slane %v1393_v6, %v2918_v54 }
 0x747   : > { %v1397_v10 = vpop.f32.mrb[22].mxu1  ;;  %v1451_v28 = vrot.slane %v1395_v8, %v2918_v54 }
 0x748   : > { %v1398_v11 = vpop.f32.mrb[23].mxu1 }
 0x7c9   : > { %v1437_v1 = vpop.f32.mrb[16].mxu0 }
 0x7ca   : > { %v1438_v12 = vadd.f32 %v1437_v1, %v2921_v56  ;;  %v1439_v17 = vpop.f32.mrb[17].mxu0  ;;  %v1184_v56 = vadd.f32 %v1183_v58, %v2938_v62 }
 0x7cb   : > { %v1440_v23 = vadd.f32 %v1439_v17, %v2904_v19  ;;  %v1441_v32 = vpop.f32.mrb[18].mxu0 }
 0x7cc   : > { %v1452_v35 = vadd.f32 %v1447_v37, %v1438_v12  ;;  %v1442_v15 = vpop.f32.mrb[19].mxu0  ;;  %v1245_v19 = vrot.slane %v1184_v56, %v2918_v54  ;;  %v1812_v51 = vmul.f32 -1.442695, %v1184_v56 }
 0x7cd   : > { %v1453_v13 = vadd.f32 %v1451_v28, %v1440_v23 }
 0x7ce   : > { %v1818_v21 = vmul.f32 -1.442695, %v1452_v35 }
 0x7cf   : > { %v1819_v62 = vmul.f32 -1.442695, %v1453_v13 }
 0x7d0   : > { %2100 = vpow2.f32 %v1818_v21 }
 0x7da   : > { %v2101_v25 = vpop.eup %2100 }
 0x7db   : > { %v1457_v27 = vadd.f32 1.0, %v2101_v25 }
 0x7dd   : > { %2102 = vrcp.f32 %v1457_v27 }
 0x7e7   : > { %v2103_v29 = vpop.eup %2102 }
 0x7e8   : > { %v1466_v30 = vadd.f32 %v2103_v29, %v2927_v9 }
 0x7ea   : > { %v1467_v31 = vmul.f32 1.442695, %v1466_v30 }
 0x7ec   : > { %2104 = vpow2.f32 %v1467_v31 }
 0x7ed   : > { %2106 = vpow2.f32 %v1819_v62 }
 0x7f6   : > { %v3023_v33 = vpop.eup %2104 }
 0x7f7   : > { %1477 = vrot.lane.b32.xlu1 %v3023_v33, %s2425_s25  ;;  %1473 = vrot.lane.b32.xlu0 %v3023_v33, %s2426_s30  ;;  %v2107_v34 = vpop.eup %2106 }
 0x7f8   : > { %v1463_v38 = vadd.f32 1.0, %v2107_v34 }
 0x7fa   : > { %2108 = vrcp.f32 %v1463_v38 }
 0x7fb   : > { %1247 = vrot.lane.b32.xlu1 %v1245_v19, %s2425_s25  ;;  %1481 = vrot.lane.b32.xlu0 %v3023_v33, %s2423_s24 }
 0x7ff   : > { %1272 = vrot.lane.b32.xlu0 %v2946_v18, %s2426_s30 }
 0x803   : > { %1506 = vrot.lane.b32.xlu0 %v1344_v7, %s2423_s24 }
 0x804   : > { %v3036_v40 = vpop.eup %2108 }
 0x805   : > { %v1469_v44 = vadd.f32 %v3036_v40, %v2927_v9 }
 0x807   : > { %v1470_v45 = vmul.f32 1.442695, %v1469_v44 }
 0x809   : > { %2110 = vpow2.f32 %v1470_v45 }
 0x813   : > { %v2111_v36 = vpop.eup %2110 }
 0x869   : > { %v1478_v49 = vpop.permute.xlu1 %1477  ;;  %v1474_v24 = vpop.permute.xlu0 %1473 }
 0x86a   : > { %v1476_v39 = vadd.f32 %v3023_v33, %v1474_v24 }
 0x86c   : > { %v1480_v41 = vadd.f32 %v1478_v49, %v1476_v39  ;;  %v2066_v49 = vld [vmem:[%s3157_s15] sm:$0xff]  }
 0x86d   : > { %v1248_v18 = vpop.permute.xlu1 %1247  ;;  %v1482_v42 = vpop.permute.xlu0 %1481  ;;  %1904 = vmatpush3.bf16.msra.mxu1 %v2066_v49 }
 0x86e   : > { %v1250_v43 = vadd.f32 %v1248_v18, %v1236_v63  ;;  %v1484_v2 = vadd.f32 %v1482_v42, %v1480_v41  ;;  %1905 = vmatprep.subr.bf16.mxu1 %v2421_v0 }
 0x870   : > { %v1814_v46 = vmul.f32 -1.442695, %v1250_v43  ;;  %v1485_v3 = vadd.f32 %v2111_v36, %v1484_v2 }
 0x871   : > { %v1273_v8 = vpop.permute.xlu0 %1272 }
 0x872   : > { %2112 = vpow2.f32 %v1814_v46  ;;  %v1486_v48 = vsel %vm578_vm1, %v1485_v3, 0.0 }
 0x873   : > { %v1487_v47 = vrot.slane %v1486_v48, 4  ;;  %2114 = vpow2.f32 %v1812_v51 }
 0x875   : > { %v1488_v7 = vadd.f32 %v1487_v47, %v1486_v48  ;;  %v1507_v44 = vpop.permute.xlu0 %1506 }
 0x877   : > { %v1489_v26 = vrot.slane %v1488_v7, 2 }
 0x879   : > { %v1490_v22 = vadd.f32 %v1489_v26, %v1488_v7 }
 0x87b   : > { %v1491_v52 = vrot.slane %v1490_v22, 1 }
 0x87c   : > { %v2113_v50 = vpop.eup %2112 }
 0x87d   : > { %v1254_v55 = vadd.f32 1.0, %v2113_v50  ;;  %v1492_v16 = vadd.f32 %v1491_v52, %v1490_v22  ;;  %v2115_v58 = vpop.eup %2114 }
 0x87e   : > { %v1192_v59 = vadd.f32 1.0, %v2115_v58 }
 0x87f   : > { %2116 = vrcp.f32 %v1254_v55  ;;  %v1493_v57 = vmax.f32 %v1492_v16, 1e-30 }
 0x881   : > { %2118 = vrcp.f32 %v1493_v57 }
 0x882   : > { %2120 = vrcp.f32 %v1192_v59 }
 0x889   : > { %v2117_v60 = vpop.eup %2116 }
 0x88a   : > { %v1257_v61 = vadd.f32 %v2117_v60, %v2927_v9 }
 0x88b   : > { %v2119_v63 = vpop.eup %2118 }
 0x88c   : > { %v1258_v4 = vmul.f32 1.442695, %v1257_v61  ;;  %1502 = vrot.lane.b32.xlu1 %v2119_v63, %s2425_s25  ;;  %v2121_v5 = vpop.eup %2120 }
 0x88d   : > { %v1260_v14 = vmul.f32 1.442695, %v2121_v5 }
 0x88e   : > { %2122 = vpow2.f32 %v1258_v4 }
 0x88f   : > { %2124 = vpow2.f32 %v1260_v14 }
 0x890   : > { %1497 = vrot.lane.b32.xlu1 %v2119_v63, %s2423_s24 }
 0x898   : > { %v2123_v6 = vpop.eup %2122 }
 0x899   : > { %v1262_v10 = vsel %vm578_vm1, %v2123_v6, 0.0  ;;  %v1275_v11 = vmul.f32 %v2123_v6, %v1273_v8  ;;  %v2125_v13 = vpop.eup %2124 }
 0x89a   : > { %v1263_v1 = vrot.slane %v1262_v10, 4  ;;  %v1270_v30 = vmul.f32 %v2125_v13, %v2959_v20  ;;  %v2067_v20 = vld [vmem:[%s3157_s15 + $0x8] sm:$0xff]  }
 0x89b   : > { %v1276_v37 = vsel %vm578_vm1, %v1275_v11, 0.0  ;;  %1906 = vmatpush3.bf16.msra.mxu1 %v2067_v20 }
 0x89c   : > { %v1264_v12 = vadd.f32 %v1263_v1, %v1262_v10  ;;  %v1277_v9 = vrot.slane %v1276_v37, 4 }
 0x89e   : > { %v1265_v17 = vrot.slane %v1264_v12, 2  ;;  %v1278_v28 = vadd.f32 %v1277_v9, %v1276_v37 }
 0x8a0   : > { %v1266_v23 = vadd.f32 %v1265_v17, %v1264_v12  ;;  %v1279_v32 = vrot.slane %v1278_v28, 2 }
 0x8a2   : > { %v1267_v35 = vrot.slane %v1266_v23, 1  ;;  %v1280_v21 = vadd.f32 %v1279_v32, %v1278_v28 }
 0x8a4   : > { %v1268_v15 = vadd.f32 %v1267_v35, %v1266_v23  ;;  %v1281_v27 = vrot.slane %v1280_v21, 1 }
 0x8a6   : > { %v1269_v25 = vadd.f32 %v2125_v13, %v1268_v15  ;;  %v1282_v29 = vadd.f32 %v1281_v27, %v1280_v21 }
 0x8a8   : > { %2126 = vrcp.f32 %v1269_v25  ;;  %v1283_v31 = vadd.f32 %v1282_v29, %v1270_v30 }
 0x8b2   : > { %v2127_v56 = vpop.eup %2126 }
 0x8b3   : > { %v1285_v19 = vmul.f32 %v2127_v56, %v1283_v31 }
 0x8b5   : > { %2128 = vtanh.f32 %v1285_v19 }
 0x8bf   : > { %v2129_v62 = vpop.eup %2128 }
 0x8c0   : > { %1519 = vrot.lane.b32.xlu1 %v2129_v62, %s2423_s24  ;;  %s2336_s24 = scalar_lea.vmem %s2335_s21, 256 }
 0x8fe   : > { %v1503_v34 = vpop.permute.xlu1 %1502 }
 0x8ff   : > { %v1505_v38 = vmul.f32 %v3023_v33, %v1503_v34 }
 0x901   : > { %v1509_v45 = vmul.f32 %v1507_v44, %v1505_v38 }
 0x902   : > { %v1498_v24 = vpop.permute.xlu1 %1497 }
 0x903   : > { %1511 = vrot.lane.b32.xlu0 %v1509_v45, %s2426_s30  ;;  %v1500_v39 = vmul.f32 %v3023_v33, %v1498_v24 }
 0x905   : > { %v1501_v41 = vmul.f32 %v1500_v39, %v3010_v53  ;;  %v1820_v53 = vld [vmem:[%s3158_s22] ss:$0 sm:$0xff] }
 0x932   : > { %v1520_v43 = vpop.permute.xlu1 %1519 }
 0x933   : > { %v1522_v2 = vmul.f32 %v2121_v5, %v1520_v43 }
 0x935   : > { %v1526_v46 = vrot.slane %v1522_v2, %v2918_v54 }
 0x975   : > { %v1512_v18 = vpop.permute.xlu0 %1511 }
 0x976   : > { %v1514_v42 = vadd.f32 %v1512_v18, %v1501_v41 }
 0x978   : > { %2130 = vtanh.f32 %v1514_v42 }
 0x982   : > { %v2131_v36 = vpop.eup %2130 }
 0x983   : > { %v1516_v3 = vmul.f32 %v2131_v36, %v3036_v40 }
 0x985   : > { %v1527_v48 = vadd.f32 %v1526_v46, %v1516_v3 }
 0x987   : > { %v1528_v0 = vpack.c.bf16 %v1527_v48, %v1527_v48 }
 0x989   : > { %1541 = vrot.lane.b32.xlu0 %v1528_v0, %s2426_s30  ;;  %s2330_s30 = scalar_lea.vmem %s3075_s12, 128 }
 0x98a   : > { %p2331_p5 = scmp.ne.s32.totalorder %s3075_s12, %s2330_s30  ;;  %p2338_p13 = scmp.lt.s32.totalorder %s2336_s24, %s2330_s30 }
 0x98c   : > { %p2332_p1 = pnand %p2331_p5, %p3160_p10  ;;  %p2339_p3 = por %p2338_p13, %p2337_p12 }
 0x98e   : > { %p2333_p11 = pneg %p2332_p1 }
 0x990   : > { %p2340_p7 = pnand %p2339_p3, %p2333_p11 }
 0x9fb   : > { %v1542_v33 = vpop.permute.xlu0 %1541 }
 0x9fc   : > { %1908 = vmatmul.mubr.msk.bf16.vlgmr.msra.gmra.mrb[24].mxu1 %vm578_vm1, %v1542_v33 }
 0xacf   : > { %v1592_v54 = vpop.f32.mrb[24].mxu1 }
 0xad0   : > { %v1593_v47 = vadd.f32 %v1820_v53, %v1592_v54  ;;  %v1909_v40 = vpop.f32.mrb[25].mxu1 }
 0xad1   : > { %v1595_v51 = vpop.f32.mrb[26].mxu1 }
 0xad2   : > { %1598 = vst [vmem:[%s497_s29] sm:$0xff] %v1593_v47  ;;  %v1910_v7 = vpop.f32.mrb[27].mxu1 }
 0xad3   : > { %2343 = shalt.err (!%p2340_p7)
}
 0xad4   : > { %s2344_s28 = scalar_lea.hbm %s3073_s9, 128  ;;  %s2348_s13 = scalar_lea.hbm %s3159_s16, 256 }
 0xad5   : > { %p2345_p9 = scmp.ne.s32.totalorder %s3073_s9, %s2344_s28  ;;  %p2349_p0 = scmp.lt.u32.totalorder %s3073_s9, %s3159_s16 }
 0xad6   : > { %p2350_p2 = scmp.lt.u32.totalorder %s2348_s13, %s2344_s28  ;;  %p2352_p5 = scmp.lt.u32.totalorder %s2344_s28, %s3073_s9 }
 0xad7   : > { %p2346_p4 = pnand %p2345_p9, %p3160_p10 }
 0xad8   : > { %p2351_p6 = por %p2350_p2, %p2349_p0 }
 0xad9   : > { %p2347_p8 = pneg %p2346_p4 }
 0xada   : > { %p2353_p1 = por %p2352_p5, %p2351_p6 }
 0xadc   : > { %p2354_p11 = pnand %p2353_p1, %p2347_p8 }
 0xade   : > { %2357 = shalt.err (!%p2354_p11)
}
 0xadf   : > { %1937 = dma.vmem_to_hbm [thread:$0]  (%p3160_p10), %s3075_s12, 128, %s3073_s9, %s1600_s23  }
 0xae0 PF: > { %s1625_s14 = sand.u32 1, %s2396_s17   ;;  %p3161_p12 = scmp.ne.s32.totalorder %s3148_s2, 0 }
 0xae1   : > { %p3162_p13 = scmp.ge.s32.totalorder %s2408_s20, 2  ;;  %s1626_s30 = scalar_lea.sflag [#allocation4], %s1625_s14 }
 0xae3   : > { %p1963_p3 = pnand %p3162_p13, %p3161_p12 }
 0xae5   : > { %2391 = dma.done.wait (!%p1963_p3), %s1626_s30, 128  }
 0xae6   : > { %2393 = vsyncadd (!%p1963_p3), %s1626_s30, 4294967168  ;;  %p27_p7 = scmp.ge.s32.totalorder %s2666_s27, 4   ;;  %s3163_s17 = smov %s2400_s18 }
 0xae7   : > { %s3164_s18 = smov %s2404_s19  ;;  %s3165_s19 = smov %s2677_s11 }
 0xae8   : > { %s3166_s20 = smov %s2666_s27  ;;  %29 = sbr.rel (!%p27_p7) target bundleno = 14 (0xe), region = 136 }
 0xaef   :  { %1631 = vsyncpa [#allocation3], 1 }
 0xaf0   :  { %1633 = vsyncpa [#allocation3 + $0x1], 1 }
 0xaf1   :  { %1634 = vsyncpa [#allocation6], 1 }
 0xaf2   :  { %1635 = vsyncpa [#allocation9], 1 }
 0xaf3   :  { %1636 = vsyncpa [#allocation12], 1 }
 0xaf4   :  { %1637 = vsyncpa [#allocation4], 1 }
 0xaf5   :  { %1639 = vsyncpa [#allocation4 + $0x1], 1 }

// kernel: tpu_custom_call.1
= control target key start
LH: loop header
LB: loop body
LE: loop exit
PB: predicated region body
PF: predicated region fallthrough
CT: control target
= control target key end

     0   :  { %s3117_s0 = inlined_call_operand.hbm [shape: f32[2,8,32], index: 0, kind: input, shape index: {}]   ;;  %s3118_s1 = inlined_call_operand.vmem [shape: f32[2,8,1], index: 1, kind: input, shape index: {}]   ;;  %s3119_s2 = inlined_call_operand.hbm [shape: bf16[64,96], index: 2, kind: input, shape index: {}]   ;;  %s3120_s3 = inlined_call_operand.hbm [shape: f32[1,96], index: 3, kind: input, shape index: {}]   ;;  %s3121_s4 = inlined_call_operand.hbm [shape: bf16[32,32], index: 4, kind: input, shape index: {}]   ;;  %s3122_s5 = inlined_call_operand.hbm [shape: bf16[96,256], index: 5, kind: input, shape index: {}]   ;;  %s3123_s6 = inlined_call_operand.vmem [shape: bf16[32,256], index: 6, kind: input, shape index: {}]   ;;  %s3124_s7 = inlined_call_operand.hbm [shape: bf16[32,256], index: 7, kind: input, shape index: {}]   ;;  %s3125_s8 = inlined_call_operand.hbm [shape: f32[1,256], index: 8, kind: input, shape index: {}]   ;;  %s3126_s9 = inlined_call_operand.vmem [shape: bf16[32,128], index: 9, kind: input, shape index: {}]   ;;  %s3127_s10 = inlined_call_operand.vmem [shape: f32[1,128], index: 10, kind: input, shape index: {}]   ;;  %s3128_s11 = inlined_call_operand.hbm [shape: f32[2,8,128], index: 11, kind: output, shape index: {}]  }
   0x1   :  { %3134 = sst [smem:[#allocation20_spill]] %s3119_s2 }
   0x2   :  { %3135 = sst [smem:[#allocation21_spill]] %s3121_s4 }
   0x3   :  { %3136 = sst [smem:[#allocation22_spill]] %s3126_s9 }
   0x4   :  { %3137 = sst [smem:[#allocation23_spill]] %s3127_s10 }
   0x5   :  { %3138 = sst [smem:[#allocation24_spill]] %s3128_s11 }
   0x6   :  { %16 = vsyncpa [#allocation3], 0 }
   0x7   :  { %18 = vsyncpa [#allocation3 + $0x1], 0 }
   0x8   :  { %19 = vsyncpa [#allocation6], 0 }
   0x9   :  { %20 = vsyncpa [#allocation9], 0 }
   0xa   :  { %21 = vsyncpa [#allocation12], 0 }
   0xb   :  { %22 = vsyncpa [#allocation4], 0 }
   0xc   :  { %24 = vsyncpa [#allocation4 + $0x1], 0  ;;  %s2488_s17 = smov 0   ;;  %s2490_s18 = smov 0  }
   0xd   :  { %s2492_s19 = smov 0   ;;  %s2494_s20 = smov 0  }
   0xe LB: > { %s2410_s21 = smov [#allocation5]   ;;  %s2509_s23 = sadd.s32 4294967295, %s2408_s20   ;;  %s2408_s20 = sphi %s2494_s20, %s3166_s20   ;;  %s2404_s19 = sphi %s2492_s19, %s3165_s19   ;;  %s2400_s18 = sphi %s2490_s18, %s3164_s18   ;;  %s2396_s17 = sphi %s2488_s17, %s3163_s17  }
   0xf   : > { %s314_s22 = sshll.u32 %s2410_s21, 4  ;;  %p1753_p0 = scmp.ge.s32.totalorder %s2408_s20, 1  ;;  %s2514_s22 = int_to_ptr.vmem [resolvable:$true] %s314_s22 }
  0x10   : > { %p3131_p1 = scmp.eq.s32.totalorder %s2509_s23, 0  ;;  %p302_p2 = scmp.lt.s32.totalorder %s2408_s20, 3 }
  0x11   : > { %s2411_s25 = smov [#allocation8]   ;;  %s2412_s28 = smov [#allocation11]  }
  0x12   : > { %p2516_p3 = pnand %p1753_p0, %p302_p2  ;;  %s338_s26 = sshll.u32 %s2411_s25, 4  ;;  %s2529_s26 = int_to_ptr.vmem [resolvable:$true] %s338_s26 }
  0x13   : > { %s2531_s29 = sshll.u32 %s2412_s28, 4  ;;  %s3141_s2 = sld [smem:[#allocation20_spill]]  ;;  %s368_s29 = int_to_ptr.vmem [resolvable:$true] %s2531_s29 }
  0x14   : > { %s3139_s24 = scalar_select %p2516_p3, 1, 0 }
  0x15   : > { %p1939_p5 = pneg %p2516_p3 }
  0x17   : > { %p2525_p6 = pnand %p1939_p5, %p3131_p1 }
  0x19   : > { %s2132_s13 = scalar_lea.hbm %s3141_s2, 512  ;;  %p2541_p8 = pneg %p2525_p6 }
  0x1a   : > { %p2133_p7 = scmp.ne.s32.totalorder %s3141_s2, %s2132_s13  ;;  %p2139_p11 = scmp.lt.u32.totalorder %s2132_s13, %s3141_s2 }
  0x1c   : > { %p2135_p9 = pnand %p2541_p8, %p2133_p7 }
  0x1e   : > { %p2136_p10 = pneg %p2135_p9 }
  0x20   : > { %p2141_p12 = pnand %p2139_p11, %p2136_p10 }
  0x22   : > { %2144 = shalt.err (!%p2141_p12)
}
  0x23   : > { %s2145_s28 = scalar_lea.vmem %s2514_s22, 512  ;;  %p2153_p5 = scmp.lt.s32.totalorder %s2514_s22, %s2514_s22 }
  0x24   : > { %p2146_p13 = scmp.ne.s32.totalorder %s2514_s22, %s2145_s28  ;;  %p2154_p4 = scmp.lt.s32.totalorder %s2145_s28, %s2145_s28 }
  0x26   : > { %p2148_p0 = pnand %p2146_p13, %p2541_p8  ;;  %p2155_p7 = por %p2154_p4, %p2153_p5 }
  0x28   : > { %p2149_p2 = pneg %p2148_p0 }
  0x2a   : > { %p2156_p9 = pnand %p2155_p7, %p2149_p2 }
  0x2c   : > { %2159 = shalt.err (!%p2156_p9)
}
  0x2d   : > { %s2413_s30 = smov 64   ;;  %s2414_s12 = smov 4  }
  0x2e   : > { %1942 = dma.hbm_to_vmem [thread:$0]  (!%p2525_p6), %s3141_s2, 512, %s2514_s22, [#allocation6], %s2413_s30, %s2413_s30, %s2414_s12  }
  0x2f   : > { %s3143_s4 = sld [smem:[#allocation21_spill]] }
  0x35   : > { %s2160_s25 = scalar_lea.hbm %s3143_s4, 256 }
  0x36   : > { %p2161_p4 = scmp.ne.s32.totalorder %s3143_s4, %s2160_s25  ;;  %p2167_p12 = scmp.lt.u32.totalorder %s2160_s25, %s3143_s4 }
  0x38   : > { %p2163_p10 = pnand %p2161_p4, %p2541_p8 }
  0x3a   : > { %p2164_p11 = pneg %p2163_p10 }
  0x3c   : > { %p2169_p13 = pnand %p2167_p12, %p2164_p11 }
  0x3e   : > { %2172 = shalt.err (!%p2169_p13)
}
  0x3f   : > { %s2173_s22 = scalar_lea.vmem %s2529_s26, 256  ;;  %p2181_p7 = scmp.lt.s32.totalorder %s2529_s26, %s2529_s26 }
  0x40   : > { %p2174_p0 = scmp.ne.s32.totalorder %s2529_s26, %s2173_s22  ;;  %p2182_p9 = scmp.lt.s32.totalorder %s2173_s22, %s2173_s22 }
  0x42   : > { %p2176_p2 = pnand %p2174_p0, %p2541_p8  ;;  %p2183_p4 = por %p2182_p9, %p2181_p7 }
  0x44   : > { %p2177_p5 = pneg %p2176_p2 }
  0x46   : > { %p2184_p10 = pnand %p2183_p4, %p2177_p5 }
  0x48   : > { %2187 = shalt.err (!%p2184_p10)
}
  0x49   : > { %1948 = dma.hbm_to_vmem [thread:$0]  (!%p2525_p6), %s3143_s4, 256, %s2529_s26, [#allocation9], %s2413_s30, %s2413_s30, %s2414_s12  }
  0x4a   : > { %s2188_s14 = scalar_lea.hbm %s3124_s7, 512 }
  0x4b   : > { %p2189_p11 = scmp.ne.s32.totalorder %s3124_s7, %s2188_s14  ;;  %p2195_p0 = scmp.lt.u32.totalorder %s2188_s14, %s3124_s7 }
  0x4d   : > { %p2191_p12 = pnand %p2189_p11, %p2541_p8 }
  0x4f   : > { %p2192_p13 = pneg %p2191_p12 }
  0x51   : > { %p2197_p2 = pnand %p2195_p0, %p2192_p13 }
  0x53   : > { %2200 = shalt.err (!%p2197_p2)
}
  0x54   : > { %s2201_s22 = scalar_lea.vmem %s368_s29, 512  ;;  %p2209_p4 = scmp.lt.s32.totalorder %s368_s29, %s368_s29 }
  0x55   : > { %p2202_p5 = scmp.ne.s32.totalorder %s368_s29, %s2201_s22  ;;  %p2210_p10 = scmp.lt.s32.totalorder %s2201_s22, %s2201_s22 }
  0x57   : > { %p2204_p7 = pnand %p2202_p5, %p2541_p8  ;;  %p2211_p1 = por %p2210_p10, %p2209_p4 }
  0x59   : > { %p2205_p9 = pneg %p2204_p7 }
  0x5b   : > { %p2212_p3 = pnand %p2211_p1, %p2205_p9 }
  0x5d   : > { %2215 = shalt.err (!%p2212_p3)
}
  0x5e   : > { %s2415_s26 = smov 128   ;;  %s2416_s30 = smov 8  }
  0x5f   : > { %1954 = dma.hbm_to_vmem [thread:$0]  (!%p2525_p6), %s3124_s7, 512, %s368_s29, [#allocation12], %s2415_s26, %s2415_s26, %s2416_s30  }
  0x60   : > { %s2417_s10 = smov [#allocation7]   ;;  %s2418_s13 = smov [#allocation10]  }
  0x61   : > { %s328_s11 = sshll.u32 %s2417_s10, 4  ;;  %s351_s14 = sshll.u32 %s2418_s13, 4  ;;  %s329_s11 = int_to_ptr.vmem [resolvable:$true] %s328_s11  ;;  %s352_s14 = int_to_ptr.vmem [resolvable:$true] %s351_s14 }
  0x62   : > { %s2216_s25 = scalar_lea.hbm %s3120_s3, 16 }
  0x63   : > { %p2217_p1 = scmp.ne.s32.totalorder %s3120_s3, %s2216_s25  ;;  %p2223_p12 = scmp.lt.u32.totalorder %s2216_s25, %s3120_s3 }
  0x65   : > { %p2219_p3 = pnand %p2217_p1, %p2541_p8 }
  0x67   : > { %p2220_p11 = pneg %p2219_p3 }
  0x69   : > { %p2225_p13 = pnand %p2223_p12, %p2220_p11 }
  0x6b   : > { %2228 = shalt.err (!%p2225_p13)
}
  0x6c   : > { %s2229_s29 = scalar_lea.vmem %s329_s11, 16  ;;  %s2236_s12 = scalar_lea.vmem %s329_s11, 32 }
  0x6d   : > { %p2230_p0 = scmp.ne.s32.totalorder %s329_s11, %s2229_s29  ;;  %p2237_p7 = scmp.lt.s32.totalorder %s329_s11, %s329_s11 }
  0x6e   : > { %p2238_p9 = scmp.lt.s32.totalorder %s2236_s12, %s2229_s29 }
  0x6f   : > { %p2232_p2 = pnand %p2230_p0, %p2541_p8 }
  0x70   : > { %p2239_p4 = por %p2238_p9, %p2237_p7 }
  0x71   : > { %p2233_p5 = pneg %p2232_p2 }
  0x73   : > { %p2240_p10 = pnand %p2239_p4, %p2233_p5 }
  0x75   : > { %2243 = shalt.err (!%p2240_p10)
}
  0x76   : > { %1945 = dma.hbm_to_vmem [thread:$0]  (!%p2525_p6), %s3120_s3, 16, %s329_s11, [#allocation6]  }
  0x77   : > { %s2244_s13 = scalar_lea.hbm %s3122_s5, 1536 }
  0x78   : > { %p2245_p1 = scmp.ne.s32.totalorder %s3122_s5, %s2244_s13  ;;  %p2251_p12 = scmp.lt.u32.totalorder %s2244_s13, %s3122_s5 }
  0x7a   : > { %p2247_p3 = pnand %p2245_p1, %p2541_p8 }
  0x7c   : > { %p2248_p11 = pneg %p2247_p3 }
  0x7e   : > { %p2253_p13 = pnand %p2251_p12, %p2248_p11 }
  0x80   : > { %2256 = shalt.err (!%p2253_p13)
}
  0x81   : > { %s2257_s22 = scalar_lea.vmem %s352_s14, 1536  ;;  %p2265_p7 = scmp.lt.s32.totalorder %s352_s14, %s352_s14 }
  0x82   : > { %p2258_p0 = scmp.ne.s32.totalorder %s352_s14, %s2257_s22  ;;  %p2266_p9 = scmp.lt.s32.totalorder %s2257_s22, %s2257_s22 }
  0x84   : > { %p2260_p2 = pnand %p2258_p0, %p2541_p8  ;;  %p2267_p4 = por %p2266_p9, %p2265_p7 }
  0x86   : > { %p2261_p5 = pneg %p2260_p2 }
  0x88   : > { %p2268_p10 = pnand %p2267_p4, %p2261_p5 }
  0x8a   : > { %2271 = shalt.err (!%p2268_p10)
}
  0x8b   : > { %1951 = dma.hbm_to_vmem [thread:$0]  (!%p2525_p6), %s3122_s5, 1536, %s352_s14, [#allocation9], %s2415_s26, %s2415_s26, %s2416_s30  }
  0x8c   : > { %s2419_s12 = smov [#allocation13]   ;;  %s2272_s4 = scalar_lea.hbm %s3125_s8, 32 }
  0x8d   : > { %s381_s9 = sshll.u32 %s2419_s12, 4  ;;  %p2273_p1 = scmp.ne.s32.totalorder %s3125_s8, %s2272_s4  ;;  %s382_s9 = int_to_ptr.vmem [resolvable:$true] %s381_s9 }
  0x8e   : > { %p2279_p12 = scmp.lt.u32.totalorder %s2272_s4, %s3125_s8 }
  0x8f   : > { %p2275_p3 = pnand %p2273_p1, %p2541_p8 }
  0x91   : > { %p2276_p11 = pneg %p2275_p3 }
  0x93   : > { %p2281_p13 = pnand %p2279_p12, %p2276_p11 }
  0x95   : > { %2284 = shalt.err (!%p2281_p13)
}
  0x96   : > { %s2285_s26 = scalar_lea.vmem %s382_s9, 32  ;;  %p2293_p7 = scmp.lt.s32.totalorder %s382_s9, %s382_s9 }
  0x97   : > { %p2286_p0 = scmp.ne.s32.totalorder %s382_s9, %s2285_s26  ;;  %p2294_p9 = scmp.lt.s32.totalorder %s2285_s26, %s2285_s26 }
  0x99   : > { %p2288_p2 = pnand %p2286_p0, %p2541_p8  ;;  %p2295_p4 = por %p2294_p9, %p2293_p7 }
  0x9b   : > { %p2289_p5 = pneg %p2288_p2 }
  0x9d   : > { %p2296_p10 = pnand %p2295_p4, %p2289_p5 }
  0x9f   : > { %2299 = shalt.err (!%p2296_p10)
}
  0xa0   : > { %1957 = dma.hbm_to_vmem [thread:$0]  (!%p2525_p6), %s3125_s8, 32, %s382_s9, [#allocation12]  }
  0xa1   : > { %s1752_s16 = sadd.s32 4294967294, %s2408_s20   ;;  %s2666_s27 = sadd.s32 1, %s2408_s20  }
  0xa2   : > { %s34_s28 = ssub.s32 %s2408_s20, %s2666_s27  ;;  %s37_s22 = sadd.s32 1, %s2404_s19 }
  0xa3   : > { %p35_p8 = scmp.eq.s32.totalorder %s34_s28, 0  ;;  %p44_p1 = scmp.ne.s32.totalorder %s2404_s19, %s2400_s18 }
  0xa4   : > { %p45_p3 = scmp.eq.s32.totalorder %s2408_s20, 0  ;;  %p50_p11 = scmp.ne.s32.totalorder %s2400_s18, %s2396_s17 }
  0xa5   : > { %s2677_s11 = scalar_select %p35_p8, %s2404_s19, %s37_s22  }
  0xa6   : > { %p2679_p12 = por %p45_p3, %p44_p1  ;;  %p3145_p13 = scmp.eq.s32.totalorder %s2509_s23, 0 }
  0xa7   : > { %p289_p0 = scmp.eq.s32.totalorder %s2509_s23, 1  ;;  %p295_p2 = scmp.eq.s32.totalorder %s1752_s16, 1 }
  0xa8   : > { %p2685_p6 = por %p3145_p13, %p50_p11  ;;  %p1972_p5 = scmp.lt.s32.totalorder %s2408_s20, 2 }
  0xa9   : > { %s398_s9 = sand.u32 1, %s2404_s19   ;;  %p2692_p7 = por %p289_p0, %p44_p1 }
  0xaa   : > { %p2696_p9 = por %p295_p2, %p50_p11  ;;  %s1761_s4 = sshll.u32 %s398_s9, 3 }
  0xab   : > { %s3147_s10 = scalar_select %p2692_p7, 1, 0 }
  0xac   : > { %s3148_s2 = scalar_select %p2696_p9, 1, 0 }
  0xad   : > { %s1762_s13 = sshll.u32 %s2408_s20, 7  ;;  %s402_s26 = scalar_lea.vmem [#allocation2], %s1761_s4 }
  0xae   : > { %s2704_s25 = scalar_lea.hbm %s3117_s0, %s1762_s13  ;;  %s409_s30 = sshll.u32 %s402_s26, 4  ;;  %s2706_s30 = int_to_ptr.vmem [resolvable:$true] %s409_s30 }
  0xaf   : > { %p2710_p4 = pnand %p1972_p5, %p2679_p12  ;;  %s399_s16 = scalar_lea.sflag [#allocation3], %s398_s9 }
  0xb0   : > { %s2300_s28 = scalar_lea.hbm %s2704_s25, 128  ;;  %s2305_s13 = scalar_lea.hbm %s3117_s0, 256 }
  0xb1   : > { %p2301_p10 = scmp.ne.s32.totalorder %s2704_s25, %s2300_s28  ;;  %p2302_p8 = pneg %p2710_p4 }
  0xb2   : > { %p2306_p11 = scmp.lt.u32.totalorder %s2704_s25, %s3117_s0  ;;  %p2307_p12 = scmp.lt.u32.totalorder %s2305_s13, %s2300_s28 }
  0xb3   : > { %p2303_p1 = pnand %p2302_p8, %p2301_p10  ;;  %p2309_p0 = scmp.lt.u32.totalorder %s2300_s28, %s2704_s25 }
  0xb4   : > { %p2308_p13 = por %p2307_p12, %p2306_p11 }
  0xb5   : > { %p2304_p3 = pneg %p2303_p1 }
  0xb6   : > { %p2310_p2 = por %p2309_p0, %p2308_p13 }
  0xb8   : > { %p2311_p5 = pnand %p2310_p2, %p2304_p3 }
  0xba   : > { %2314 = shalt.err (!%p2311_p5)
}
  0xbb   : > { %s2315_s9 = scalar_lea.vmem %s2706_s30, 128  ;;  %s2420_s21 = smov [#allocation2]  }
  0xbc   : > { %p2316_p10 = scmp.ne.s32.totalorder %s2706_s30, %s2315_s9  ;;  %s2320_s26 = sshll.u32 %s2420_s21, 4  ;;  %s2321_s26 = int_to_ptr.vmem [resolvable:$false] %s2320_s26 }
  0xbd   : > { %s2322_s22 = scalar_lea.vmem %s2321_s26, 256  ;;  %p2323_p7 = scmp.lt.s32.totalorder %s2706_s30, %s2321_s26 }
  0xbe   : > { %p2318_p1 = pnand %p2316_p10, %p2302_p8  ;;  %p2324_p11 = scmp.lt.s32.totalorder %s2322_s22, %s2315_s9 }
  0xc0   : > { %p2319_p9 = pneg %p2318_p1  ;;  %p2325_p12 = por %p2324_p11, %p2323_p7 }
  0xc2   : > { %p2326_p13 = pnand %p2325_p12, %p2319_p9 }
  0xc4   : > { %2329 = shalt.err (!%p2326_p13)
}
  0xc5   : > { %1961 = dma.hbm_to_vmem [thread:$0]  (!%p2710_p4), %s2704_s25, 128, %s2706_s30, %s399_s16  }
  0xc6   : > { %p3150_p3 = scmp.ne.s32.totalorder %s3139_s24, 0 }
  0xc7   : > { %s2742_s28 = sand.u32 (!%p3150_p3), 1, %s2400_s18  }
  0xc8   : > { %425 = sbr.rel (%p3150_p3) target bundleno = 2784 (0xae0), region = 64  ;;  %s1764_s4 = sshll.u32 (!%p3150_p3), %s2742_s28, 3 }
  0xc9   : > { %s428_s13 = scalar_lea.sflag (!%p3150_p3), [#allocation3], %s2742_s28  ;;  %s431_s29 = scalar_lea.vmem (!%p3150_p3), [#allocation2], %s1764_s4 }
  0xcf   : > { %2375 = dma.done.wait (%p2685_p6), %s428_s13, 128  }
  0xd0   : > { %2377 = vsyncadd (%p2685_p6), %s428_s13, 4294967168  ;;  %p3151_p7 = scmp.eq.s32.totalorder %s2509_s23, 0 }
  0xd2   : > { %2379 = dma.done.wait (%p3151_p7), [#allocation6], 528   ;;  %p3152_p9 = pmov %p3151_p7 }
  0xd3   : > { %p3153_p4 = pmov %p3151_p7 }
  0xd4   : > { %2381 = vsyncadd (%p3152_p9), [#allocation6], 4294966768 }
  0xd5   : > { %2383 = dma.done.wait (%p3153_p4), [#allocation9], 1792   ;;  %p3154_p8 = pmov %p3153_p4 }
  0xd6   : > { %p3155_p0 = pmov %p3153_p4 }
  0xd7   : > { %2385 = vsyncadd (%p3154_p8), [#allocation9], 4294965504 }
  0xd8   : > { %2387 = dma.done.wait (%p3155_p0), [#allocation12], 544   ;;  %p3156_p2 = pmov %p3155_p0 }
  0xd9   : > { %v2421_v0 = vmov 0.0   ;;  %vm2422_vm0 = vmmov 0   ;;  %v2767_v1 = vld [vmem:[%s431_s29] sm:$0xff]  ;;  %s2423_s24 = smov 32   ;;  %v2771_v2 = vld [vmem:[#allocation8] sm:$0xff]   ;;  %vm578_vm1 = vcmask 261120   ;;  %v548_v12 = vlaneseq }
  0xda   : > { %2389 = vsyncadd (%p3156_p2), [#allocation12], 4294966752  ;;  %1863 = vmatprep.subr.bf16.mxu0 %v2421_v0  ;;  %1867 = vmatprep.mubr.msk.bf16.mxu0 %vm2422_vm0, %v2421_v0  ;;  %v2773_v3 = vld [vmem:[#allocation8 + $0x8] sm:$0xff]   ;;  %v542_v4 = vpack.c.bf16 %v2767_v1, %v2767_v1  ;;  %v631_v5 = vsel %vm578_vm1, %v2767_v1, 0.0  ;;  %vm821_vm3 = vcmask 1043456   ;;  %vm817_vm4 = vcmask 64512  }
  0xdb   : > { %812 = vrot.lane.b32.xlu0 %v2767_v1, %s2423_s24  ;;  %1864 = vmatpush3.bf16.msra.mxu0 %v2771_v2  ;;  %v632_v6 = vrot.slane %v631_v5, 4  ;;  %v2790_v14 = vshrl.u32 %v548_v12, 7  ;;  %v626_v15 = vand.u32 127, %v548_v12  ;;  %v2032_v22 = vld [vmem:[%s3123_s6 + $0x4] ss:$8 sps:$4 sm:$0xff]   ;;  %v2424_v26 = vmov 0  }
  0xdc   : > { %1865 = vmatprep.subr.bf16.mxu0 %v2421_v0  ;;  %v2034_v23 = vld [vmem:[%s3123_s6] ss:$8 sps:$4 sm:$0xff]   ;;  %v2035_v24 = vld [vmem:[%s3123_s6 + $0x14] ss:$8 sps:$4 sm:$0xff]   ;;  %582 = vmatprep.subr.bf16.mxu1 %v2032_v22  ;;  %v2037_v28 = vld [vmem:[%s3123_s6 + $0x10] ss:$8 sps:$4 sm:$0xff]  }
  0xdd   : > { %v633_v7 = vadd.f32 %v632_v6, %v631_v5  ;;  %vm627_vm2 = vcmp.le.s32.totalorder %v626_v15, %v2790_v14  ;;  %v2816_v25 = vld [vmem:[#allocation10] ss:$8 sps:$4 sm:$0xff]   ;;  %614 = vmatprep.mubr.bf16.mxu1 %v2424_v26  ;;  %v2819_v27 = vld [vmem:[#allocation10 + $0x4] ss:$8 sps:$4 sm:$0xff]   ;;  %583 = vmatpush1.bf16.msra.mxu1 %v2034_v23  ;;  %v2824_v29 = vld [vmem:[#allocation10 + $0x14] ss:$8 sps:$4 sm:$0xff]  }
  0xde   : > { %v1779_v18 = vsel %vm627_vm2, 1.0, %v2421_v0  ;;  %584 = vmatprep.subr.bf16.mxu1 %v2035_v24  ;;  %v2829_v30 = vld [vmem:[#allocation10 + $0x10] ss:$8 sps:$4 sm:$0xff]   ;;  %2028 = vset.pattern.permute.xlu1 %v2424_v26  ;;  %v2833_v31 = vld [vmem:[#allocation10 + $0x24] ss:$8 sps:$4 sm:$0xff]   ;;  %vm669_vm5 = vcmask 523264  }
  0xdf   : > { %1866 = vmatpush3.bf16.msra.mxu0 %v2773_v3  ;;  %v634_v8 = vrot.slane %v633_v7, 2  ;;  %v2803_v21 = vpack.c.bf16 %v1779_v18, %v1779_v18  ;;  %2029 = vset.pattern.permute.xlu0 %v2424_v26  ;;  %v2038_v32 = vld [vmem:[#allocation5] sm:$0xff]   ;;  %v2838_v33 = vld [vmem:[#allocation10 + $0x20] ss:$8 sps:$4 sm:$0xff]   ;;  %v2042_v35 = vld [vmem:[#allocation5 + $0x8] sm:$0xff]   ;;  %p498_p6 = scmp.lt.s32.totalorder %s2509_s23, 1 }
  0xe0   : > { %1871 = vmatprep.subr.bf16.mxu0 %v2421_v0  ;;  %v2842_v34 = vld [vmem:[#allocation10 + $0x34] ss:$8 sps:$4 sm:$0xff]   ;;  %v2850_v38 = vld [vmem:[#allocation10 + $0x30] ss:$8 sps:$4 sm:$0xff]   ;;  %v2853_v40 = vld [vmem:[#allocation10 + $0x44] ss:$8 sps:$4 sm:$0xff]  }
  0xe1   : > { %v635_v9 = vadd.f32 %v634_v8, %v633_v7  ;;  %585 = vmatpush1.bf16.msra.mxu1 %v2037_v28  ;;  %v2046_v42 = vld [vmem:[#allocation5 + $0x10] sm:$0xff]   ;;  %v2050_v47 = vld [vmem:[#allocation5 + $0x18] sm:$0xff]   ;;  %v2868_v49 = vld [vmem:[#allocation10 + $0x50] ss:$8 sps:$4 sm:$0xff]   ;;  %s499_s26 = scalar_select %p498_p6, %s2509_s23, 1  ;;  %vm1007_vm6 = vcmask 785408  }
  0xe2   : > { %1868 = vmatmul.mubr.msk.bf16.vlgmr.msra.gmra.mrb[0].mxu0 %vm578_vm1, %v542_v4  ;;  %1851 = vmatprep.subr.bf16.mxu1 %v2421_v0  ;;  %v2857_v44 = vld [vmem:[#allocation10 + $0x40] ss:$8 sps:$4 sm:$0xff]   ;;  %v2860_v45 = vld [vmem:[#allocation10 + $0x54] ss:$8 sps:$4 sm:$0xff]   ;;  %v2865_v48 = vld [vmem:[#allocation11 + $0x4] ss:$8 sps:$4 sm:$0xff]  }
  0xe3   : > { %1873 = vmatprep.mubr.msk.bf16.mxu0 %vm2422_vm0, %v2421_v0  ;;  %v636_v10 = vrot.slane %v635_v9, 1  ;;  %v2871_v51 = vld [vmem:[#allocation11] ss:$8 sps:$4 sm:$0xff]   ;;  %v2874_v52 = vld [vmem:[#allocation11 + $0x14] ss:$8 sps:$4 sm:$0xff]   ;;  %s1772_s22 = sshll.u32 %s499_s26, 3 }
  0xe4   : > { %1778 = vmatmul.mubr.msk.bf16.vlgmr.msra.gmra.mrb[0].mxu1 %vm578_vm1, %v542_v4  ;;  %v2880_v53 = vld [vmem:[#allocation11 + $0x10] ss:$8 sps:$4 sm:$0xff]   ;;  %s501_s12 = scalar_lea.vmem %s3118_s1, %s1772_s22  ;;  %s2425_s25 = smov 64   ;;  %v541_v12 = vld [vmem:[#allocation13] sm:$0x3]  ;;  %vm1131_vm7 = vcmask 523520  }
  0xe5   : > { %v637_v11 = vadd.f32 %v636_v10, %v635_v9  ;;  %1852 = vmatpush3.bf16.msra.mxu1 %v2038_v32  ;;  %1859 = vmatprep.mubr.msk.bf16.mxu1 %vm2422_vm0, %v2421_v0  ;;  %v504_v63 = vld [vmem:[%s501_s12] sm:$0xff]  ;;  %s2426_s30 = smov 96   ;;  %s3157_s15 = sld [smem:[#allocation22_spill]] }
  0xe6   : > { %1853 = vmatprep.subr.bf16.mxu1 %v2421_v0  ;;  %v505_v5 = vmul.f32 1e+25, %v504_v63  ;;  %s3158_s22 = sld [smem:[#allocation23_spill]]  ;;  %s1825_s13 = sshll.u32 %s2509_s23, 7 }
  0xe7   : > { %v2786_v13 = vmul.f32 0.125, %v637_v11  ;;  %v554_v11 = vsub.s32 1, %v2790_v14  ;;  %s497_s29 = scalar_lea.vmem [#allocation14], %s1764_s4  ;;  %s3159_s16 = sld [smem:[#allocation24_spill]] }
  0xe8   : > { %v1773_v10 = vadd.f32 -1e+25, %v505_v5  ;;  %s1613_s12 = sshll.u32 %s497_s29, 4  ;;  %s1600_s23 = scalar_lea.sflag [#allocation4], %s2742_s28  ;;  %s3075_s12 = int_to_ptr.vmem [resolvable:$true] %s1613_s12 }
  0xe9   : > { %640 = vrot.lane.b32.xlu0 %v2786_v13, %s2423_s24  ;;  %1854 = vmatpush3.bf16.msra.mxu1 %v2042_v35  ;;  %v882_v59 = vpack.c.bf16 %v2786_v13, %v2786_v13  ;;  %v555_v15 = vrot.slane %v541_v12, %v554_v11  ;;  %p3160_p10 = scmp.ne.s32.totalorder %s3147_s10, 0  ;;  %s2427_s4 = smov [#allocation14]  }
  0xea   : > { %1855 = vmatprep.subr.bf16.mxu1 %v2421_v0  ;;  %s2334_s21 = sshll.u32 %s2427_s4, 4  ;;  %s2335_s21 = int_to_ptr.vmem [resolvable:$false] %s2334_s21 }
  0xeb   : > { %p2337_p12 = scmp.lt.s32.totalorder %s3075_s12, %s2335_s21 }
  0xed   : > { %1856 = vmatpush3.bf16.msra.mxu1 %v2046_v42  ;;  %s3073_s9 = scalar_lea.hbm %s3159_s16, %s1825_s13 }
  0xee   : > { %1857 = vmatprep.subr.bf16.mxu1 %v2421_v0 }
  0xf1   : > { %1858 = vmatpush3.bf16.msra.mxu1 %v2050_v47 }
  0xf2   : > { %906 = vmatprep.subr.bf16.mxu1 %v2865_v48 }
 0x14d   : > { %v2793_v16 = vpop.permute.xlu0 %812 }
 0x14e   : > { %v815_v17 = vsel %vm578_vm1, %v2767_v1, %v2793_v16 }
 0x14f   : > { %v2799_v19 = vpack.c.bf16 %v815_v17, %v815_v17 }
 0x151   : > { %v823_v20 = vsel %vm821_vm3, %v2799_v19, 0  ;;  %v865_v54 = vunpack.c.l.bf16 %v2799_v19 }
 0x152   : > { %1872 = vmatpush3.bf16.msra.mxu0 %v823_v20 }
 0x153   : > { %1011 = vmatprep.subr.bf16.mxu0 %v2819_v27  ;;  %v866_v55 = vsel %vm669_vm5, %v865_v54, 0.0 }
 0x154   : > { %v867_v56 = vrot.slane %v866_v55, 4 }
 0x155   : > { %1874 = vmatmul.mubr.msk.bf16.vlgmr.msra.gmra.mrb[4].mxu0 %vm817_vm4, %v2803_v21 }
 0x156   : > { %1043 = vmatprep.mubr.bf16.mxu0 %v2424_v26  ;;  %1012 = vmatpush1.bf16.msra.mxu0 %v2816_v25  ;;  %v868_v57 = vadd.f32 %v867_v56, %v866_v55 }
 0x157   : > { %1013 = vmatprep.subr.bf16.mxu0 %v2824_v29 }
 0x158   : > { %v869_v58 = vrot.slane %v868_v57, 2 }
 0x15a   : > { %1014 = vmatpush1.bf16.msra.mxu0 %v2829_v30  ;;  %v870_v60 = vadd.f32 %v869_v58, %v868_v57 }
 0x15b   : > { %1015 = vmatprep.subr.bf16.mxu0 %v2833_v31  ;;  %v641_v43 = vpop.permute.xlu0 %640 }
 0x15c   : > { %v643_v46 = vsel %vm578_vm1, %v2786_v13, %v641_v43  ;;  %v871_v61 = vrot.slane %v870_v60, 1 }
 0x15d   : > { %v644_v50 = vpack.c.bf16 %v643_v46, %v643_v46 }
 0x15e   : > { %1016 = vmatpush1.bf16.msra.mxu0 %v2838_v33  ;;  %v872_v62 = vadd.f32 %v871_v61, %v870_v60 }
 0x15f   : > { %1017 = vmatprep.subr.bf16.mxu0 %v2842_v34  ;;  %1860 = vmatmul.mubr.msk.bf16.vlgmr.msra.gmra.mrb[4].mxu1 %vm669_vm5, %v644_v50 }
 0x160   : > { %907 = vmatpush1.bf16.msra.mxu1 %v2871_v51  ;;  %938 = vmatprep.mubr.bf16.mxu1 %v2424_v26 }
 0x161   : > { %908 = vmatprep.subr.bf16.mxu1 %v2874_v52 }
 0x162   : > { %1018 = vmatpush1.bf16.msra.mxu0 %v2850_v38 }
 0x163   : > { %1019 = vmatprep.subr.bf16.mxu0 %v2853_v40 }
 0x164   : > { %909 = vmatpush1.bf16.msra.mxu1 %v2880_v53 }
 0x165   : > { %1877 = vmatprep.subr.bf16.mxu1 %v2421_v0 }
 0x166   : > { %1020 = vmatpush1.bf16.msra.mxu0 %v2857_v44 }
 0x167   : > { %1021 = vmatprep.subr.bf16.mxu0 %v2860_v45  ;;  %1795 = vmatmul.mubr.msk.bf16.vlgmr.msra.gmra.mrb[8].mxu1 %vm578_vm1, %v882_v59 }
 0x168   : > { %1878 = vmatpush3.bf16.msra.mxu1 %v2038_v32  ;;  %1885 = vmatprep.mubr.msk.bf16.mxu1 %vm2422_vm0, %v2421_v0 }
 0x169   : > { %1879 = vmatprep.subr.bf16.mxu1 %v2421_v0 }
 0x16a   : > { %1022 = vmatpush1.bf16.msra.mxu0 %v2868_v49 }
 0x16b   : > { %1897 = vmatprep.subr.bf16.mxu0 %v2421_v0 }
 0x16c   : > { %1880 = vmatpush3.bf16.msra.mxu1 %v2042_v35 }
 0x16d   : > { %1881 = vmatprep.subr.bf16.mxu1 %v2421_v0 }
 0x170   : > { %1882 = vmatpush3.bf16.msra.mxu1 %v2046_v42 }
 0x171   : > { %1883 = vmatprep.subr.bf16.mxu1 %v2421_v0 }
 0x174   : > { %1884 = vmatpush3.bf16.msra.mxu1 %v2050_v47 }
 0x175   : > { %1889 = vmatprep.subr.bf16.mxu1 %v2421_v0 }
 0x1b5   : > { %v2846_v36 = vpop.f32.mrb[0].mxu0 }
 0x1b6   : > { %v1869_v37 = vpop.f32.mrb[1].mxu0 }
 0x1b7   : > { %v768_v39 = vpop.f32.mrb[2].mxu0  ;;  %v616_v17 = vpop.f32.mrb[0].mxu1 }
 0x1b8   : > { %v1870_v41 = vpop.f32.mrb[3].mxu0  ;;  %v618_v18 = vpop.f32.mrb[1].mxu1 }
 0x1b9   : > { %v2904_v19 = vadd.f32 %v618_v18, %v555_v15  ;;  %v620_v20 = vpop.f32.mrb[2].mxu1 }
 0x1ba   : > { %v621_v22 = vpop.f32.mrb[3].mxu1 }
 0x228   : > { %v859_v4 = vpop.f32.mrb[4].mxu0 }
 0x229   : > { %v1875_v6 = vpop.f32.mrb[5].mxu0  ;;  %v874_v7 = vsub.f32 %v872_v62, %v859_v4  ;;  %v2908_v24 = vsub.f32 %v859_v4, %v865_v54  ;;  %v2918_v54 = vsub.s32 0, %v2790_v14 }
 0x22a   : > { %v862_v8 = vpop.f32.mrb[6].mxu0 }
 0x22b   : > { %876 = vrot.lane.b32.xlu1 %v874_v7, %s2425_s25  ;;  %v1876_v9 = vpop.f32.mrb[7].mxu0  ;;  %v879_v39 = vsel %vm578_vm1, %v2908_v24, %v2793_v16  ;;  %v551_v55 = vrot.slane %v541_v12, %v2918_v54 }
 0x22d   : > { %v2921_v56 = vadd.f32 %v616_v17, %v551_v55 }
 0x22f   : > { %509 = vperm.xlu1 %2028, %v1773_v10  }
 0x232   : > { %v2906_v23 = vpop.f32.mrb[4].mxu1 }
 0x233   : > { %v1861_v28 = vpop.f32.mrb[5].mxu1 }
 0x234   : > { %v710_v32 = vpop.f32.mrb[6].mxu1 }
 0x235   : > { %v1862_v35 = vpop.f32.mrb[7].mxu1 }
 0x23a   : > { %v940_v43 = vpop.f32.mrb[8].mxu1 }
 0x23b   : > { %v942_v46 = vpop.f32.mrb[9].mxu1  ;;  %v1055_v16 = vrot.slane %v940_v43, %v2918_v54 }
 0x23c   : > { %v944_v47 = vpop.f32.mrb[10].mxu1  ;;  %v1059_v57 = vrot.slane %v942_v46, %v2918_v54 }
 0x23d   : > { %v945_v50 = vpop.f32.mrb[11].mxu1 }
 0x29d   : > { %v877_v37 = vpop.permute.xlu1 %876 }
 0x29e   : > { %v880_v41 = vsel %vm669_vm5, %v879_v39, %v877_v37 }
 0x29f   : > { %v881_v42 = vpack.c.bf16 %v880_v41, %v880_v41 }
 0x2a1   : > { %1808 = vmatmul.mubr.msk.bf16.vlgmr.msra.gmra.mrb[8].mxu0 %vm1007_vm6, %v881_v42 }
 0x2a2   : > { %1899 = vmatprep.mubr.msk.bf16.mxu0 %vm2422_vm0, %v2421_v0 }
 0x2ae   : > { %v2927_v9 = vpop.permute.xlu1 %509 }
 0x374   : > { %v1045_v58 = vpop.f32.mrb[8].mxu0 }
 0x375   : > { %v1046_v59 = vadd.f32 %v1045_v58, %v2921_v56  ;;  %v1047_v60 = vpop.f32.mrb[9].mxu0 }
 0x376   : > { %v1048_v61 = vadd.f32 %v1047_v60, %v2904_v19  ;;  %v1049_v62 = vpop.f32.mrb[10].mxu0 }
 0x377   : > { %v1060_v63 = vadd.f32 %v1055_v16, %v1046_v59  ;;  %v1050_v4 = vpop.f32.mrb[11].mxu0  ;;  %v2938_v62 = vld [vmem:[#allocation7] sm:$0x1] }
 0x378   : > { %v1061_v5 = vadd.f32 %v1059_v57, %v1048_v61 }
 0x379   : > { %v1809_v14 = vmul.f32 -1.442695, %v1060_v63 }
 0x37a   : > { %v1810_v17 = vmul.f32 -1.442695, %v1061_v5 }
 0x37b   : > { %2068 = vpow2.f32 %v1809_v14  ;;  %v708_v14 = vadd.f32 %v2906_v23, %v2938_v62 }
 0x385   : > { %v2069_v6 = vpop.eup %2068 }
 0x386   : > { %v1065_v8 = vadd.f32 1.0, %v2069_v6 }
 0x388   : > { %2070 = vrcp.f32 %v1065_v8  ;;  %v774_v8 = vrot.slane %v708_v14, %v2918_v54 }
 0x392   : > { %v2071_v10 = vpop.eup %2070 }
 0x393   : > { %v1074_v11 = vadd.f32 %v2071_v10, %v2927_v9 }
 0x395   : > { %v1075_v12 = vmul.f32 1.442695, %v1074_v11 }
 0x397   : > { %2072 = vpow2.f32 %v1075_v12 }
 0x398   : > { %2074 = vpow2.f32 %v1810_v17 }
 0x3a1   : > { %v2073_v15 = vpop.eup %2072 }
 0x3a2   : > { %1085 = vrot.lane.b32.xlu1 %v2073_v15, %s2425_s25  ;;  %1081 = vrot.lane.b32.xlu0 %v2073_v15, %s2426_s30  ;;  %v2075_v18 = vpop.eup %2074 }
 0x3a3   : > { %v1071_v20 = vadd.f32 1.0, %v2075_v18 }
 0x3a5   : > { %2076 = vrcp.f32 %v1071_v20 }
 0x3a6   : > { %1089 = vrot.lane.b32.xlu0 %v2073_v15, %s2423_s24 }
 0x3aa   : > { %1114 = vrot.lane.b32.xlu0 %v874_v7, %s2423_s24 }
 0x3af   : > { %v2077_v22 = vpop.eup %2076 }
 0x3b0   : > { %v1077_v28 = vadd.f32 %v2077_v22, %v2927_v9 }
 0x3b2   : > { %v1078_v32 = vmul.f32 1.442695, %v1077_v28 }
 0x3b4   : > { %2078 = vpow2.f32 %v1078_v32  ;;  %v1785_v32 = vmul.f32 -1.442695, %v708_v14 }
 0x3be   : > { %v2079_v46 = vpop.eup %2078 }
 0x414   : > { %v1082_v35 = vpop.permute.xlu0 %1081  ;;  %v1086_v39 = vpop.permute.xlu1 %1085 }
 0x415   : > { %v1084_v37 = vadd.f32 %v2073_v15, %v1082_v35 }
 0x417   : > { %v1088_v41 = vadd.f32 %v1086_v39, %v1084_v37 }
 0x418   : > { %v1090_v42 = vpop.permute.xlu0 %1089 }
 0x419   : > { %v1092_v43 = vadd.f32 %v1090_v42, %v1088_v41 }
 0x41b   : > { %v1093_v47 = vadd.f32 %v2079_v46, %v1092_v43 }
 0x41c   : > { %v1115_v5 = vpop.permute.xlu0 %1114 }
 0x41d   : > { %v1094_v7 = vsel %vm578_vm1, %v1093_v47, 0.0 }
 0x41e   : > { %v1095_v50 = vrot.slane %v1094_v7, 4 }
 0x420   : > { %v1096_v55 = vadd.f32 %v1095_v50, %v1094_v7 }
 0x422   : > { %v1097_v16 = vrot.slane %v1096_v55, 2 }
 0x424   : > { %v1098_v57 = vadd.f32 %v1097_v16, %v1096_v55 }
 0x426   : > { %v1099_v58 = vrot.slane %v1098_v57, 1 }
 0x428   : > { %v1100_v59 = vadd.f32 %v1099_v58, %v1098_v57 }
 0x42a   : > { %v1101_v60 = vmax.f32 %v1100_v59, 1e-30 }
 0x42c   : > { %2080 = vrcp.f32 %v1101_v60 }
 0x436   : > { %v2081_v61 = vpop.eup %2080 }
 0x437   : > { %1110 = vrot.lane.b32.xlu1 %v2081_v61, %s2425_s25 }
 0x43b   : > { %1105 = vrot.lane.b32.xlu1 %v2081_v61, %s2423_s24 }
 0x4a9   : > { %v1111_v63 = vpop.permute.xlu1 %1110 }
 0x4aa   : > { %v1113_v4 = vmul.f32 %v2073_v15, %v1111_v63 }
 0x4ac   : > { %v1117_v6 = vmul.f32 %v1115_v5, %v1113_v4 }
 0x4ad   : > { %v1106_v10 = vpop.permute.xlu1 %1105 }
 0x4ae   : > { %1119 = vrot.lane.b32.xlu0 %v1117_v6, %s2426_s30  ;;  %v1108_v11 = vmul.f32 %v2073_v15, %v1106_v10 }
 0x4b0   : > { %v1109_v12 = vmul.f32 %v1108_v11, %v2908_v24 }
 0x4b2   : > { %776 = vrot.lane.b32.xlu0 %v774_v8, %s2425_s25 }
 0x520   : > { %v1120_v17 = vpop.permute.xlu0 %1119 }
 0x521   : > { %v2946_v18 = vadd.f32 %v1120_v17, %v1109_v12 }
 0x523   : > { %2082 = vtanh.f32 %v2946_v18 }
 0x524   : > { %v777_v20 = vpop.permute.xlu0 %776 }
 0x525   : > { %v779_v28 = vadd.f32 %v777_v20, %v2846_v36 }
 0x527   : > { %v1789_v23 = vmul.f32 -1.442695, %v779_v28 }
 0x529   : > { %2084 = vpow2.f32 %v1789_v23 }
 0x52a   : > { %2086 = vpow2.f32 %v1785_v32 }
 0x52d   : > { %v2083_v35 = vpop.eup %2082 }
 0x52e   : > { %v2950_v37 = vmul.f32 %v2083_v35, %v2077_v22 }
 0x530   : > { %1287 = vrot.lane.b32.xlu1 %v2950_v37, %s2426_s30  ;;  %v1195_v23 = vpack.c.bf16 %v2950_v37, %v2950_v37 }
 0x533   : > { %v2085_v15 = vpop.eup %2084 }
 0x534   : > { %v783_v24 = vadd.f32 1.0, %v2085_v15  ;;  %v2087_v39 = vpop.eup %2086 }
 0x535   : > { %v716_v41 = vadd.f32 1.0, %v2087_v39 }
 0x536   : > { %2088 = vrcp.f32 %v783_v24 }
 0x537   : > { %2090 = vrcp.f32 %v716_v41 }
 0x540   : > { %v2089_v42 = vpop.eup %2088 }
 0x541   : > { %v786_v43 = vadd.f32 %v2089_v42, %v2927_v9  ;;  %v2091_v46 = vpop.eup %2090 }
 0x542   : > { %v789_v47 = vmul.f32 1.442695, %v2091_v46 }
 0x543   : > { %v787_v36 = vmul.f32 1.442695, %v786_v43 }
 0x545   : > { %2092 = vpow2.f32 %v787_v36 }
 0x546   : > { %2094 = vpow2.f32 %v789_v47 }
 0x54f   : > { %v2093_v7 = vpop.eup %2092 }
 0x550   : > { %v791_v22 = vsel %vm578_vm1, %v2093_v7, 0.0  ;;  %v800_v50 = vmul.f32 %v2093_v7, %v2767_v1  ;;  %v2095_v14 = vpop.eup %2094 }
 0x551   : > { %v792_v55 = vrot.slane %v791_v22, 4  ;;  %v799_v1 = vmul.f32 %v2095_v14, %v2786_v13 }
 0x552   : > { %v801_v16 = vsel %vm578_vm1, %v800_v50, 0.0 }
 0x553   : > { %v793_v57 = vadd.f32 %v792_v55, %v791_v22  ;;  %v802_v58 = vrot.slane %v801_v16, 4 }
 0x555   : > { %v794_v59 = vrot.slane %v793_v57, 2  ;;  %v803_v60 = vadd.f32 %v802_v58, %v801_v16 }
 0x557   : > { %v795_v61 = vadd.f32 %v794_v59, %v793_v57  ;;  %v804_v63 = vrot.slane %v803_v60, 2 }
 0x559   : > { %v796_v4 = vrot.slane %v795_v61, 1  ;;  %v805_v6 = vadd.f32 %v804_v63, %v803_v60 }
 0x55b   : > { %v797_v5 = vadd.f32 %v796_v4, %v795_v61  ;;  %v806_v10 = vrot.slane %v805_v6, 1 }
 0x55d   : > { %v798_v8 = vadd.f32 %v2095_v14, %v797_v5  ;;  %v807_v11 = vadd.f32 %v806_v10, %v805_v6 }
 0x55f   : > { %2096 = vrcp.f32 %v798_v8  ;;  %v808_v12 = vadd.f32 %v807_v11, %v799_v1 }
 0x569   : > { %v2097_v17 = vpop.eup %2096 }
 0x56a   : > { %v2959_v20 = vmul.f32 %v2097_v17, %v808_v12 }
 0x56c   : > { %2098 = vtanh.f32 %v2959_v20 }
 0x576   : > { %v2099_v28 = vpop.eup %2098 }
 0x577   : > { %1127 = vrot.lane.b32.xlu1 %v2099_v28, %s2423_s24 }
 0x57b   : > { %1197 = vrot.lane.b32.xlu1 %v1195_v23, %s2426_s30 }
 0x5a2   : > { %v1288_v32 = vpop.permute.xlu1 %1287 }
 0x5a3   : > { %v1290_v35 = vsel %vm578_vm1, %v1288_v32, %v2946_v18 }
 0x5a4   : > { %v2968_v15 = vpack.c.bf16 %v1290_v35, %v1290_v35 }
 0x5a6   : > { %v1293_v13 = vsel %vm821_vm3, %v2968_v15, 0  ;;  %v1335_v39 = vunpack.c.l.bf16 %v2968_v15 }
 0x5a7   : > { %1898 = vmatpush3.bf16.msra.mxu0 %v1293_v13 }
 0x5a8   : > { %1403 = vmatprep.subr.bf16.mxu0 %v2819_v27  ;;  %v1336_v41 = vsel %vm669_vm5, %v1335_v39, 0.0 }
 0x5a9   : > { %v1337_v42 = vrot.slane %v1336_v41, 4 }
 0x5aa   : > { %1900 = vmatmul.mubr.msk.bf16.vlgmr.msra.gmra.mrb[12].mxu0 %vm817_vm4, %v2803_v21 }
 0x5ab   : > { %1404 = vmatpush1.bf16.msra.mxu0 %v2816_v25  ;;  %1435 = vmatprep.mubr.bf16.mxu0 %v2424_v26 }
 0x5ac   : > { %1405 = vmatprep.subr.bf16.mxu0 %v2824_v29  ;;  %v1132_v29 = vsel %vm1131_vm7, %v2950_v37, 0.0 }
 0x5af   : > { %1406 = vmatpush1.bf16.msra.mxu0 %v2829_v30  ;;  %v1133_v30 = vrot.slane %v1132_v29, 4 }
 0x5b0   : > { %1407 = vmatprep.subr.bf16.mxu0 %v2833_v31 }
 0x5b1   : > { %v1134_v31 = vadd.f32 %v1133_v30, %v1132_v29 }
 0x5b3   : > { %1408 = vmatpush1.bf16.msra.mxu0 %v2838_v33  ;;  %v1135_v33 = vrot.slane %v1134_v31, 2 }
 0x5b4   : > { %1409 = vmatprep.subr.bf16.mxu0 %v2842_v34 }
 0x5b5   : > { %v1136_v34 = vadd.f32 %v1135_v33, %v1134_v31 }
 0x5b7   : > { %1410 = vmatpush1.bf16.msra.mxu0 %v2850_v38  ;;  %v1137_v38 = vrot.slane %v1136_v34, 1 }
 0x5b8   : > { %1411 = vmatprep.subr.bf16.mxu0 %v2853_v40 }
 0x5b9   : > { %v1138_v40 = vadd.f32 %v1137_v38, %v1136_v34 }
 0x5bb   : > { %1412 = vmatpush1.bf16.msra.mxu0 %v2857_v44  ;;  %v1139_v44 = vmul.f32 0.125, %v1138_v40 }
 0x5bc   : > { %1413 = vmatprep.subr.bf16.mxu0 %v2860_v45 }
 0x5bf   : > { %1414 = vmatpush1.bf16.msra.mxu0 %v2868_v49 }
 0x5e9   : > { %v1128_v21 = vpop.permute.xlu1 %1127 }
 0x5ea   : > { %v1130_v25 = vmul.f32 %v2091_v46, %v1128_v21 }
 0x5ec   : > { %v1352_v27 = vpack.c.bf16 %v1130_v25, %v1130_v25  ;;  %1141 = vrot.lane.b32.xlu0 %v1130_v25, %s2426_s30 }
 0x5ed   : > { %v1198_v43 = vpop.permute.xlu1 %1197 }
 0x5ee   : > { %1354 = vrot.lane.b32.xlu1 %v1352_v27, %s2426_s30 }
 0x65e   : > { %v1142_v45 = vpop.permute.xlu0 %1141 }
 0x65f   : > { %v1144_v49 = vsel %vm578_vm1, %v1142_v45, %v1139_v44 }
 0x660   : > { %v1145_v24 = vpack.c.bf16 %v1144_v49, %v1144_v49  ;;  %v1355_v46 = vpop.permute.xlu1 %1354 }
 0x662   : > { %1886 = vmatmul.mubr.msk.bf16.vlgmr.msra.gmra.mrb[12].mxu1 %vm669_vm5, %v1145_v24 }
 0x663   : > { %1890 = vmatpush3.bf16.msra.mxu1 %v2771_v2  ;;  %1893 = vmatprep.mubr.msk.bf16.mxu1 %vm2422_vm0, %v2421_v0  ;;  %v1338_v2 = vadd.f32 %v1337_v42, %v1336_v41 }
 0x664   : > { %1891 = vmatprep.subr.bf16.mxu1 %v2421_v0 }
 0x665   : > { %v1339_v36 = vrot.slane %v1338_v2, 2 }
 0x667   : > { %1892 = vmatpush3.bf16.msra.mxu1 %v2773_v3  ;;  %v1340_v3 = vadd.f32 %v1339_v36, %v1338_v2 }
 0x668   : > { %1359 = vmatprep.subr.bf16.mxu1 %v2865_v48 }
 0x669   : > { %v1341_v48 = vrot.slane %v1340_v3, 1 }
 0x66a   : > { %1894 = vmatmul.mubr.msk.bf16.vlgmr.msra.gmra.mrb[16].mxu1 %vm578_vm1, %v1198_v43 }
 0x66b   : > { %1360 = vmatpush1.bf16.msra.mxu1 %v2871_v51  ;;  %1391 = vmatprep.mubr.bf16.mxu1 %v2424_v26  ;;  %v1342_v47 = vadd.f32 %v1341_v48, %v1340_v3 }
 0x66c   : > { %1361 = vmatprep.subr.bf16.mxu1 %v2874_v52 }
 0x66f   : > { %1362 = vmatpush1.bf16.msra.mxu1 %v2880_v53 }
 0x670   : > { %1903 = vmatprep.subr.bf16.mxu1 %v2421_v0 }
 0x672   : > { %1816 = vmatmul.mubr.msk.bf16.vlgmr.msra.gmra.mrb[20].mxu1 %vm578_vm1, %v1355_v46 }
 0x673   : > { %1907 = vmatprep.mubr.msk.bf16.mxu1 %vm2422_vm0, %v2421_v0 }
 0x67d   : > { %v1329_v51 = vpop.f32.mrb[12].mxu0 }
 0x67e   : > { %v1344_v7 = vsub.f32 %v1342_v47, %v1329_v51  ;;  %v1901_v26 = vpop.f32.mrb[13].mxu0  ;;  %v3010_v53 = vsub.f32 %v1329_v51, %v1335_v39 }
 0x67f   : > { %v1332_v22 = vpop.f32.mrb[14].mxu0 }
 0x680   : > { %1346 = vrot.lane.b32.xlu0 %v1344_v7, %s2425_s25  ;;  %v1902_v52 = vpop.f32.mrb[15].mxu0  ;;  %v1349_v50 = vsel %vm578_vm1, %v3010_v53, %v2950_v37 }
 0x6f2   : > { %v1347_v55 = vpop.permute.xlu0 %1346 }
 0x6f3   : > { %v1350_v16 = vsel %vm669_vm5, %v1349_v50, %v1347_v55 }
 0x6f4   : > { %v1351_v57 = vpack.c.bf16 %v1350_v16, %v1350_v16 }
 0x6f6   : > { %1817 = vmatmul.mubr.msk.bf16.vlgmr.msra.gmra.mrb[16].mxu0 %vm1007_vm6, %v1351_v57 }
 0x735   : > { %v1183_v58 = vpop.f32.mrb[12].mxu1 }
 0x736   : > { %v1887_v59 = vpop.f32.mrb[13].mxu1 }
 0x737   : > { %v1186_v60 = vpop.f32.mrb[14].mxu1 }
 0x738   : > { %v1888_v61 = vpop.f32.mrb[15].mxu1 }
 0x73d   : > { %v1236_v63 = vpop.f32.mrb[16].mxu1 }
 0x73e   : > { %v1895_v4 = vpop.f32.mrb[17].mxu1 }
 0x73f   : > { %v1239_v5 = vpop.f32.mrb[18].mxu1 }
 0x740   : > { %v1896_v14 = vpop.f32.mrb[19].mxu1 }
 0x745   : > { %v1393_v6 = vpop.f32.mrb[20].mxu1 }
 0x746   : > { %v1395_v8 = vpop.f32.mrb[21].mxu1  ;;  %v1447_v37 = vrot.slane %v1393_v6, %v2918_v54 }
 0x747   : > { %v1397_v10 = vpop.f32.mrb[22].mxu1  ;;  %v1451_v28 = vrot.slane %v1395_v8, %v2918_v54 }
 0x748   : > { %v1398_v11 = vpop.f32.mrb[23].mxu1 }
 0x7c9   : > { %v1437_v1 = vpop.f32.mrb[16].mxu0 }
 0x7ca   : > { %v1438_v12 = vadd.f32 %v1437_v1, %v2921_v56  ;;  %v1439_v17 = vpop.f32.mrb[17].mxu0  ;;  %v1184_v56 = vadd.f32 %v1183_v58, %v2938_v62 }
 0x7cb   : > { %v1440_v23 = vadd.f32 %v1439_v17, %v2904_v19  ;;  %v1441_v32 = vpop.f32.mrb[18].mxu0 }
 0x7cc   : > { %v1452_v35 = vadd.f32 %v1447_v37, %v1438_v12  ;;  %v1442_v15 = vpop.f32.mrb[19].mxu0  ;;  %v1245_v19 = vrot.slane %v1184_v56, %v2918_v54  ;;  %v1812_v51 = vmul.f32 -1.442695, %v1184_v56 }
 0x7cd   : > { %v1453_v13 = vadd.f32 %v1451_v28, %v1440_v23 }
 0x7ce   : > { %v1818_v21 = vmul.f32 -1.442695, %v1452_v35 }
 0x7cf   : > { %v1819_v62 = vmul.f32 -1.442695, %v1453_v13 }
 0x7d0   : > { %2100 = vpow2.f32 %v1818_v21 }
 0x7da   : > { %v2101_v25 = vpop.eup %2100 }
 0x7db   : > { %v1457_v27 = vadd.f32 1.0, %v2101_v25 }
 0x7dd   : > { %2102 = vrcp.f32 %v1457_v27 }
 0x7e7   : > { %v2103_v29 = vpop.eup %2102 }
 0x7e8   : > { %v1466_v30 = vadd.f32 %v2103_v29, %v2927_v9 }
 0x7ea   : > { %v1467_v31 = vmul.f32 1.442695, %v1466_v30 }
 0x7ec   : > { %2104 = vpow2.f32 %v1467_v31 }
 0x7ed   : > { %2106 = vpow2.f32 %v1819_v62 }
 0x7f6   : > { %v3023_v33 = vpop.eup %2104 }
 0x7f7   : > { %1477 = vrot.lane.b32.xlu1 %v3023_v33, %s2425_s25  ;;  %1473 = vrot.lane.b32.xlu0 %v3023_v33, %s2426_s30  ;;  %v2107_v34 = vpop.eup %2106 }
 0x7f8   : > { %v1463_v38 = vadd.f32 1.0, %v2107_v34 }
 0x7fa   : > { %2108 = vrcp.f32 %v1463_v38 }
 0x7fb   : > { %1247 = vrot.lane.b32.xlu1 %v1245_v19, %s2425_s25  ;;  %1481 = vrot.lane.b32.xlu0 %v3023_v33, %s2423_s24 }
 0x7ff   : > { %1272 = vrot.lane.b32.xlu0 %v2946_v18, %s2426_s30 }
 0x803   : > { %1506 = vrot.lane.b32.xlu0 %v1344_v7, %s2423_s24 }
 0x804   : > { %v3036_v40 = vpop.eup %2108 }
 0x805   : > { %v1469_v44 = vadd.f32 %v3036_v40, %v2927_v9 }
 0x807   : > { %v1470_v45 = vmul.f32 1.442695, %v1469_v44 }
 0x809   : > { %2110 = vpow2.f32 %v1470_v45 }
 0x813   : > { %v2111_v36 = vpop.eup %2110 }
 0x869   : > { %v1478_v49 = vpop.permute.xlu1 %1477  ;;  %v1474_v24 = vpop.permute.xlu0 %1473 }
 0x86a   : > { %v1476_v39 = vadd.f32 %v3023_v33, %v1474_v24 }
 0x86c   : > { %v1480_v41 = vadd.f32 %v1478_v49, %v1476_v39  ;;  %v2066_v49 = vld [vmem:[%s3157_s15] sm:$0xff]  }
 0x86d   : > { %v1248_v18 = vpop.permute.xlu1 %1247  ;;  %v1482_v42 = vpop.permute.xlu0 %1481  ;;  %1904 = vmatpush3.bf16.msra.mxu1 %v2066_v49 }
 0x86e   : > { %v1250_v43 = vadd.f32 %v1248_v18, %v1236_v63  ;;  %v1484_v2 = vadd.f32 %v1482_v42, %v1480_v41  ;;  %1905 = vmatprep.subr.bf16.mxu1 %v2421_v0 }
 0x870   : > { %v1814_v46 = vmul.f32 -1.442695, %v1250_v43  ;;  %v1485_v3 = vadd.f32 %v2111_v36, %v1484_v2 }
 0x871   : > { %v1273_v8 = vpop.permute.xlu0 %1272 }
 0x872   : > { %2112 = vpow2.f32 %v1814_v46  ;;  %v1486_v48 = vsel %vm578_vm1, %v1485_v3, 0.0 }
 0x873   : > { %v1487_v47 = vrot.slane %v1486_v48, 4  ;;  %2114 = vpow2.f32 %v1812_v51 }
 0x875   : > { %v1488_v7 = vadd.f32 %v1487_v47, %v1486_v48  ;;  %v1507_v44 = vpop.permute.xlu0 %1506 }
 0x877   : > { %v1489_v26 = vrot.slane %v1488_v7, 2 }
 0x879   : > { %v1490_v22 = vadd.f32 %v1489_v26, %v1488_v7 }
 0x87b   : > { %v1491_v52 = vrot.slane %v1490_v22, 1 }
 0x87c   : > { %v2113_v50 = vpop.eup %2112 }
 0x87d   : > { %v1254_v55 = vadd.f32 1.0, %v2113_v50  ;;  %v1492_v16 = vadd.f32 %v1491_v52, %v1490_v22  ;;  %v2115_v58 = vpop.eup %2114 }
 0x87e   : > { %v1192_v59 = vadd.f32 1.0, %v2115_v58 }
 0x87f   : > { %2116 = vrcp.f32 %v1254_v55  ;;  %v1493_v57 = vmax.f32 %v1492_v16, 1e-30 }
 0x881   : > { %2118 = vrcp.f32 %v1493_v57 }
 0x882   : > { %2120 = vrcp.f32 %v1192_v59 }
 0x889   : > { %v2117_v60 = vpop.eup %2116 }
 0x88a   : > { %v1257_v61 = vadd.f32 %v2117_v60, %v2927_v9 }
 0x88b   : > { %v2119_v63 = vpop.eup %2118 }
 0x88c   : > { %v1258_v4 = vmul.f32 1.442695, %v1257_v61  ;;  %1502 = vrot.lane.b32.xlu1 %v2119_v63, %s2425_s25  ;;  %v2121_v5 = vpop.eup %2120 }
 0x88d   : > { %v1260_v14 = vmul.f32 1.442695, %v2121_v5 }
 0x88e   : > { %2122 = vpow2.f32 %v1258_v4 }
 0x88f   : > { %2124 = vpow2.f32 %v1260_v14 }
 0x890   : > { %1497 = vrot.lane.b32.xlu1 %v2119_v63, %s2423_s24 }
 0x898   : > { %v2123_v6 = vpop.eup %2122 }
 0x899   : > { %v1262_v10 = vsel %vm578_vm1, %v2123_v6, 0.0  ;;  %v1275_v11 = vmul.f32 %v2123_v6, %v1273_v8  ;;  %v2125_v13 = vpop.eup %2124 }
 0x89a   : > { %v1263_v1 = vrot.slane %v1262_v10, 4  ;;  %v1270_v30 = vmul.f32 %v2125_v13, %v2959_v20  ;;  %v2067_v20 = vld [vmem:[%s3157_s15 + $0x8] sm:$0xff]  }
 0x89b   : > { %v1276_v37 = vsel %vm578_vm1, %v1275_v11, 0.0  ;;  %1906 = vmatpush3.bf16.msra.mxu1 %v2067_v20 }
 0x89c   : > { %v1264_v12 = vadd.f32 %v1263_v1, %v1262_v10  ;;  %v1277_v9 = vrot.slane %v1276_v37, 4 }
 0x89e   : > { %v1265_v17 = vrot.slane %v1264_v12, 2  ;;  %v1278_v28 = vadd.f32 %v1277_v9, %v1276_v37 }
 0x8a0   : > { %v1266_v23 = vadd.f32 %v1265_v17, %v1264_v12  ;;  %v1279_v32 = vrot.slane %v1278_v28, 2 }
 0x8a2   : > { %v1267_v35 = vrot.slane %v1266_v23, 1  ;;  %v1280_v21 = vadd.f32 %v1279_v32, %v1278_v28 }
 0x8a4   : > { %v1268_v15 = vadd.f32 %v1267_v35, %v1266_v23  ;;  %v1281_v27 = vrot.slane %v1280_v21, 1 }
 0x8a6   : > { %v1269_v25 = vadd.f32 %v2125_v13, %v1268_v15  ;;  %v1282_v29 = vadd.f32 %v1281_v27, %v1280_v21 }
 0x8a8   : > { %2126 = vrcp.f32 %v1269_v25  ;;  %v1283_v31 = vadd.f32 %v1282_v29, %v1270_v30 }
 0x8b2   : > { %v2127_v56 = vpop.eup %2126 }
 0x8b3   : > { %v1285_v19 = vmul.f32 %v2127_v56, %v1283_v31 }
 0x8b5   : > { %2128 = vtanh.f32 %v1285_v19 }
 0x8bf   : > { %v2129_v62 = vpop.eup %2128 }
 0x8c0   : > { %1519 = vrot.lane.b32.xlu1 %v2129_v62, %s2423_s24  ;;  %s2336_s24 = scalar_lea.vmem %s2335_s21, 256 }
 0x8fe   : > { %v1503_v34 = vpop.permute.xlu1 %1502 }
 0x8ff   : > { %v1505_v38 = vmul.f32 %v3023_v33, %v1503_v34 }
 0x901   : > { %v1509_v45 = vmul.f32 %v1507_v44, %v1505_v38 }
 0x902   : > { %v1498_v24 = vpop.permute.xlu1 %1497 }
 0x903   : > { %1511 = vrot.lane.b32.xlu0 %v1509_v45, %s2426_s30  ;;  %v1500_v39 = vmul.f32 %v3023_v33, %v1498_v24 }
 0x905   : > { %v1501_v41 = vmul.f32 %v1500_v39, %v3010_v53  ;;  %v1820_v53 = vld [vmem:[%s3158_s22] ss:$0 sm:$0xff] }
 0x932   : > { %v1520_v43 = vpop.permute.xlu1 %1519 }
 0x933   : > { %v1522_v2 = vmul.f32 %v2121_v5, %v1520_v43 }
 0x935   : > { %v1526_v46 = vrot.slane %v1522_v2, %v2918_v54 }
 0x975   : > { %v1512_v18 = vpop.permute.xlu0 %1511 }
 0x976   : > { %v1514_v42 = vadd.f32 %v1512_v18, %v1501_v41 }
 0x978   : > { %2130 = vtanh.f32 %v1514_v42 }
 0x982   : > { %v2131_v36 = vpop.eup %2130 }
 0x983   : > { %v1516_v3 = vmul.f32 %v2131_v36, %v3036_v40 }
 0x985   : > { %v1527_v48 = vadd.f32 %v1526_v46, %v1516_v3 }
 0x987   : > { %v1528_v0 = vpack.c.bf16 %v1527_v48, %v1527_v48 }
 0x989   : > { %1541 = vrot.lane.b32.xlu0 %v1528_v0, %s2426_s30  ;;  %s2330_s30 = scalar_lea.vmem %s3075_s12, 128 }
 0x98a   : > { %p2331_p5 = scmp.ne.s32.totalorder %s3075_s12, %s2330_s30  ;;  %p2338_p13 = scmp.lt.s32.totalorder %s2336_s24, %s2330_s30 }
 0x98c   : > { %p2332_p1 = pnand %p2331_p5, %p3160_p10  ;;  %p2339_p3 = por %p2338_p13, %p2337_p12 }
 0x98e   : > { %p2333_p11 = pneg %p2332_p1 }
 0x990   : > { %p2340_p7 = pnand %p2339_p3, %p2333_p11 }
 0x9fb   : > { %v1542_v33 = vpop.permute.xlu0 %1541 }
 0x9fc   : > { %1908 = vmatmul.mubr.msk.bf16.vlgmr.msra.gmra.mrb[24].mxu1 %vm578_vm1, %v1542_v33 }
 0xacf   : > { %v1592_v54 = vpop.f32.mrb[24].mxu1 }
 0xad0   : > { %v1593_v47 = vadd.f32 %v1820_v53, %v1592_v54  ;;  %v1909_v40 = vpop.f32.mrb[25].mxu1 }
 0xad1   : > { %v1595_v51 = vpop.f32.mrb[26].mxu1 }
 0xad2   : > { %1598 = vst [vmem:[%s497_s29] sm:$0xff] %v1593_v47  ;;  %v1910_v7 = vpop.f32.mrb[27].mxu1 }
 0xad3   : > { %2343 = shalt.err (!%p2340_p7)
}
 0xad4   : > { %s2344_s28 = scalar_lea.hbm %s3073_s9, 128  ;;  %s2348_s13 = scalar_lea.hbm %s3159_s16, 256 }
 0xad5   : > { %p2345_p9 = scmp.ne.s32.totalorder %s3073_s9, %s2344_s28  ;;  %p2349_p0 = scmp.lt.u32.totalorder %s3073_s9, %s3159_s16 }
 0xad6   : > { %p2350_p2 = scmp.lt.u32.totalorder %s2348_s13, %s2344_s28  ;;  %p2352_p5 = scmp.lt.u32.totalorder %s2344_s28, %s3073_s9 }
 0xad7   : > { %p2346_p4 = pnand %p2345_p9, %p3160_p10 }
 0xad8   : > { %p2351_p6 = por %p2350_p2, %p2349_p0 }
 0xad9   : > { %p2347_p8 = pneg %p2346_p4 }
 0xada   : > { %p2353_p1 = por %p2352_p5, %p2351_p6 }
 0xadc   : > { %p2354_p11 = pnand %p2353_p1, %p2347_p8 }
 0xade   : > { %2357 = shalt.err (!%p2354_p11)
}
 0xadf   : > { %1937 = dma.vmem_to_hbm [thread:$0]  (%p3160_p10), %s3075_s12, 128, %s3073_s9, %s1600_s23  }
 0xae0 PF: > { %s1625_s14 = sand.u32 1, %s2396_s17   ;;  %p3161_p12 = scmp.ne.s32.totalorder %s3148_s2, 0 }
 0xae1   : > { %p3162_p13 = scmp.ge.s32.totalorder %s2408_s20, 2  ;;  %s1626_s30 = scalar_lea.sflag [#allocation4], %s1625_s14 }
 0xae3   : > { %p1963_p3 = pnand %p3162_p13, %p3161_p12 }
 0xae5   : > { %2391 = dma.done.wait (!%p1963_p3), %s1626_s30, 128  }
 0xae6   : > { %2393 = vsyncadd (!%p1963_p3), %s1626_s30, 4294967168  ;;  %p27_p7 = scmp.ge.s32.totalorder %s2666_s27, 4   ;;  %s3163_s17 = smov %s2400_s18 }
 0xae7   : > { %s3164_s18 = smov %s2404_s19  ;;  %s3165_s19 = smov %s2677_s11 }
 0xae8   : > { %s3166_s20 = smov %s2666_s27  ;;  %29 = sbr.rel (!%p27_p7) target bundleno = 14 (0xe), region = 136 }
 0xaef   :  { %1631 = vsyncpa [#allocation3], 1 }
 0xaf0   :  { %1633 = vsyncpa [#allocation3 + $0x1], 1 }
 0xaf1   :  { %1634 = vsyncpa [#allocation6], 1 }
 0xaf2   :  { %1635 = vsyncpa [#allocation9], 1 }
 0xaf3   :  { %1636 = vsyncpa [#allocation12], 1 }
 0xaf4   :  { %1637 = vsyncpa [#allocation4], 1 }
 0xaf5   :  { %1639 = vsyncpa [#allocation4 + $0x1], 1 }

</bundles_post_ra>
